<compile_context>
chip_gen: v7x
topology: tpu7x:2x2x1
jax: 0.10.0
libtpu: 0.0.40
codegen_flags: <defaults>
</compile_context>

<pallas_src>
import functools

import jax
import jax.numpy as jnp
import numpy as np
from jax.experimental import pallas as pl
from jax.experimental.pallas import tpu as pltpu

ESM_DIM = 768
GRASR_DIM = 400
GRASR_PAD = 512                 # 400 padded up to the next multiple of 128
IN_DIM = ESM_DIM + GRASR_DIM    # 1168
LN_EPS = 1e-5                   # torch.nn.LayerNorm default

# Row layout of the packed (8, Hp) f32 vector bundle.
_V_B1E, _V_GE, _V_BE, _V_B1G, _V_GG, _V_BG, _V_BM = range(7)

_WEIGHT_ORDER = ("w1e", "w1g", "w2e", "w2g", "wme", "wmg")


def _round_up(x, m):
    return ((x + m - 1) // m) * m


def _layernorm(h, gamma, beta, true_h):
    # One-pass LN (single reduction sweep).  Denominator uses the TRUE
    # (unpadded) hidden size so zero-padded columns never bias the statistics;
    # padded gamma/beta are zero, so padded output columns stay exactly 0.
    inv_n = 1.0 / float(true_h)
    mu = jnp.sum(h, axis=-1, keepdims=True) * inv_n
    var = jnp.sum(h * h, axis=-1, keepdims=True) * inv_n - mu * mu
    return (h - mu) * jax.lax.rsqrt(var + LN_EPS) * gamma + beta


def _two_branch_mlp(esm, gra, w1e, w1g, w2e, w2g, wme, wmg, vec, true_h):
    """Shared math for the kernel and the folded reference (f32 accumulation)."""
    cdt = w2e.dtype
    b1e, ge, be = vec[_V_B1E:_V_B1E + 1], vec[_V_GE:_V_GE + 1], vec[_V_BE:_V_BE + 1]
    b1g, gg, bg = vec[_V_B1G:_V_B1G + 1], vec[_V_GG:_V_GG + 1], vec[_V_BG:_V_BG + 1]
    bm = vec[_V_BM:_V_BM + 1]

    # --- ESM branch: Linear -> LayerNorm -> ReLU -> (Dropout=id) -> Linear
    h = jnp.dot(esm, w1e, preferred_element_type=jnp.float32) + b1e
    h = jnp.maximum(_layernorm(h, ge, be, true_h), 0.0)
    # TODO(synk): Dropout is identity in eval mode; training-mode RNG mask not implemented.
    esm_h = jnp.dot(h.astype(cdt), w2e, preferred_element_type=jnp.float32)

    # --- GraSR branch
    g = jnp.dot(gra, w1g, preferred_element_type=jnp.float32) + b1g
    g = jnp.maximum(_layernorm(g, gg, bg, true_h), 0.0)
    gra_h = jnp.dot(g.astype(cdt), w2g, preferred_element_type=jnp.float32)

    # --- concat([esm, gra]) @ Wm + bm  ==  esm@Wm_top + gra@Wm_bot + bm_eff
    return (jnp.dot(esm_h.astype(cdt), wme, preferred_element_type=jnp.float32)
            + jnp.dot(gra_h.astype(cdt), wmg, preferred_element_type=jnp.float32)
            + bm)


def protmlp_kernel(esm_ref, gra_ref, w1e_ref, w1g_ref, w2e_ref, w2g_ref,
                   wme_ref, wmg_ref, vec_ref, o_ref, *, true_h):
    out = _two_branch_mlp(esm_ref[...], gra_ref[...],
                          w1e_ref[...], w1g_ref[...], w2e_ref[...], w2g_ref[...],
                          wme_ref[...], wmg_ref[...], vec_ref[...], true_h)
    o_ref[...] = out.astype(o_ref.dtype)


def _pick_tile_b(batch, tile_b):
    """MXU/sublane-aligned batch tile with >=2 grid steps whenever B allows."""
    batch16 = _round_up(batch, 16)
    tile_b = max(16, min(tile_b, batch16))
    if batch > 16:
        # >=2 parallel grid steps so v7x's two TensorCores both get work.
        tile_b = min(tile_b, _round_up(pl.cdiv(batch, 2), 16))
    if tile_b >= 128:
        tile_b = max(128, (tile_b // 128) * 128)   # full MXU M-tiles
    else:
        tile_b = _round_up(tile_b, 16)             # bf16 sublane pack
    return tile_b


def prot_mlp_forward(x_esm, x_gra, params, *, tile_b=256, out_dtype=jnp.bfloat16,
                     single_buffer_weights=True, vmem_limit_bytes=None):
    """x_esm: (B, 768), x_gra: (B, 400) or (B, 512); params from prepare_params."""
    B = x_esm.shape[0]
    assert x_esm.shape == (B, ESM_DIM)
    H = params["hidden"]
    Hp = params["w2e"].shape[1]
    cdt = params["w1e"].dtype

    # Lane-align the GraSR stream (400 -> 512); zero columns are numerically inert.
    if x_gra.shape[1] == GRASR_DIM:
        x_gra = jnp.pad(x_gra, ((0, 0), (0, GRASR_PAD - GRASR_DIM)))
    assert x_gra.shape == (B, GRASR_PAD)
    x_esm = x_esm.astype(cdt)
    x_gra = x_gra.astype(cdt)

    tb = _pick_tile_b(B, tile_b)
    grid = (pl.cdiv(B, tb),)

    in_sz = jnp.dtype(cdt).itemsize
    out_sz = jnp.dtype(out_dtype).itemsize
    weight_bytes = ((ESM_DIM + GRASR_PAD) * Hp + 4 * Hp * Hp) * in_sz + 8 * Hp * 4
    act_bytes = 2 * tb * (ESM_DIM + GRASR_PAD) * in_sz   # double-buffered activations
    out_bytes = 2 * tb * Hp * out_sz                     # double-buffered output
    scratch = 6 * tb * Hp * 4                            # live f32 temporaries
    if vmem_limit_bytes is None:
        vmem_limit_bytes = int(1.25 * (weight_bytes + act_bytes + out_bytes + scratch))
        vmem_limit_bytes = max(32 << 20, min(vmem_limit_bytes + (8 << 20), 96 << 20))

    flops = 2 * B * ((ESM_DIM + GRASR_PAD) * Hp + 4 * Hp * Hp)
    cost = pl.CostEstimate(
        flops=flops,
        transcendentals=2 * B,   # one rsqrt per row per branch
        bytes_accessed=B * (ESM_DIM + GRASR_PAD) * in_sz + weight_bytes + B * Hp * out_sz,
    )

    resident = [params[k] for k in _WEIGHT_ORDER] + [params["vec"]]
    args = [x_esm, x_gra] + resident
    kernel = functools.partial(protmlp_kernel, true_h=H)

    def run(single_buffer):
        pm = {"pipeline_mode": pl.Buffered(1)} if single_buffer else {}

        def param_spec(p):
            nd = p.ndim
            return pl.BlockSpec(p.shape, lambda i: (0,) * nd, **pm)

        in_specs = [pl.BlockSpec((tb, ESM_DIM), lambda i: (i, 0)),
                    pl.BlockSpec((tb, GRASR_PAD), lambda i: (i, 0))]
        in_specs += [param_spec(p) for p in resident]

        fn = pl.pallas_call(
            kernel,
            out_shape=jax.ShapeDtypeStruct((B, Hp), out_dtype),
            grid=grid,
            in_specs=in_specs,
            out_specs=pl.BlockSpec((tb, Hp), lambda i: (i, 0)),
            compiler_params=pltpu.CompilerParams(
                dimension_semantics=("parallel",),
                vmem_limit_bytes=vmem_limit_bytes,
            ),
            cost_estimate=cost,
        )
        return fn(*args)

    if single_buffer_weights:
        try:
            out = run(True)
        except Exception:
            # pl.Buffered(1) not supported by this JAX/Mosaic build -> default buffering.
            out = run(False)
    else:
        out = run(False)

    return out[:, :H] if Hp != H else out


def init_params(key, hidden):
    """Deterministic f32 init mimicking PyTorch Linear default (U(-1/sqrt(fan_in), ..))."""
    ks = jax.random.split(key, 16)

    def linear(kw, kb, fan_in, fan_out):
        bound = 1.0 / float(np.sqrt(fan_in))
        w = jax.random.uniform(kw, (fan_in, fan_out), jnp.float32, -bound, bound)
        b = jax.random.uniform(kb, (1, fan_out), jnp.float32, -bound, bound)
        return w, b

    p = {}
    p["w1e"], p["b1e"] = linear(ks[0], ks[1], ESM_DIM, hidden)
    p["ge"] = jnp.ones((1, hidden), jnp.float32)
    p["be"] = jnp.zeros((1, hidden), jnp.float32)
    p["w2e"], p["b2e"] = linear(ks[2], ks[3], hidden, hidden)

    p["w1g"], p["b1g"] = linear(ks[4], ks[5], GRASR_DIM, hidden)
    p["gg"] = jnp.ones((1, hidden), jnp.float32)
    p["bg"] = jnp.zeros((1, hidden), jnp.float32)
    p["w2g"], p["b2g"] = linear(ks[6], ks[7], hidden, hidden)

    # Final Linear(2H, H): split its (2H, H) weight into top/bottom halves.
    bound = 1.0 / float(np.sqrt(2 * hidden))
    wm = jax.random.uniform(ks[8], (2 * hidden, hidden), jnp.float32, -bound, bound)
    p["wme"] = wm[:hidden]
    p["wmg"] = wm[hidden:]
    p["bm"] = jax.random.uniform(ks[9], (1, hidden), jnp.float32, -bound, bound)
    return p


def prepare_params(p, compute_dtype=jnp.bfloat16):
    """Pad H->Hp (multiple of 128) and GraSR K 400->512 with zeros, cast matmul
    weights to compute_dtype, fold 2nd-layer/mixer biases into bm_eff, and pack
    the (1,H) LN/bias vectors into one (8, Hp) f32 array."""
    # TODO(synk): optional fp8(e4m3) quantization of the HxH weights for v7x not implemented.
    H = p["w2e"].shape[1]
    Hp = _round_up(H, 128)

    def pad2(w, rows, cols):
        return jnp.pad(w, ((0, rows - w.shape[0]), (0, cols - w.shape[1])))

    out = {"hidden": H}
    out["w1e"] = pad2(p["w1e"], ESM_DIM, Hp).astype(compute_dtype)
    out["w1g"] = pad2(p["w1g"], GRASR_PAD, Hp).astype(compute_dtype)
    for k in ("w2e", "w2g", "wme", "wmg"):
        out[k] = pad2(p[k], Hp, Hp).astype(compute_dtype)

    # (esm_h + b2e) @ Wm_top + (gra_h + b2g) @ Wm_bot + bm
    #   = esm_h @ Wm_top + gra_h @ Wm_bot + bm_eff    (folded in f32)
    bm_eff = p["b2e"] @ p["wme"] + p["b2g"] @ p["wmg"] + p["bm"]

    vec = jnp.zeros((8, Hp), jnp.float32)
    for row, name in ((_V_B1E, "b1e"), (_V_GE, "ge"), (_V_BE, "be"),
                      (_V_B1G, "b1g"), (_V_GG, "gg"), (_V_BG, "bg")):
        vec = vec.at[row, :H].set(p[name][0].astype(jnp.float32))
    vec = vec.at[_V_BM, :H].set(bm_eff[0].astype(jnp.float32))
    out["vec"] = vec
    return out


def ref_forward(x_esm, x_gra, pp):
    """Pure-JAX reference computing the SAME folded/padded bf16-weight math."""
    H = pp["hidden"]
    cdt = pp["w1e"].dtype
    if x_gra.shape[1] == GRASR_DIM:
        x_gra = jnp.pad(x_gra, ((0, 0), (0, GRASR_PAD - GRASR_DIM)))
    out = _two_branch_mlp(x_esm.astype(cdt), x_gra.astype(cdt),
                          pp["w1e"], pp["w1g"], pp["w2e"], pp["w2g"],
                          pp["wme"], pp["wmg"], pp["vec"], H)
    return out[:, :H]


def torch_ref_forward(x, p):
    """Unfolded f32 reference matching the original PyTorch module (eval mode)."""
    def ln(h, g, b):
        mu = jnp.mean(h, axis=-1, keepdims=True)
        var = jnp.mean(jnp.square(h - mu), axis=-1, keepdims=True)
        return (h - mu) * jax.lax.rsqrt(var + LN_EPS) * g + b

    def branch(f, w1, b1, g, b, w2, b2):
        h = jnp.maximum(ln(f @ w1 + b1, g, b), 0.0)
        return h @ w2 + b2

    esm, gra = x[:, :ESM_DIM], x[:, ESM_DIM:]
    e = branch(esm, p["w1e"], p["b1e"], p["ge"], p["be"], p["w2e"], p["b2e"])
    r = branch(gra, p["w1g"], p["b1g"], p["gg"], p["bg"], p["w2g"], p["b2g"])
    wm = jnp.concatenate([p["wme"], p["wmg"]], axis=0)
    return jnp.concatenate([e, r], axis=1) @ wm + p["bm"]


if __name__ == "__main__":
    # Small deterministic test.  B=40:
    #   * tile_b=16 explicit  -> grid of 3 (partial last block path)
    #   * tile_b auto (default) -> tile 32, grid of 2 "parallel" steps (v7x dual-TC path)
    B, HIDDEN, TILE_B = 40, 32, 16

    key = jax.random.PRNGKey(0)
    k_x, k_p = jax.random.split(key)
    x = jax.random.normal(k_x, (B, IN_DIM), jnp.float32)
    params_f32 = init_params(k_p, HIDDEN)
    params = prepare_params(params_f32, compute_dtype=jnp.bfloat16)

    x_esm, x_gra = x[:, :ESM_DIM], x[:, ESM_DIM:]

    out = jax.block_until_ready(
        prot_mlp_forward(x_esm, x_gra, params, tile_b=TILE_B))
    out_auto = jax.block_until_ready(prot_mlp_forward(x_esm, x_gra, params))
    assert out.shape == (B, HIDDEN) and out_auto.shape == (B, HIDDEN)

    out_f = np.asarray(out.astype(jnp.float32))
    out_auto_f = np.asarray(out_auto.astype(jnp.float32))

    folded = np.asarray(ref_forward(x_esm, x_gra, params))       # same folded bf16 math
    unfolded = np.asarray(torch_ref_forward(x, params_f32))      # torch-equivalent f32 math

    np.testing.assert_allclose(out_f, folded, rtol=2e-2, atol=2e-2)
    np.testing.assert_allclose(out_auto_f, folded, rtol=2e-2, atol=2e-2)
    np.testing.assert_allclose(out_f, unfolded, rtol=6e-2, atol=6e-2)
    print("KERNEL_OK")
</pallas_src>

<mosaic_0001>
module attributes {stable_mosaic.version = 11 : i64} {
  func.func @protmlp_kernel(%arg0: i32, %arg1: memref<16x768xbf16, #tpu.memory_space<vmem>>, %arg2: memref<16x512xbf16, #tpu.memory_space<vmem>>, %arg3: memref<768x128xbf16, #tpu.memory_space<vmem>>, %arg4: memref<512x128xbf16, #tpu.memory_space<vmem>>, %arg5: memref<128x128xbf16, #tpu.memory_space<vmem>>, %arg6: memref<128x128xbf16, #tpu.memory_space<vmem>>, %arg7: memref<128x128xbf16, #tpu.memory_space<vmem>>, %arg8: memref<128x128xbf16, #tpu.memory_space<vmem>>, %arg9: memref<8x128xf32, #tpu.memory_space<vmem>>, %arg10: memref<16x128xbf16, #tpu.memory_space<vmem>>) attributes {dimension_semantics = [#tpu.dimension_semantics<parallel>], iteration_bounds = array<i64: 3>, scalar_prefetch = 0 : i64, scratch_operands = 0 : i64, tpu.core_type = #tpu.core_type<tc>, window_params = [{transform_indices = @transform_0, window_bounds = array<i64: 16, 768>}, {transform_indices = @transform_1, window_bounds = array<i64: 16, 512>}, {pipeline_mode = #tpu.pipeline_mode<synchronous>, transform_indices = @transform_2, window_bounds = array<i64: 768, 128>}, {pipeline_mode = #tpu.pipeline_mode<synchronous>, transform_indices = @transform_3, window_bounds = array<i64: 512, 128>}, {pipeline_mode = #tpu.pipeline_mode<synchronous>, transform_indices = @transform_4, window_bounds = array<i64: 128, 128>}, {pipeline_mode = #tpu.pipeline_mode<synchronous>, transform_indices = @transform_5, window_bounds = array<i64: 128, 128>}, {pipeline_mode = #tpu.pipeline_mode<synchronous>, transform_indices = @transform_6, window_bounds = array<i64: 128, 128>}, {pipeline_mode = #tpu.pipeline_mode<synchronous>, transform_indices = @transform_7, window_bounds = array<i64: 128, 128>}, {pipeline_mode = #tpu.pipeline_mode<synchronous>, transform_indices = @transform_8, window_bounds = array<i64: 8, 128>}, {transform_indices = @transform_9, window_bounds = array<i64: 16, 128>}]} {
    %c0 = arith.constant 0 : index
    %c0_0 = arith.constant 0 : index
    %0 = vector.load %arg1[%c0, %c0_0] : memref<16x768xbf16, #tpu.memory_space<vmem>>, vector<16x768xbf16>
    %c0_1 = arith.constant 0 : index
    %c0_2 = arith.constant 0 : index
    %1 = vector.load %arg2[%c0_1, %c0_2] : memref<16x512xbf16, #tpu.memory_space<vmem>>, vector<16x512xbf16>
    %c0_3 = arith.constant 0 : index
    %c0_4 = arith.constant 0 : index
    %2 = vector.load %arg3[%c0_3, %c0_4] : memref<768x128xbf16, #tpu.memory_space<vmem>>, vector<768x128xbf16>
    %c0_5 = arith.constant 0 : index
    %c0_6 = arith.constant 0 : index
    %3 = vector.load %arg4[%c0_5, %c0_6] : memref<512x128xbf16, #tpu.memory_space<vmem>>, vector<512x128xbf16>
    %c0_7 = arith.constant 0 : index
    %c0_8 = arith.constant 0 : index
    %4 = vector.load %arg5[%c0_7, %c0_8] : memref<128x128xbf16, #tpu.memory_space<vmem>>, vector<128x128xbf16>
    %c0_9 = arith.constant 0 : index
    %c0_10 = arith.constant 0 : index
    %5 = vector.load %arg6[%c0_9, %c0_10] : memref<128x128xbf16, #tpu.memory_space<vmem>>, vector<128x128xbf16>
    %c0_11 = arith.constant 0 : index
    %c0_12 = arith.constant 0 : index
    %6 = vector.load %arg7[%c0_11, %c0_12] : memref<128x128xbf16, #tpu.memory_space<vmem>>, vector<128x128xbf16>
    %c0_13 = arith.constant 0 : index
    %c0_14 = arith.constant 0 : index
    %7 = vector.load %arg8[%c0_13, %c0_14] : memref<128x128xbf16, #tpu.memory_space<vmem>>, vector<128x128xbf16>
    %c0_15 = arith.constant 0 : index
    %c0_16 = arith.constant 0 : index
    %8 = vector.load %arg9[%c0_15, %c0_16] : memref<8x128xf32, #tpu.memory_space<vmem>>, vector<8x128xf32>
    %9 = vector.extract_strided_slice %8 {offsets = [0, 0], sizes = [1, 128], strides = [1, 1]} : vector<8x128xf32> to vector<1x128xf32>
    %10 = vector.extract_strided_slice %8 {offsets = [1, 0], sizes = [1, 128], strides = [1, 1]} : vector<8x128xf32> to vector<1x128xf32>
    %11 = vector.extract_strided_slice %8 {offsets = [2, 0], sizes = [1, 128], strides = [1, 1]} : vector<8x128xf32> to vector<1x128xf32>
    %12 = vector.extract_strided_slice %8 {offsets = [3, 0], sizes = [1, 128], strides = [1, 1]} : vector<8x128xf32> to vector<1x128xf32>
    %13 = vector.extract_strided_slice %8 {offsets = [4, 0], sizes = [1, 128], strides = [1, 1]} : vector<8x128xf32> to vector<1x128xf32>
    %14 = vector.extract_strided_slice %8 {offsets = [5, 0], sizes = [1, 128], strides = [1, 1]} : vector<8x128xf32> to vector<1x128xf32>
    %15 = vector.extract_strided_slice %8 {offsets = [6, 0], sizes = [1, 128], strides = [1, 1]} : vector<8x128xf32> to vector<1x128xf32>
    %cst = arith.constant dense<0.000000e+00> : vector<16x128xf32>
    %16 = tpu.matmul %0, %2, %cst {dimension_numbers = #tpu.dot_dimension_numbers<[1], [0], [0], [1], [0, 0, 1, 1], [], []>} : vector<16x768xbf16>, vector<768x128xbf16>, vector<16x128xf32> -> vector<16x128xf32>
    %17 = vector.broadcast %9 : vector<1x128xf32> to vector<16x128xf32>
    %18 = arith.addf %16, %17 : vector<16x128xf32>
    %cst_17 = arith.constant dense<0.000000e+00> : vector<16xf32>
    %19 = vector.multi_reduction <add>, %18, %cst_17 [1] : vector<16x128xf32> to vector<16xf32>
    %20 = vector.shape_cast %19 : vector<16xf32> to vector<16x1xf32>
    %cst_18 = arith.constant 3.125000e-02 : f32
    %21 = vector.broadcast %cst_18 : f32 to vector<16x1xf32>
    %22 = arith.mulf %20, %21 : vector<16x1xf32>
    %23 = arith.mulf %18, %18 : vector<16x128xf32>
    %cst_19 = arith.constant dense<0.000000e+00> : vector<16xf32>
    %24 = vector.multi_reduction <add>, %23, %cst_19 [1] : vector<16x128xf32> to vector<16xf32>
    %25 = vector.shape_cast %24 : vector<16xf32> to vector<16x1xf32>
    %cst_20 = arith.constant 3.125000e-02 : f32
    %26 = vector.broadcast %cst_20 : f32 to vector<16x1xf32>
    %27 = arith.mulf %25, %26 : vector<16x1xf32>
    %28 = arith.mulf %22, %22 : vector<16x1xf32>
    %29 = arith.subf %27, %28 : vector<16x1xf32>
    %30 = vector.broadcast %22 : vector<16x1xf32> to vector<16x128xf32>
    %31 = arith.subf %18, %30 : vector<16x128xf32>
    %cst_21 = arith.constant 9.99999974E-6 : f32
    %32 = vector.broadcast %cst_21 : f32 to vector<16x1xf32>
    %33 = arith.addf %29, %32 : vector<16x1xf32>
    %34 = math.rsqrt %33 : vector<16x1xf32>
    %35 = vector.broadcast %34 : vector<16x1xf32> to vector<16x128xf32>
    %36 = arith.mulf %31, %35 : vector<16x128xf32>
    %37 = vector.broadcast %10 : vector<1x128xf32> to vector<16x128xf32>
    %38 = arith.mulf %36, %37 : vector<16x128xf32>
    %39 = vector.broadcast %11 : vector<1x128xf32> to vector<16x128xf32>
    %40 = arith.addf %38, %39 : vector<16x128xf32>
    %cst_22 = arith.constant 0.000000e+00 : f32
    %41 = vector.broadcast %cst_22 : f32 to vector<16x128xf32>
    %42 = arith.maximumf %40, %41 : vector<16x128xf32>
    %43 = arith.truncf %42 : vector<16x128xf32> to vector<16x128xbf16>
    %cst_23 = arith.constant dense<0.000000e+00> : vector<16x128xf32>
    %44 = tpu.matmul %43, %4, %cst_23 {dimension_numbers = #tpu.dot_dimension_numbers<[1], [0], [0], [1], [0, 0, 1, 1], [], []>} : vector<16x128xbf16>, vector<128x128xbf16>, vector<16x128xf32> -> vector<16x128xf32>
    %cst_24 = arith.constant dense<0.000000e+00> : vector<16x128xf32>
    %45 = tpu.matmul %1, %3, %cst_24 {dimension_numbers = #tpu.dot_dimension_numbers<[1], [0], [0], [1], [0, 0, 1, 1], [], []>} : vector<16x512xbf16>, vector<512x128xbf16>, vector<16x128xf32> -> vector<16x128xf32>
    %46 = vector.broadcast %12 : vector<1x128xf32> to vector<16x128xf32>
    %47 = arith.addf %45, %46 : vector<16x128xf32>
    %cst_25 = arith.constant dense<0.000000e+00> : vector<16xf32>
    %48 = vector.multi_reduction <add>, %47, %cst_25 [1] : vector<16x128xf32> to vector<16xf32>
    %49 = vector.shape_cast %48 : vector<16xf32> to vector<16x1xf32>
    %cst_26 = arith.constant 3.125000e-02 : f32
    %50 = vector.broadcast %cst_26 : f32 to vector<16x1xf32>
    %51 = arith.mulf %49, %50 : vector<16x1xf32>
    %52 = arith.mulf %47, %47 : vector<16x128xf32>
    %cst_27 = arith.constant dense<0.000000e+00> : vector<16xf32>
    %53 = vector.multi_reduction <add>, %52, %cst_27 [1] : vector<16x128xf32> to vector<16xf32>
    %54 = vector.shape_cast %53 : vector<16xf32> to vector<16x1xf32>
    %cst_28 = arith.constant 3.125000e-02 : f32
    %55 = vector.broadcast %cst_28 : f32 to vector<16x1xf32>
    %56 = arith.mulf %54, %55 : vector<16x1xf32>
    %57 = arith.mulf %51, %51 : vector<16x1xf32>
    %58 = arith.subf %56, %57 : vector<16x1xf32>
    %59 = vector.broadcast %51 : vector<16x1xf32> to vector<16x128xf32>
    %60 = arith.subf %47, %59 : vector<16x128xf32>
    %cst_29 = arith.constant 9.99999974E-6 : f32
    %61 = vector.broadcast %cst_29 : f32 to vector<16x1xf32>
    %62 = arith.addf %58, %61 : vector<16x1xf32>
    %63 = math.rsqrt %62 : vector<16x1xf32>
    %64 = vector.broadcast %63 : vector<16x1xf32> to vector<16x128xf32>
    %65 = arith.mulf %60, %64 : vector<16x128xf32>
    %66 = vector.broadcast %13 : vector<1x128xf32> to vector<16x128xf32>
    %67 = arith.mulf %65, %66 : vector<16x128xf32>
    %68 = vector.broadcast %14 : vector<1x128xf32> to vector<16x128xf32>
    %69 = arith.addf %67, %68 : vector<16x128xf32>
    %cst_30 = arith.constant 0.000000e+00 : f32
    %70 = vector.broadcast %cst_30 : f32 to vector<16x128xf32>
    %71 = arith.maximumf %69, %70 : vector<16x128xf32>
    %72 = arith.truncf %71 : vector<16x128xf32> to vector<16x128xbf16>
    %cst_31 = arith.constant dense<0.000000e+00> : vector<16x128xf32>
    %73 = tpu.matmul %72, %5, %cst_31 {dimension_numbers = #tpu.dot_dimension_numbers<[1], [0], [0], [1], [0, 0, 1, 1], [], []>} : vector<16x128xbf16>, vector<128x128xbf16>, vector<16x128xf32> -> vector<16x128xf32>
    %74 = arith.truncf %44 : vector<16x128xf32> to vector<16x128xbf16>
    %cst_32 = arith.constant dense<0.000000e+00> : vector<16x128xf32>
    %75 = tpu.matmul %74, %6, %cst_32 {dimension_numbers = #tpu.dot_dimension_numbers<[1], [0], [0], [1], [0, 0, 1, 1], [], []>} : vector<16x128xbf16>, vector<128x128xbf16>, vector<16x128xf32> -> vector<16x128xf32>
    %76 = arith.truncf %73 : vector<16x128xf32> to vector<16x128xbf16>
    %cst_33 = arith.constant dense<0.000000e+00> : vector<16x128xf32>
    %77 = tpu.matmul %76, %7, %cst_33 {dimension_numbers = #tpu.dot_dimension_numbers<[1], [0], [0], [1], [0, 0, 1, 1], [], []>} : vector<16x128xbf16>, vector<128x128xbf16>, vector<16x128xf32> -> vector<16x128xf32>
    %78 = arith.addf %75, %77 : vector<16x128xf32>
    %79 = vector.broadcast %15 : vector<1x128xf32> to vector<16x128xf32>
    %80 = arith.addf %78, %79 : vector<16x128xf32>
    %81 = arith.truncf %80 : vector<16x128xf32> to vector<16x128xbf16>
    %c0_34 = arith.constant 0 : index
    %c0_35 = arith.constant 0 : index
    %82 = vector.load %arg10[%c0_34, %c0_35] : memref<16x128xbf16, #tpu.memory_space<vmem>>, vector<16x128xbf16>
    tpu.vector_store %arg10[%c0_34, %c0_35], %81 {strides = array<i32>} : memref<16x128xbf16, #tpu.memory_space<vmem>>, vector<16x128xbf16>,
    return
  }
  func.func @transform_0(%arg0: i32) -> (i32, i32) {
    %c0_i32 = arith.constant 0 : i32
    %c0_i32_0 = arith.constant 0 : i32
    return %arg0, %c0_i32 : i32, i32
  }
  func.func @transform_1(%arg0: i32) -> (i32, i32) {
    %c0_i32 = arith.constant 0 : i32
    %c0_i32_0 = arith.constant 0 : i32
    return %arg0, %c0_i32 : i32, i32
  }
  func.func @transform_2(%arg0: i32) -> (i32, i32) {
    %c0_i32 = arith.constant 0 : i32
    %c0_i32_0 = arith.constant 0 : i32
    %c0_i32_1 = arith.constant 0 : i32
    return %c0_i32, %c0_i32_0 : i32, i32
  }
  func.func @transform_3(%arg0: i32) -> (i32, i32) {
    %c0_i32 = arith.constant 0 : i32
    %c0_i32_0 = arith.constant 0 : i32
    %c0_i32_1 = arith.constant 0 : i32
    return %c0_i32, %c0_i32_0 : i32, i32
  }
  func.func @transform_4(%arg0: i32) -> (i32, i32) {
    %c0_i32 = arith.constant 0 : i32
    %c0_i32_0 = arith.constant 0 : i32
    %c0_i32_1 = arith.constant 0 : i32
    return %c0_i32, %c0_i32_0 : i32, i32
  }
  func.func @transform_5(%arg0: i32) -> (i32, i32) {
    %c0_i32 = arith.constant 0 : i32
    %c0_i32_0 = arith.constant 0 : i32
    %c0_i32_1 = arith.constant 0 : i32
    return %c0_i32, %c0_i32_0 : i32, i32
  }
  func.func @transform_6(%arg0: i32) -> (i32, i32) {
    %c0_i32 = arith.constant 0 : i32
    %c0_i32_0 = arith.constant 0 : i32
    %c0_i32_1 = arith.constant 0 : i32
    return %c0_i32, %c0_i32_0 : i32, i32
  }
  func.func @transform_7(%arg0: i32) -> (i32, i32) {
    %c0_i32 = arith.constant 0 : i32
    %c0_i32_0 = arith.constant 0 : i32
    %c0_i32_1 = arith.constant 0 : i32
    return %c0_i32, %c0_i32_0 : i32, i32
  }
  func.func @transform_8(%arg0: i32) -> (i32, i32) {
    %c0_i32 = arith.constant 0 : i32
    %c0_i32_0 = arith.constant 0 : i32
    %c0_i32_1 = arith.constant 0 : i32
    return %c0_i32, %c0_i32_0 : i32, i32
  }
  func.func @transform_9(%arg0: i32) -> (i32, i32) {
    %c0_i32 = arith.constant 0 : i32
    %c0_i32_0 = arith.constant 0 : i32
    return %arg0, %c0_i32 : i32, i32
  }
}

module attributes {stable_mosaic.version = 11 : i64} {
  func.func @protmlp_kernel(%arg0: i32, %arg1: memref<16x768xbf16, #tpu.memory_space<vmem>>, %arg2: memref<16x512xbf16, #tpu.memory_space<vmem>>, %arg3: memref<768x128xbf16, #tpu.memory_space<vmem>>, %arg4: memref<512x128xbf16, #tpu.memory_space<vmem>>, %arg5: memref<128x128xbf16, #tpu.memory_space<vmem>>, %arg6: memref<128x128xbf16, #tpu.memory_space<vmem>>, %arg7: memref<128x128xbf16, #tpu.memory_space<vmem>>, %arg8: memref<128x128xbf16, #tpu.memory_space<vmem>>, %arg9: memref<8x128xf32, #tpu.memory_space<vmem>>, %arg10: memref<16x128xbf16, #tpu.memory_space<vmem>>) attributes {dimension_semantics = [#tpu.dimension_semantics<parallel>], iteration_bounds = array<i64: 3>, scalar_prefetch = 0 : i64, scratch_operands = 0 : i64, tpu.core_type = #tpu.core_type<tc>, window_params = [{transform_indices = @transform_0, window_bounds = array<i64: 16, 768>}, {transform_indices = @transform_1, window_bounds = array<i64: 16, 512>}, {pipeline_mode = #tpu.pipeline_mode<synchronous>, transform_indices = @transform_2, window_bounds = array<i64: 768, 128>}, {pipeline_mode = #tpu.pipeline_mode<synchronous>, transform_indices = @transform_3, window_bounds = array<i64: 512, 128>}, {pipeline_mode = #tpu.pipeline_mode<synchronous>, transform_indices = @transform_4, window_bounds = array<i64: 128, 128>}, {pipeline_mode = #tpu.pipeline_mode<synchronous>, transform_indices = @transform_5, window_bounds = array<i64: 128, 128>}, {pipeline_mode = #tpu.pipeline_mode<synchronous>, transform_indices = @transform_6, window_bounds = array<i64: 128, 128>}, {pipeline_mode = #tpu.pipeline_mode<synchronous>, transform_indices = @transform_7, window_bounds = array<i64: 128, 128>}, {pipeline_mode = #tpu.pipeline_mode<synchronous>, transform_indices = @transform_8, window_bounds = array<i64: 8, 128>}, {transform_indices = @transform_9, window_bounds = array<i64: 16, 128>}]} {
    %c0 = arith.constant 0 : index
    %c0_0 = arith.constant 0 : index
    %0 = vector.load %arg1[%c0, %c0_0] : memref<16x768xbf16, #tpu.memory_space<vmem>>, vector<16x768xbf16>
    %c0_1 = arith.constant 0 : index
    %c0_2 = arith.constant 0 : index
    %1 = vector.load %arg2[%c0_1, %c0_2] : memref<16x512xbf16, #tpu.memory_space<vmem>>, vector<16x512xbf16>
    %c0_3 = arith.constant 0 : index
    %c0_4 = arith.constant 0 : index
    %2 = vector.load %arg3[%c0_3, %c0_4] : memref<768x128xbf16, #tpu.memory_space<vmem>>, vector<768x128xbf16>
    %c0_5 = arith.constant 0 : index
    %c0_6 = arith.constant 0 : index
    %3 = vector.load %arg4[%c0_5, %c0_6] : memref<512x128xbf16, #tpu.memory_space<vmem>>, vector<512x128xbf16>
    %c0_7 = arith.constant 0 : index
    %c0_8 = arith.constant 0 : index
    %4 = vector.load %arg5[%c0_7, %c0_8] : memref<128x128xbf16, #tpu.memory_space<vmem>>, vector<128x128xbf16>
    %c0_9 = arith.constant 0 : index
    %c0_10 = arith.constant 0 : index
    %5 = vector.load %arg6[%c0_9, %c0_10] : memref<128x128xbf16, #tpu.memory_space<vmem>>, vector<128x128xbf16>
    %c0_11 = arith.constant 0 : index
    %c0_12 = arith.constant 0 : index
    %6 = vector.load %arg7[%c0_11, %c0_12] : memref<128x128xbf16, #tpu.memory_space<vmem>>, vector<128x128xbf16>
    %c0_13 = arith.constant 0 : index
    %c0_14 = arith.constant 0 : index
    %7 = vector.load %arg8[%c0_13, %c0_14] : memref<128x128xbf16, #tpu.memory_space<vmem>>, vector<128x128xbf16>
    %c0_15 = arith.constant 0 : index
    %c0_16 = arith.constant 0 : index
    %8 = vector.load %arg9[%c0_15, %c0_16] : memref<8x128xf32, #tpu.memory_space<vmem>>, vector<8x128xf32>
    %9 = vector.extract_strided_slice %8 {offsets = [0, 0], sizes = [1, 128], strides = [1, 1]} : vector<8x128xf32> to vector<1x128xf32>
    %10 = vector.extract_strided_slice %8 {offsets = [1, 0], sizes = [1, 128], strides = [1, 1]} : vector<8x128xf32> to vector<1x128xf32>
    %11 = vector.extract_strided_slice %8 {offsets = [2, 0], sizes = [1, 128], strides = [1, 1]} : vector<8x128xf32> to vector<1x128xf32>
    %12 = vector.extract_strided_slice %8 {offsets = [3, 0], sizes = [1, 128], strides = [1, 1]} : vector<8x128xf32> to vector<1x128xf32>
    %13 = vector.extract_strided_slice %8 {offsets = [4, 0], sizes = [1, 128], strides = [1, 1]} : vector<8x128xf32> to vector<1x128xf32>
    %14 = vector.extract_strided_slice %8 {offsets = [5, 0], sizes = [1, 128], strides = [1, 1]} : vector<8x128xf32> to vector<1x128xf32>
    %15 = vector.extract_strided_slice %8 {offsets = [6, 0], sizes = [1, 128], strides = [1, 1]} : vector<8x128xf32> to vector<1x128xf32>
    %cst = arith.constant dense<0.000000e+00> : vector<16x128xf32>
    %16 = tpu.matmul %0, %2, %cst {dimension_numbers = #tpu.dot_dimension_numbers<[1], [0], [0], [1], [0, 0, 1, 1], [], []>} : vector<16x768xbf16>, vector<768x128xbf16>, vector<16x128xf32> -> vector<16x128xf32>
    %17 = vector.broadcast %9 : vector<1x128xf32> to vector<16x128xf32>
    %18 = arith.addf %16, %17 : vector<16x128xf32>
    %cst_17 = arith.constant dense<0.000000e+00> : vector<16xf32>
    %19 = vector.multi_reduction <add>, %18, %cst_17 [1] : vector<16x128xf32> to vector<16xf32>
    %20 = vector.shape_cast %19 : vector<16xf32> to vector<16x1xf32>
    %cst_18 = arith.constant 3.125000e-02 : f32
    %21 = vector.broadcast %cst_18 : f32 to vector<16x1xf32>
    %22 = arith.mulf %20, %21 : vector<16x1xf32>
    %23 = arith.mulf %18, %18 : vector<16x128xf32>
    %cst_19 = arith.constant dense<0.000000e+00> : vector<16xf32>
    %24 = vector.multi_reduction <add>, %23, %cst_19 [1] : vector<16x128xf32> to vector<16xf32>
    %25 = vector.shape_cast %24 : vector<16xf32> to vector<16x1xf32>
    %cst_20 = arith.constant 3.125000e-02 : f32
    %26 = vector.broadcast %cst_20 : f32 to vector<16x1xf32>
    %27 = arith.mulf %25, %26 : vector<16x1xf32>
    %28 = arith.mulf %22, %22 : vector<16x1xf32>
    %29 = arith.subf %27, %28 : vector<16x1xf32>
    %30 = vector.broadcast %22 : vector<16x1xf32> to vector<16x128xf32>
    %31 = arith.subf %18, %30 : vector<16x128xf32>
    %cst_21 = arith.constant 9.99999974E-6 : f32
    %32 = vector.broadcast %cst_21 : f32 to vector<16x1xf32>
    %33 = arith.addf %29, %32 : vector<16x1xf32>
    %34 = math.rsqrt %33 : vector<16x1xf32>
    %35 = vector.broadcast %34 : vector<16x1xf32> to vector<16x128xf32>
    %36 = arith.mulf %31, %35 : vector<16x128xf32>
    %37 = vector.broadcast %10 : vector<1x128xf32> to vector<16x128xf32>
    %38 = arith.mulf %36, %37 : vector<16x128xf32>
    %39 = vector.broadcast %11 : vector<1x128xf32> to vector<16x128xf32>
    %40 = arith.addf %38, %39 : vector<16x128xf32>
    %cst_22 = arith.constant 0.000000e+00 : f32
    %41 = vector.broadcast %cst_22 : f32 to vector<16x128xf32>
    %42 = arith.maximumf %40, %41 : vector<16x128xf32>
    %43 = arith.truncf %42 : vector<16x128xf32> to vector<16x128xbf16>
    %cst_23 = arith.constant dense<0.000000e+00> : vector<16x128xf32>
    %44 = tpu.matmul %43, %4, %cst_23 {dimension_numbers = #tpu.dot_dimension_numbers<[1], [0], [0], [1], [0, 0, 1, 1], [], []>} : vector<16x128xbf16>, vector<128x128xbf16>, vector<16x128xf32> -> vector<16x128xf32>
    %cst_24 = arith.constant dense<0.000000e+00> : vector<16x128xf32>
    %45 = tpu.matmul %1, %3, %cst_24 {dimension_numbers = #tpu.dot_dimension_numbers<[1], [0], [0], [1], [0, 0, 1, 1], [], []>} : vector<16x512xbf16>, vector<512x128xbf16>, vector<16x128xf32> -> vector<16x128xf32>
    %46 = vector.broadcast %12 : vector<1x128xf32> to vector<16x128xf32>
    %47 = arith.addf %45, %46 : vector<16x128xf32>
    %cst_25 = arith.constant dense<0.000000e+00> : vector<16xf32>
    %48 = vector.multi_reduction <add>, %47, %cst_25 [1] : vector<16x128xf32> to vector<16xf32>
    %49 = vector.shape_cast %48 : vector<16xf32> to vector<16x1xf32>
    %cst_26 = arith.constant 3.125000e-02 : f32
    %50 = vector.broadcast %cst_26 : f32 to vector<16x1xf32>
    %51 = arith.mulf %49, %50 : vector<16x1xf32>
    %52 = arith.mulf %47, %47 : vector<16x128xf32>
    %cst_27 = arith.constant dense<0.000000e+00> : vector<16xf32>
    %53 = vector.multi_reduction <add>, %52, %cst_27 [1] : vector<16x128xf32> to vector<16xf32>
    %54 = vector.shape_cast %53 : vector<16xf32> to vector<16x1xf32>
    %cst_28 = arith.constant 3.125000e-02 : f32
    %55 = vector.broadcast %cst_28 : f32 to vector<16x1xf32>
    %56 = arith.mulf %54, %55 : vector<16x1xf32>
    %57 = arith.mulf %51, %51 : vector<16x1xf32>
    %58 = arith.subf %56, %57 : vector<16x1xf32>
    %59 = vector.broadcast %51 : vector<16x1xf32> to vector<16x128xf32>
    %60 = arith.subf %47, %59 : vector<16x128xf32>
    %cst_29 = arith.constant 9.99999974E-6 : f32
    %61 = vector.broadcast %cst_29 : f32 to vector<16x1xf32>
    %62 = arith.addf %58, %61 : vector<16x1xf32>
    %63 = math.rsqrt %62 : vector<16x1xf32>
    %64 = vector.broadcast %63 : vector<16x1xf32> to vector<16x128xf32>
    %65 = arith.mulf %60, %64 : vector<16x128xf32>
    %66 = vector.broadcast %13 : vector<1x128xf32> to vector<16x128xf32>
    %67 = arith.mulf %65, %66 : vector<16x128xf32>
    %68 = vector.broadcast %14 : vector<1x128xf32> to vector<16x128xf32>
    %69 = arith.addf %67, %68 : vector<16x128xf32>
    %cst_30 = arith.constant 0.000000e+00 : f32
    %70 = vector.broadcast %cst_30 : f32 to vector<16x128xf32>
    %71 = arith.maximumf %69, %70 : vector<16x128xf32>
    %72 = arith.truncf %71 : vector<16x128xf32> to vector<16x128xbf16>
    %cst_31 = arith.constant dense<0.000000e+00> : vector<16x128xf32>
    %73 = tpu.matmul %72, %5, %cst_31 {dimension_numbers = #tpu.dot_dimension_numbers<[1], [0], [0], [1], [0, 0, 1, 1], [], []>} : vector<16x128xbf16>, vector<128x128xbf16>, vector<16x128xf32> -> vector<16x128xf32>
    %74 = arith.truncf %44 : vector<16x128xf32> to vector<16x128xbf16>
    %cst_32 = arith.constant dense<0.000000e+00> : vector<16x128xf32>
    %75 = tpu.matmul %74, %6, %cst_32 {dimension_numbers = #tpu.dot_dimension_numbers<[1], [0], [0], [1], [0, 0, 1, 1], [], []>} : vector<16x128xbf16>, vector<128x128xbf16>, vector<16x128xf32> -> vector<16x128xf32>
    %76 = arith.truncf %73 : vector<16x128xf32> to vector<16x128xbf16>
    %cst_33 = arith.constant dense<0.000000e+00> : vector<16x128xf32>
    %77 = tpu.matmul %76, %7, %cst_33 {dimension_numbers = #tpu.dot_dimension_numbers<[1], [0], [0], [1], [0, 0, 1, 1], [], []>} : vector<16x128xbf16>, vector<128x128xbf16>, vector<16x128xf32> -> vector<16x128xf32>
    %78 = arith.addf %75, %77 : vector<16x128xf32>
    %79 = vector.broadcast %15 : vector<1x128xf32> to vector<16x128xf32>
    %80 = arith.addf %78, %79 : vector<16x128xf32>
    %81 = arith.truncf %80 : vector<16x128xf32> to vector<16x128xbf16>
    %c0_34 = arith.constant 0 : index
    %c0_35 = arith.constant 0 : index
    %82 = vector.load %arg10[%c0_34, %c0_35] : memref<16x128xbf16, #tpu.memory_space<vmem>>, vector<16x128xbf16>
    tpu.vector_store %arg10[%c0_34, %c0_35], %81 {strides = array<i32>} : memref<16x128xbf16, #tpu.memory_space<vmem>>, vector<16x128xbf16>,
    return
  }
  func.func @transform_0(%arg0: i32) -> (i32, i32) {
    %c0_i32 = arith.constant 0 : i32
    %c0_i32_0 = arith.constant 0 : i32
    return %arg0, %c0_i32 : i32, i32
  }
  func.func @transform_1(%arg0: i32) -> (i32, i32) {
    %c0_i32 = arith.constant 0 : i32
    %c0_i32_0 = arith.constant 0 : i32
    return %arg0, %c0_i32 : i32, i32
  }
  func.func @transform_2(%arg0: i32) -> (i32, i32) {
    %c0_i32 = arith.constant 0 : i32
    %c0_i32_0 = arith.constant 0 : i32
    %c0_i32_1 = arith.constant 0 : i32
    return %c0_i32, %c0_i32_0 : i32, i32
  }
  func.func @transform_3(%arg0: i32) -> (i32, i32) {
    %c0_i32 = arith.constant 0 : i32
    %c0_i32_0 = arith.constant 0 : i32
    %c0_i32_1 = arith.constant 0 : i32
    return %c0_i32, %c0_i32_0 : i32, i32
  }
  func.func @transform_4(%arg0: i32) -> (i32, i32) {
    %c0_i32 = arith.constant 0 : i32
    %c0_i32_0 = arith.constant 0 : i32
    %c0_i32_1 = arith.constant 0 : i32
    return %c0_i32, %c0_i32_0 : i32, i32
  }
  func.func @transform_5(%arg0: i32) -> (i32, i32) {
    %c0_i32 = arith.constant 0 : i32
    %c0_i32_0 = arith.constant 0 : i32
    %c0_i32_1 = arith.constant 0 : i32
    return %c0_i32, %c0_i32_0 : i32, i32
  }
  func.func @transform_6(%arg0: i32) -> (i32, i32) {
    %c0_i32 = arith.constant 0 : i32
    %c0_i32_0 = arith.constant 0 : i32
    %c0_i32_1 = arith.constant 0 : i32
    return %c0_i32, %c0_i32_0 : i32, i32
  }
  func.func @transform_7(%arg0: i32) -> (i32, i32) {
    %c0_i32 = arith.constant 0 : i32
    %c0_i32_0 = arith.constant 0 : i32
    %c0_i32_1 = arith.constant 0 : i32
    return %c0_i32, %c0_i32_0 : i32, i32
  }
  func.func @transform_8(%arg0: i32) -> (i32, i32) {
    %c0_i32 = arith.constant 0 : i32
    %c0_i32_0 = arith.constant 0 : i32
    %c0_i32_1 = arith.constant 0 : i32
    return %c0_i32, %c0_i32_0 : i32, i32
  }
  func.func @transform_9(%arg0: i32) -> (i32, i32) {
    %c0_i32 = arith.constant 0 : i32
    %c0_i32_0 = arith.constant 0 : i32
    return %arg0, %c0_i32 : i32, i32
  }
}

</mosaic_0001>

<bundles_post_ra>
// kernel: tpu_custom_call.1
= control target key start
LH: loop header
LB: loop body
LE: loop exit
PB: predicated region body
PF: predicated region fallthrough
CT: control target
= control target key end

     0   :  { %s3657_s0 = inlined_call_operand.hbm [shape: bf16[40,768], index: 0, kind: input, shape index: {}]   ;;  %s3658_s1 = inlined_call_operand.hbm [shape: bf16[40,512], index: 1, kind: input, shape index: {}]   ;;  %s3659_s2 = inlined_call_operand.hbm [shape: bf16[768,128], index: 2, kind: input, shape index: {}]   ;;  %s3660_s3 = inlined_call_operand.hbm [shape: bf16[512,128], index: 3, kind: input, shape index: {}]   ;;  %s3661_s4 = inlined_call_operand.hbm [shape: bf16[128,128], index: 4, kind: input, shape index: {}]   ;;  %s3662_s5 = inlined_call_operand.hbm [shape: bf16[128,128], index: 5, kind: input, shape index: {}]   ;;  %s3663_s6 = inlined_call_operand.hbm [shape: bf16[128,128], index: 6, kind: input, shape index: {}]   ;;  %s3664_s7 = inlined_call_operand.hbm [shape: bf16[128,128], index: 7, kind: input, shape index: {}]   ;;  %s3665_s8 = inlined_call_operand.vmem [shape: f32[8,128], index: 8, kind: input, shape index: {}]   ;;  %s3666_s9 = inlined_call_operand.hbm [shape: bf16[40,128], index: 9, kind: output, shape index: {}]  }
   0x1   :  { %3676 = sst [smem:[#allocation29_spill]] %s3660_s3 }
   0x2   :  { %3677 = sst [smem:[#allocation30_spill]] %s3665_s8 }
   0x3   :  { %3678 = sst [smem:[#allocation31_spill]] %s3666_s9 }
   0x4   :  { %14 = vsyncpa [#allocation3], 0 }
   0x5   :  { %16 = vsyncpa [#allocation3 + $0x1], 0 }
   0x6   :  { %17 = vsyncpa [#allocation6], 0 }
   0x7   :  { %19 = vsyncpa [#allocation6 + $0x1], 0 }
   0x8   :  { %20 = vsyncpa [#allocation9], 0 }
   0x9   :  { %21 = vsyncpa [#allocation12], 0 }
   0xa   :  { %22 = vsyncpa [#allocation15], 0 }
   0xb   :  { %23 = vsyncpa [#allocation4], 0 }
   0xc   :  { %25 = vsyncpa [#allocation4 + $0x1], 0  ;;  %s3153_s30 = smov 0   ;;  %s3155_s10 = smov 0  }
   0xd   :  { %s3157_s11 = smov 0   ;;  %s3159_s12 = smov 0  }
   0xe LB: > { %3679 = sst [smem:[#allocation24_spill]] %s3070_s30  ;;  %s3174_s13 = sadd.s32 4294967295, %s3082_s12   ;;  %s3082_s12 = sphi %s3159_s12, %s3711_s12   ;;  %s3078_s11 = sphi %s3157_s11, %s3715_s11   ;;  %s3074_s10 = sphi %s3155_s10, %s3714_s10   ;;  %s3070_s30 = sphi %s3153_s30, %s3713_s30  }
   0xf   : > { %s2119_s14 = sadd.s32 4294967294, %s3082_s12   ;;  %s3178_s15 = sadd.s32 1, %s3082_s12  }
  0x10   : > { %3680 = sst [smem:[#allocation25_spill]] %s3178_s15  ;;  %s38_s16 = sadd.s32 1, %s3078_s11 }
  0x11   : > { %s35_s17 = ssub.s32 %s3082_s12, %s3178_s15  ;;  %p45_p0 = scmp.ne.s32.totalorder %s3078_s11, %s3074_s10 }
  0x12   : > { %p36_p1 = scmp.eq.s32.totalorder %s35_s17, 0  ;;  %p46_p2 = scmp.eq.s32.totalorder %s3082_s12, 0 }
  0x13   : > { %p51_p3 = scmp.ne.s32.totalorder %s3074_s10, %s3070_s30  ;;  %p3669_p4 = scmp.eq.s32.totalorder %s3174_s13, 0 }
  0x14   : > { %s3190_s18 = scalar_select %p36_p1, %s3078_s11, %s38_s16  }
  0x15   : > { %p3192_p5 = por %p46_p2, %p45_p0  ;;  %p3198_p6 = por %p3669_p4, %p51_p3 }
  0x16   : > { %3681 = sst [smem:[#allocation26_spill]] %s3190_s18  ;;  %p248_p7 = scmp.eq.s32.totalorder %s3174_s13, 2 }
  0x17   : > { %s3682_s19 = scalar_select %p3192_p5, 1, 0 }
  0x18   : > { %s3683_s20 = scalar_select %p3198_p6, 1, 0 }
  0x19   : > { %p254_p8 = scmp.eq.s32.totalorder %s2119_s14, 2  ;;  %p2120_p9 = scmp.ge.s32.totalorder %s3082_s12, 1 }
  0x1a   : > { %p261_p10 = scmp.lt.s32.totalorder %s3082_s12, 4  ;;  %p3205_p11 = por %p248_p7, %p45_p0 }
  0x1b   : > { %p3209_p12 = por %p254_p8, %p51_p3  ;;  %s3084_s24 = smov [#allocation8]  }
  0x1c   : > { %s3684_s21 = scalar_select %p3205_p11, 1, 0 }
  0x1d   : > { %s3686_s22 = scalar_select %p3209_p12, 1, 0 }
  0x1e   : > { %3685 = sst [smem:[#allocation27_spill]] %s3684_s21  ;;  %p3213_p13 = pnand %p2120_p9, %p261_p10 }
  0x1f   : > { %3687 = sst [smem:[#allocation28_spill]] %s3686_s22  ;;  %s286_s25 = sshll.u32 %s3084_s24, 4  ;;  %s287_s25 = int_to_ptr.vmem [resolvable:$true] %s286_s25 }
  0x20   : > { %s3688_s23 = scalar_select %p3213_p13, 1, 0 }
  0x21   : > { %p2553_p1 = pneg %p3213_p13  ;;  %s3085_s27 = smov [#allocation11]  }
  0x22   : > { %s312_s28 = sshll.u32 %s3085_s27, 4  ;;  %s3690_s3 = sld [smem:[#allocation29_spill]]  ;;  %s3225_s28 = int_to_ptr.vmem [resolvable:$true] %s312_s28 }
  0x23   : > { %p3221_p2 = pnand %p2553_p1, %p3669_p4 }
  0x25   : > { %p3235_p3 = pneg %p3221_p2 }
  0x28   : > { %s2772_s16 = scalar_lea.hbm %s3690_s3, 4096 }
  0x29   : > { %p2773_p0 = scmp.ne.s32.totalorder %s3690_s3, %s2772_s16  ;;  %p2779_p9 = scmp.lt.u32.totalorder %s2772_s16, %s3690_s3 }
  0x2b   : > { %p2775_p7 = pnand %p3235_p3, %p2773_p0 }
  0x2d   : > { %p2776_p8 = pneg %p2775_p7 }
  0x2f   : > { %p2781_p10 = pnand %p2779_p9, %p2776_p8 }
  0x31   : > { %2784 = shalt.err (!%p2781_p10)
}
  0x32   : > { %s2785_s29 = scalar_lea.vmem %s287_s25, 4096  ;;  %p2793_p11 = scmp.lt.s32.totalorder %s287_s25, %s287_s25 }
  0x33   : > { %p2786_p1 = scmp.ne.s32.totalorder %s287_s25, %s2785_s29  ;;  %p2794_p6 = scmp.lt.s32.totalorder %s2785_s29, %s2785_s29 }
  0x35   : > { %p2788_p4 = pnand %p2786_p1, %p3235_p3  ;;  %p2795_p13 = por %p2794_p6, %p2793_p11 }
  0x37   : > { %p2789_p12 = pneg %p2788_p4 }
  0x39   : > { %p2796_p5 = pnand %p2795_p13, %p2789_p12 }
  0x3b   : > { %2799 = shalt.err (!%p2796_p5)
}
  0x3c   : > { %s3086_s18 = smov 64   ;;  %s3087_s14 = smov 4  }
  0x3d   : > { %2559 = dma.hbm_to_vmem [thread:$0]  (!%p3221_p2), %s3690_s3, 4096, %s287_s25, [#allocation9], %s3086_s18, %s3086_s18, %s3087_s14  }
  0x3e   : > { %s2800_s22 = scalar_lea.hbm %s3662_s5, 1024 }
  0x3f   : > { %p2801_p4 = scmp.ne.s32.totalorder %s3662_s5, %s2800_s22  ;;  %p2807_p11 = scmp.lt.u32.totalorder %s2800_s22, %s3662_s5 }
  0x41   : > { %p2803_p5 = pnand %p2801_p4, %p3235_p3 }
  0x43   : > { %p2804_p6 = pneg %p2803_p5 }
  0x45   : > { %p2809_p12 = pnand %p2807_p11, %p2804_p6 }
  0x47   : > { %2812 = shalt.err (!%p2809_p12)
}
  0x48   : > { %s2813_s25 = scalar_lea.vmem %s3225_s28, 1024  ;;  %p2821_p8 = scmp.lt.s32.totalorder %s3225_s28, %s3225_s28 }
  0x49   : > { %p2814_p13 = scmp.ne.s32.totalorder %s3225_s28, %s2813_s25  ;;  %p2822_p9 = scmp.lt.s32.totalorder %s2813_s25, %s2813_s25 }
  0x4b   : > { %p2816_p0 = pnand %p2814_p13, %p3235_p3  ;;  %p2823_p10 = por %p2822_p9, %p2821_p8 }
  0x4d   : > { %p2817_p7 = pneg %p2816_p0 }
  0x4f   : > { %p2824_p1 = pnand %p2823_p10, %p2817_p7 }
  0x51   : > { %2827 = shalt.err (!%p2824_p1)
}
  0x52   : > { %2565 = dma.hbm_to_vmem [thread:$0]  (!%p3221_p2), %s3662_s5, 1024, %s3225_s28, [#allocation12], %s3086_s18, %s3086_s18, %s3087_s14  }
  0x53   : > { %s3088_s21 = smov [#allocation7]   ;;  %s3089_s15 = smov [#allocation10]  }
  0x54   : > { %s273_s22 = sshll.u32 %s3088_s21, 4  ;;  %s299_s16 = sshll.u32 %s3089_s15, 4  ;;  %s274_s22 = int_to_ptr.vmem [resolvable:$true] %s273_s22  ;;  %s300_s16 = int_to_ptr.vmem [resolvable:$true] %s299_s16 }
  0x55   : > { %s2828_s29 = scalar_lea.hbm %s3659_s2, 6144 }
  0x56   : > { %p2829_p4 = scmp.ne.s32.totalorder %s3659_s2, %s2828_s29  ;;  %p2835_p11 = scmp.lt.u32.totalorder %s2828_s29, %s3659_s2 }
  0x58   : > { %p2831_p5 = pnand %p2829_p4, %p3235_p3 }
  0x5a   : > { %p2832_p6 = pneg %p2831_p5 }
  0x5c   : > { %p2837_p12 = pnand %p2835_p11, %p2832_p6 }
  0x5e   : > { %2840 = shalt.err (!%p2837_p12)
}
  0x5f   : > { %s2841_s28 = scalar_lea.vmem %s274_s22, 6144  ;;  %p2849_p8 = scmp.lt.s32.totalorder %s274_s22, %s274_s22 }
  0x60   : > { %p2842_p13 = scmp.ne.s32.totalorder %s274_s22, %s2841_s28  ;;  %p2850_p9 = scmp.lt.s32.totalorder %s2841_s28, %s2841_s28 }
  0x62   : > { %p2844_p0 = pnand %p2842_p13, %p3235_p3  ;;  %p2851_p10 = por %p2850_p9, %p2849_p8 }
  0x64   : > { %p2845_p7 = pneg %p2844_p0 }
  0x66   : > { %p2852_p1 = pnand %p2851_p10, %p2845_p7 }
  0x68   : > { %2855 = shalt.err (!%p2852_p1)
}
  0x69   : > { %2556 = dma.hbm_to_vmem [thread:$0]  (!%p3221_p2), %s3659_s2, 6144, %s274_s22, [#allocation6], %s3086_s18, %s3086_s18, %s3087_s14  }
  0x6a   : > { %s2856_s15 = scalar_lea.hbm %s3661_s4, 1024 }
  0x6b   : > { %p2857_p4 = scmp.ne.s32.totalorder %s3661_s4, %s2856_s15  ;;  %p2863_p11 = scmp.lt.u32.totalorder %s2856_s15, %s3661_s4 }
  0x6d   : > { %p2859_p5 = pnand %p2857_p4, %p3235_p3 }
  0x6f   : > { %p2860_p6 = pneg %p2859_p5 }
  0x71   : > { %p2865_p12 = pnand %p2863_p11, %p2860_p6 }
  0x73   : > { %2868 = shalt.err (!%p2865_p12)
}
  0x74   : > { %s2869_s9 = scalar_lea.vmem %s300_s16, 1024  ;;  %p2877_p8 = scmp.lt.s32.totalorder %s300_s16, %s300_s16 }
  0x75   : > { %p2870_p13 = scmp.ne.s32.totalorder %s300_s16, %s2869_s9  ;;  %p2878_p9 = scmp.lt.s32.totalorder %s2869_s9, %s2869_s9 }
  0x77   : > { %p2872_p0 = pnand %p2870_p13, %p3235_p3  ;;  %p2879_p10 = por %p2878_p9, %p2877_p8 }
  0x79   : > { %p2873_p7 = pneg %p2872_p0 }
  0x7b   : > { %p2880_p1 = pnand %p2879_p10, %p2873_p7 }
  0x7d   : > { %2883 = shalt.err (!%p2880_p1)
}
  0x7e   : > { %2562 = dma.hbm_to_vmem [thread:$0]  (!%p3221_p2), %s3661_s4, 1024, %s300_s16, [#allocation9], %s3086_s18, %s3086_s18, %s3087_s14  }
  0x7f   : > { %s3090_s3 = smov [#allocation13]   ;;  %s3091_s30 = smov [#allocation14]  }
  0x80   : > { %s325_s8 = sshll.u32 %s3090_s3, 4  ;;  %s338_s21 = sshll.u32 %s3091_s30, 4  ;;  %s326_s8 = int_to_ptr.vmem [resolvable:$true] %s325_s8  ;;  %s339_s21 = int_to_ptr.vmem [resolvable:$true] %s338_s21 }
  0x81   : > { %s2884_s27 = scalar_lea.hbm %s3663_s6, 1024 }
  0x82   : > { %p2885_p4 = scmp.ne.s32.totalorder %s3663_s6, %s2884_s27  ;;  %p2891_p11 = scmp.lt.u32.totalorder %s2884_s27, %s3663_s6 }
  0x84   : > { %p2887_p5 = pnand %p2885_p4, %p3235_p3 }
  0x86   : > { %p2888_p6 = pneg %p2887_p5 }
  0x88   : > { %p2893_p12 = pnand %p2891_p11, %p2888_p6 }
  0x8a   : > { %2896 = shalt.err (!%p2893_p12)
}
  0x8b   : > { %s2897_s16 = scalar_lea.vmem %s326_s8, 1024  ;;  %p2905_p8 = scmp.lt.s32.totalorder %s326_s8, %s326_s8 }
  0x8c   : > { %p2898_p13 = scmp.ne.s32.totalorder %s326_s8, %s2897_s16  ;;  %p2906_p9 = scmp.lt.s32.totalorder %s2897_s16, %s2897_s16 }
  0x8e   : > { %p2900_p0 = pnand %p2898_p13, %p3235_p3  ;;  %p2907_p10 = por %p2906_p9, %p2905_p8 }
  0x90   : > { %p2901_p7 = pneg %p2900_p0 }
  0x92   : > { %p2908_p1 = pnand %p2907_p10, %p2901_p7 }
  0x94   : > { %2911 = shalt.err (!%p2908_p1)
}
  0x95   : > { %2568 = dma.hbm_to_vmem [thread:$0]  (!%p3221_p2), %s3663_s6, 1024, %s326_s8, [#allocation12], %s3086_s18, %s3086_s18, %s3087_s14  }
  0x96   : > { %s2912_s17 = scalar_lea.hbm %s3664_s7, 1024 }
  0x97   : > { %p2913_p4 = scmp.ne.s32.totalorder %s3664_s7, %s2912_s17  ;;  %p2919_p11 = scmp.lt.u32.totalorder %s2912_s17, %s3664_s7 }
  0x99   : > { %p2915_p5 = pnand %p2913_p4, %p3235_p3 }
  0x9b   : > { %p2916_p6 = pneg %p2915_p5 }
  0x9d   : > { %p2921_p12 = pnand %p2919_p11, %p2916_p6 }
  0x9f   : > { %2924 = shalt.err (!%p2921_p12)
}
  0xa0   : > { %s2925_s22 = scalar_lea.vmem %s339_s21, 1024  ;;  %p2933_p8 = scmp.lt.s32.totalorder %s339_s21, %s339_s21 }
  0xa1   : > { %p2926_p13 = scmp.ne.s32.totalorder %s339_s21, %s2925_s22  ;;  %p2934_p9 = scmp.lt.s32.totalorder %s2925_s22, %s2925_s22 }
  0xa3   : > { %p2928_p0 = pnand %p2926_p13, %p3235_p3  ;;  %p2935_p10 = por %p2934_p9, %p2933_p8 }
  0xa5   : > { %p2929_p7 = pneg %p2928_p0 }
  0xa7   : > { %p2936_p1 = pnand %p2935_p10, %p2929_p7 }
  0xa9   : > { %2939 = shalt.err (!%p2936_p1)
}
  0xaa   : > { %2571 = dma.hbm_to_vmem [thread:$0]  (!%p3221_p2), %s3664_s7, 1024, %s339_s21, [#allocation15], %s3086_s18, %s3086_s18, %s3087_s14  }
  0xab   : > { %p2127_p4 = scmp.ge.s32.totalorder %s3082_s12, 3 }
  0xac   : > { %p3692_p3 = scmp.ne.s32.totalorder (!%p2127_p4), %s3682_s19, 0 }
  0xad   : > { %351 = sbr.rel (%p2127_p4) target bundleno = 253 (0xfd), region = 44 }
  0xb4   : > { %354 = sbr.rel (!%p3692_p3) target bundleno = 216 (0xd8), region = 48  ;;  %s355_s24 = sand.u32 (%p3692_p3), 1, %s3078_s11  }
  0xb5   : > { %s2128_s28 = sshll.u32 (%p3692_p3), %s3082_s12, 1  ;;  %s2523_s3 = smul.u32 (%p3692_p3), 48, %s355_s24 }
  0xb6   : > { %s361_s30 = ssub.s32 (%p3692_p3), 5, %s2128_s28  ;;  %s3372_s17 = scalar_lea.sflag (%p3692_p3), [#allocation3], %s355_s24 }
  0xb7   : > { %p362_p5 = scmp.lt.s32.totalorder (%p3692_p3), %s361_s30, 2  ;;  %s359_s18 = scalar_lea.vmem (%p3692_p3), [#allocation2], %s2523_s3 }
  0xbb   : > { %s3717_s30 = smov (!%p362_p5, %s361_s30), 2 }
  0xbc   : > { %s3369_s26 = smul.u32 384, %s3717_s30 }
  0xbe   : > { %s367_s15 = ssub.s32 768, %s3369_s26 }
  0xbf   : > { %368 = vsyncadd %s3372_s17, %s367_s15  ;;  %p2131_p2 = scmp.ne.s32.totalorder %s3369_s26, 0  ;;  %s2524_s14 = smul.u32 768, %s3082_s12 }
  0xc0   : > { %s374_s21 = sshll.u32 %s359_s18, 4  ;;  %s2944_s16 = scalar_lea.hbm %s3657_s0, 1920  ;;  %s3382_s21 = int_to_ptr.vmem [resolvable:$true] %s374_s21 }
  0xc1   : > { %s3380_s25 = scalar_lea.hbm %s3657_s0, %s2524_s14 }
  0xc2   : > { %s2940_s9 = scalar_lea.hbm %s3380_s25, %s3369_s26  ;;  %p2945_p13 = scmp.lt.u32.totalorder %s3380_s25, %s3657_s0 }
  0xc3   : > { %p2941_p6 = scmp.ne.s32.totalorder %s3380_s25, %s2940_s9  ;;  %p2946_p0 = scmp.lt.u32.totalorder %s2944_s16, %s2940_s9 }
  0xc4   : > { %p2948_p8 = scmp.lt.u32.totalorder %s2940_s9, %s3380_s25 }
  0xc5   : > { %p2942_p11 = pnand %p2941_p6, %p2131_p2  ;;  %p2947_p7 = por %p2946_p0, %p2945_p13 }
  0xc7   : > { %p2943_p12 = pneg %p2942_p11  ;;  %p2949_p9 = por %p2948_p8, %p2947_p7 }
  0xc9   : > { %p2950_p10 = pnand %p2949_p9, %p2943_p12 }
  0xcb   : > { %2953 = shalt.err (!%p2950_p10)
}
  0xcc   : > { %s2954_s3 = scalar_lea.vmem %s3382_s21, %s3369_s26  ;;  %s3092_s30 = smov [#allocation2]  }
  0xcd   : > { %p2955_p1 = scmp.ne.s32.totalorder %s3382_s21, %s2954_s3  ;;  %s2958_s15 = sshll.u32 %s3092_s30, 4  ;;  %s2959_s15 = int_to_ptr.vmem [resolvable:$false] %s2958_s15 }
  0xce   : > { %s2960_s18 = scalar_lea.vmem %s2959_s15, 1536  ;;  %p2961_p5 = scmp.lt.s32.totalorder %s3382_s21, %s2959_s15 }
  0xcf   : > { %p2956_p4 = pnand %p2955_p1, %p2131_p2  ;;  %p2962_p6 = scmp.lt.s32.totalorder %s2960_s18, %s2954_s3 }
  0xd1   : > { %p2957_p3 = pneg %p2956_p4  ;;  %p2963_p11 = por %p2962_p6, %p2961_p5 }
  0xd3   : > { %p2964_p13 = pnand %p2963_p11, %p2957_p3 }
  0xd5   : > { %2967 = shalt.err (!%p2964_p13)
}
  0xd6   : > { %s3093_s14 = smov 384   ;;  %s3094_s27 = smov 24  }
  0xd7   : > { %380 = dma.hbm_to_vmem [thread:$0]  (%p2131_p2), %s3380_s25, %s3369_s26, %s3382_s21, %s3372_s17, %s3093_s14, %s3093_s14, %s3094_s27  }
  0xd8 PF: > { %p3693_p12 = scmp.ne.s32.totalorder %s3682_s19, 0 }
  0xd9   : > { %s384_s29 = sand.u32 (%p3693_p12), 1, %s3082_s12   ;;  %s386_s9 = sand.u32 (%p3693_p12), 1, %s3078_s11  }
  0xda   : > { %383 = sbr.rel (!%p3693_p12) target bundleno = 253 (0xfd), region = 52  ;;  %s2135_s22 = sshll.u32 (%p3693_p12), %s386_s9, 5 }
  0xdb   : > { %s2136_s8 = sshll.u32 (%p3693_p12), %s3082_s12, 1  ;;  %s3417_s3 = scalar_lea.sflag (%p3693_p12), [#allocation6], %s384_s29 }
  0xdc   : > { %s390_s16 = ssub.s32 (%p3693_p12), 5, %s2136_s8  ;;  %s388_s26 = scalar_lea.vmem (%p3693_p12), [#allocation5], %s2135_s22 }
  0xdd   : > { %p391_p0 = scmp.lt.s32.totalorder (%p3693_p12), %s390_s16, 2 }
  0xe1   : > { %s3719_s16 = smov (!%p391_p0, %s390_s16), 2 }
  0xe2   : > { %s3414_s24 = sshll.u32 %s3719_s16, 8 }
  0xe3   : > { %s396_s28 = ssub.s32 512, %s3414_s24 }
  0xe4   : > { %397 = vsyncadd %s3417_s3, %s396_s28  ;;  %p2139_p2 = scmp.ne.s32.totalorder %s3414_s24, 0  ;;  %s2288_s19 = sshll.u32 %s3082_s12, 9 }
  0xe5   : > { %s3425_s25 = scalar_lea.hbm %s3658_s1, %s2288_s19  ;;  %s403_s30 = sshll.u32 %s388_s26, 4  ;;  %s3427_s30 = int_to_ptr.vmem [resolvable:$true] %s403_s30 }
  0xe6   : > { %s2968_s15 = scalar_lea.hbm %s3425_s25, %s3414_s24  ;;  %s2972_s27 = scalar_lea.hbm %s3658_s1, 1280 }
  0xe7   : > { %p2969_p7 = scmp.ne.s32.totalorder %s3425_s25, %s2968_s15  ;;  %p2973_p10 = scmp.lt.u32.totalorder %s3425_s25, %s3658_s1 }
  0xe8   : > { %p2974_p1 = scmp.lt.u32.totalorder %s2972_s27, %s2968_s15  ;;  %p2976_p3 = scmp.lt.u32.totalorder %s2968_s15, %s3425_s25 }
  0xe9   : > { %p2970_p8 = pnand %p2969_p7, %p2139_p2 }
  0xea   : > { %p2975_p4 = por %p2974_p1, %p2973_p10 }
  0xeb   : > { %p2971_p9 = pneg %p2970_p8 }
  0xec   : > { %p2977_p5 = por %p2976_p3, %p2975_p4 }
  0xee   : > { %p2978_p6 = pnand %p2977_p5, %p2971_p9 }
  0xf0   : > { %2981 = shalt.err (!%p2978_p6)
}
  0xf1   : > { %s2982_s22 = scalar_lea.vmem %s3427_s30, %s3414_s24  ;;  %s3095_s8 = smov [#allocation5]  }
  0xf2   : > { %p2983_p11 = scmp.ne.s32.totalorder %s3427_s30, %s2982_s22  ;;  %s2986_s16 = sshll.u32 %s3095_s8, 4  ;;  %s2987_s16 = int_to_ptr.vmem [resolvable:$false] %s2986_s16 }
  0xf3   : > { %s2988_s28 = scalar_lea.vmem %s2987_s16, 1024  ;;  %p2989_p0 = scmp.lt.s32.totalorder %s3427_s30, %s2987_s16 }
  0xf4   : > { %p2984_p13 = pnand %p2983_p11, %p2139_p2  ;;  %p2990_p7 = scmp.lt.s32.totalorder %s2988_s28, %s2982_s22 }
  0xf6   : > { %p2985_p12 = pneg %p2984_p13  ;;  %p2991_p8 = por %p2990_p7, %p2989_p0 }
  0xf8   : > { %p2992_p10 = pnand %p2991_p8, %p2985_p12 }
  0xfa   : > { %2995 = shalt.err (!%p2992_p10)
}
  0xfb   : > { %s3096_s26 = smov 256   ;;  %s3097_s19 = smov 16  }
  0xfc   : > { %409 = dma.hbm_to_vmem [thread:$0]  (%p2139_p2), %s3425_s25, %s3414_s24, %s3427_s30, %s3417_s3, %s3096_s26, %s3096_s26, %s3097_s19  }
  0xfd PF: > { %p3694_p9 = scmp.ne.s32.totalorder %s3688_s23, 0 }
  0xfe   : > { %s3457_s17 = sand.u32 (!%p3694_p9), 1, %s3074_s10   ;;  %p3695_p1 = scmp.ne.s32.totalorder (!%p3694_p9), %s3683_s20, 0 }
  0xff   : > { %415 = sbr.rel (%p3694_p9) target bundleno = 1625 (0x659), region = 56  ;;  %s418_s15 = scalar_lea.sflag (!%p3694_p9), [#allocation3], %s3457_s17 }
 0x100   : > { %s2525_s21 = smul.u32 (!%p3694_p9), 48, %s3457_s17 }
 0x102   : > { %s3461_s18 = scalar_lea.vmem (!%p3694_p9), [#allocation2], %s2525_s21 }
 0x106   : > { %3041 = dma.done.wait (%p3695_p1), %s418_s15, 768  }
 0x107   : > { %3043 = vsyncadd (%p3695_p1), %s418_s15, 4294966528  ;;  %s426_s23 = sand.u32 1, %s3174_s13   ;;  %s2145_s24 = sshll.u32 %s3457_s17, 5 }
 0x108   : > { %s427_s3 = scalar_lea.sflag [#allocation6], %s426_s23  ;;  %s3469_s25 = scalar_lea.vmem [#allocation5], %s2145_s24 }
 0x109   : > { %3045 = dma.done.wait (%p3695_p1), %s427_s3, 512  }
 0x10a   : > { %3047 = vsyncadd (%p3695_p1), %s427_s3, 4294966784  ;;  %p3696_p2 = scmp.eq.s32.totalorder %s3174_s13, 0 }
 0x10c   : > { %3049 = dma.done.wait (%p3696_p2), [#allocation6], 6144   ;;  %p3697_p4 = pmov %p3696_p2 }
 0x10d   : > { %p3698_p3 = pmov %p3696_p2 }
 0x10e   : > { %3051 = vsyncadd (%p3697_p4), [#allocation6], 4294961152 }
 0x10f   : > { %3053 = dma.done.wait (%p3698_p3), [#allocation9], 5120   ;;  %p3699_p5 = pmov %p3696_p2 }
 0x110   : > { %p3700_p6 = pmov %p3696_p2 }
 0x111   : > { %3055 = vsyncadd (%p3699_p5), [#allocation9], 4294962176 }
 0x112   : > { %3057 = dma.done.wait (%p3700_p6), [#allocation12], 2048   ;;  %p3701_p11 = pmov %p3696_p2 }
 0x113   : > { %p3702_p13 = pmov %p3696_p2 }
 0x114   : > { %3059 = vsyncadd (%p3701_p11), [#allocation12], 4294965248 }
 0x115   : > { %3061 = dma.done.wait (%p3702_p13), [#allocation15], 1024   ;;  %p3703_p12 = pmov %p3696_p2 }
 0x116   : > { %v2637_v0 = vld [vmem:[#allocation7 + $0x40] sm:$0xff]   ;;  %v2641_v4 = vld [vmem:[#allocation7 + $0x48] sm:$0xff]   ;;  %v2645_v8 = vld [vmem:[#allocation7 + $0x50] sm:$0xff]   ;;  %v747_v54 = vlaneseq  ;;  %s3704_s14 = sld [smem:[#allocation30_spill]]  ;;  %vm3099_vm0 = vmmov 0   ;;  %s2152_s27 = sshll.u32 %s3457_s17, 3 }
 0x117   : > { %3063 = vsyncadd (%p3703_p12), [#allocation15], 4294966272  ;;  %v2638_v1 = vld [vmem:[#allocation7] sm:$0xff]   ;;  %2297 = vmatprep.subr.bf16.mxu0 %v2637_v0  ;;  %v2642_v5 = vld [vmem:[#allocation7 + $0x8] sm:$0xff]   ;;  %s493_s29 = scalar_lea.vmem [#allocation16], %s2152_s27  ;;  %s1947_s9 = scalar_lea.sflag [#allocation4], %s3457_s17 }
 0x118   : > { %v2639_v2 = vld [vmem:[#allocation7 + $0xc0] sm:$0xff]   ;;  %2298 = vmatpush3.bf16.msra.mxu0 %v2638_v1  ;;  %v2643_v6 = vld [vmem:[#allocation7 + $0xc8] sm:$0xff]   ;;  %v2646_v9 = vld [vmem:[#allocation7 + $0x10] sm:$0xff]   ;;  %v3497_v55 = vshrl.u32 %v747_v54, 7  ;;  %s3705_s22 = sld [smem:[#allocation27_spill]] }
 0x119   : > { %v2640_v3 = vld [vmem:[#allocation7 + $0x80] sm:$0xff]   ;;  %2319 = vmatprep.subr.bf16.mxu1 %v2639_v2  ;;  %2299 = vmatprep.subr.bf16.mxu0 %v2641_v4  ;;  %v2644_v7 = vld [vmem:[#allocation7 + $0x88] sm:$0xff]   ;;  %v2647_v10 = vld [vmem:[#allocation7 + $0xd0] sm:$0xff]  }
 0x11a   : > { %2320 = vmatpush3.bf16.msra.mxu1 %v2640_v3  ;;  %v2648_v11 = vld [vmem:[#allocation7 + $0x90] sm:$0xff]   ;;  %v2649_v12 = vld [vmem:[#allocation7 + $0x58] sm:$0xff]   ;;  %v2653_v16 = vld [vmem:[#allocation7 + $0x60] sm:$0xff]   ;;  %v749_v56 = vsub.s32 0, %v3497_v55 }
 0x11b   : > { %2321 = vmatprep.subr.bf16.mxu1 %v2643_v6  ;;  %v2650_v13 = vld [vmem:[#allocation7 + $0x18] sm:$0xff]   ;;  %v2654_v17 = vld [vmem:[#allocation7 + $0x20] sm:$0xff]   ;;  %v2657_v20 = vld [vmem:[#allocation7 + $0x68] sm:$0xff]  }
 0x11c   : > { %2300 = vmatpush3.bf16.msra.mxu0 %v2642_v5  ;;  %v2651_v14 = vld [vmem:[#allocation7 + $0xd8] sm:$0xff]   ;;  %v2655_v18 = vld [vmem:[#allocation7 + $0xe0] sm:$0xff]   ;;  %v2658_v21 = vld [vmem:[#allocation7 + $0x28] sm:$0xff]  }
 0x11d   : > { %2301 = vmatprep.subr.bf16.mxu0 %v2645_v8  ;;  %v2652_v15 = vld [vmem:[#allocation7 + $0x98] sm:$0xff]   ;;  %v2656_v19 = vld [vmem:[#allocation7 + $0xa0] sm:$0xff]   ;;  %v2659_v22 = vld [vmem:[#allocation7 + $0xe8] sm:$0xff]  }
 0x11e   : > { %2322 = vmatpush3.bf16.msra.mxu1 %v2644_v7  ;;  %v2660_v23 = vld [vmem:[#allocation7 + $0xa8] sm:$0xff]   ;;  %v2661_v24 = vld [vmem:[#allocation7 + $0x70] sm:$0xff]   ;;  %v2665_v28 = vld [vmem:[#allocation7 + $0x78] sm:$0xff]   ;;  %p3706_p0 = scmp.ne.s32.totalorder %s3705_s22, 0 }
 0x11f   : > { %2323 = vmatprep.subr.bf16.mxu1 %v2647_v10  ;;  %v2662_v25 = vld [vmem:[#allocation7 + $0x30] sm:$0xff]   ;;  %v2666_v29 = vld [vmem:[#allocation7 + $0x38] sm:$0xff]   ;;  %v2672_v34 = vld [vmem:[#allocation7 + $0x140] sm:$0xff]   ;;  %s2278_s8 = sshll.u32 (%p3706_p0), %s3174_s13, 1 }
 0x120   : > { %2302 = vmatpush3.bf16.msra.mxu0 %v2646_v9  ;;  %v2663_v26 = vld [vmem:[#allocation7 + $0xf0] sm:$0xff]   ;;  %v2667_v30 = vld [vmem:[#allocation7 + $0xf8] sm:$0xff]   ;;  %v2676_v37 = vld [vmem:[#allocation7 + $0x100] sm:$0xff]   ;;  %s1955_s16 = ssub.s32 (%p3706_p0), 5, %s2278_s8 }
 0x121   : > { %2303 = vmatprep.subr.bf16.mxu0 %v2649_v12  ;;  %v2664_v27 = vld [vmem:[#allocation7 + $0xb0] sm:$0xff]   ;;  %v2671_v33 = vld [vmem:[#allocation7 + $0xb8] sm:$0xff]   ;;  %v2677_v38 = vld [vmem:[#allocation7 + $0x148] sm:$0xff]   ;;  %p1956_p7 = scmp.lt.s32.totalorder (%p3706_p0), %s1955_s16, 2 }
 0x122   : > { %2324 = vmatpush3.bf16.msra.mxu1 %v2648_v11  ;;  %v2668_v31 = vld [vmem:[%s3461_s18] ss:$24 sps:$4 sm:$0xff]   ;;  %v2670_v32 = vld [vmem:[%s3461_s18 + $0x4] ss:$24 sps:$4 sm:$0xff]   ;;  %v2693_v47 = vld [vmem:[%s3461_s18 + $0x14] ss:$24 sps:$4 sm:$0xff]  }
 0x123   : > { %2325 = vmatprep.subr.bf16.mxu1 %v2651_v14  ;;  %1101 = vmatprep.mubr.bf16.mxu0 %v2670_v32  ;;  %v2673_v35 = vld [vmem:[%s3461_s18 + $0x8] ss:$24 sps:$4 sm:$0xff]   ;;  %v2675_v36 = vld [vmem:[%s3461_s18 + $0xc] ss:$24 sps:$4 sm:$0xff]  }
 0x124   : > { %2304 = vmatpush3.bf16.msra.mxu0 %v2650_v13  ;;  %1142 = vmatprep.mubr.bf16.mxu1 %v2675_v36  ;;  %v2678_v39 = vld [vmem:[#allocation7 + $0x108] sm:$0xff]   ;;  %v2679_v40 = vld [vmem:[#allocation7 + $0x150] sm:$0xff]   ;;  %v2681_v42 = vld [vmem:[#allocation7 + $0x158] sm:$0xff]  }
 0x125   : > { %2305 = vmatprep.subr.bf16.mxu0 %v2653_v16  ;;  %v2680_v41 = vld [vmem:[#allocation7 + $0x110] sm:$0xff]   ;;  %v2682_v43 = vld [vmem:[#allocation7 + $0x118] sm:$0xff]   ;;  %v2683_v44 = vld [vmem:[#allocation7 + $0x160] sm:$0xff]  }
 0x126   : > { %2326 = vmatpush3.bf16.msra.mxu1 %v2652_v15  ;;  %v2684_v45 = vld [vmem:[#allocation7 + $0x120] sm:$0xff]   ;;  %v2685_v46 = vld [vmem:[#allocation7 + $0x168] sm:$0xff]   ;;  %v2687_v49 = vld [vmem:[#allocation7 + $0x170] sm:$0xff]  }
 0x127   : > { %2327 = vmatprep.subr.bf16.mxu1 %v2655_v18  ;;  %v2686_v48 = vld [vmem:[#allocation7 + $0x128] sm:$0xff]   ;;  %v2688_v50 = vld [vmem:[#allocation7 + $0x130] sm:$0xff]   ;;  %v2689_v51 = vld [vmem:[#allocation7 + $0x178] sm:$0xff]  }
 0x128   : > { %2306 = vmatpush3.bf16.msra.mxu0 %v2654_v17  ;;  %v2690_v52 = vld [vmem:[#allocation7 + $0x138] sm:$0xff]   ;;  %v3503_v57 = vld [vmem:[%s3704_s14] sm:$0xff]  ;;  %v2700_v32 = vld [vmem:[#allocation10 + $0x30] sm:$0xff]  }
 0x129   : > { %2307 = vmatprep.subr.bf16.mxu0 %v2657_v20  ;;  %v2691_v53 = vld [vmem:[%s3461_s18 + $0x10] ss:$24 sps:$4 sm:$0xff]   ;;  %v750_v59 = vrot.slane %v3503_v57, %v749_v56 }
 0x12a   : > { %2328 = vmatpush3.bf16.msra.mxu1 %v2656_v19  ;;  %v2709_v36 = vld [vmem:[#allocation8 + $0x10] sm:$0xff]  }
 0x12b   : > { %2329 = vmatprep.subr.bf16.mxu1 %v2659_v22  ;;  %v3098_v22 = vmov 0.0  }
 0x12c   : > { %2308 = vmatpush3.bf16.msra.mxu0 %v2658_v21  ;;  %v2694_v21 = vld [vmem:[#allocation10] sm:$0xff]  }
 0x12d   : > { %2309 = vmatprep.subr.bf16.mxu0 %v2661_v24  ;;  %v2696_v24 = vld [vmem:[#allocation10 + $0x10] sm:$0xff]  }
 0x12e   : > { %2330 = vmatpush3.bf16.msra.mxu1 %v2660_v23  ;;  %v2695_v23 = vld [vmem:[#allocation10 + $0x8] sm:$0xff]  }
 0x12f   : > { %2331 = vmatprep.subr.bf16.mxu1 %v2663_v26  ;;  %v2698_v26 = vld [vmem:[#allocation10 + $0x20] sm:$0xff]  }
 0x130   : > { %2310 = vmatpush3.bf16.msra.mxu0 %v2662_v25  ;;  %v2697_v25 = vld [vmem:[#allocation10 + $0x18] sm:$0xff]  }
 0x131   : > { %2311 = vmatprep.subr.bf16.mxu0 %v2665_v28  ;;  %v2702_v28 = vld [vmem:[#allocation8] sm:$0xff]  }
 0x132   : > { %2332 = vmatpush3.bf16.msra.mxu1 %v2664_v27  ;;  %v2701_v27 = vld [vmem:[#allocation8 + $0x40] sm:$0xff]  }
 0x133   : > { %2333 = vmatprep.subr.bf16.mxu1 %v2667_v30  ;;  %v2705_v30 = vld [vmem:[#allocation8 + $0x8] sm:$0xff]  }
 0x134   : > { %2312 = vmatpush3.bf16.msra.mxu0 %v2666_v29  ;;  %v2704_v29 = vld [vmem:[#allocation8 + $0x48] sm:$0xff]  }
 0x135   : > { %2341 = vmatprep.subr.bf16.mxu0 %v2672_v34  ;;  %v2706_v34 = vld [vmem:[#allocation8 + $0xc0] sm:$0xff]  }
 0x136   : > { %2334 = vmatpush3.bf16.msra.mxu1 %v2671_v33  ;;  %v2703_v33 = vld [vmem:[#allocation10 + $0x38] sm:$0xff]  }
 0x137   : > { %1102 = vmatmul.mubr.bf16.vlgmr.msra.gmra.mrb[0].mxu0 %v2668_v31  ;;  %2443 = vmatprep.subr.bf16.mxu1 %v3098_v22  ;;  %v2699_v31 = vld [vmem:[#allocation10 + $0x28] sm:$0xff]  }
 0x138   : > { %2342 = vmatpush3.bf16.msra.mxu0 %v2676_v37  ;;  %1183 = vmatprep.mubr.bf16.mxu0 %v2693_v47  ;;  %v2712_v37 = vld [vmem:[#allocation8 + $0x58] sm:$0xff]   ;;  %v2734_v47 = vld [vmem:[%s3469_s25 + $0x4] ss:$16 sps:$4 sm:$0xff]  }
 0x139   : > { %1143 = vmatmul.mubr.bf16.vlgmr.msra.gmra.mrb[0].mxu1 %v2673_v35  ;;  %2343 = vmatprep.subr.bf16.mxu0 %v2677_v38  ;;  %v2708_v35 = vld [vmem:[#allocation8 + $0x50] sm:$0xff]   ;;  %v2713_v38 = vld [vmem:[#allocation8 + $0x18] sm:$0xff]  }
 0x13a   : > { %2444 = vmatpush3.bf16.msra.mxu1 %v2694_v21  ;;  %2459 = vmatprep.mubr.msk.bf16.mxu1 %vm3099_vm0, %v3098_v22  ;;  %v2710_v21 = vld [vmem:[#allocation8 + $0xc8] sm:$0xff]  }
 0x13b   : > { %2445 = vmatprep.subr.bf16.mxu1 %v3098_v22 }
 0x13c   : > { %2344 = vmatpush3.bf16.msra.mxu0 %v2678_v39  ;;  %v2716_v39 = vld [vmem:[#allocation8 + $0x60] sm:$0xff]  }
 0x13d   : > { %2345 = vmatprep.subr.bf16.mxu0 %v2679_v40  ;;  %v2717_v40 = vld [vmem:[#allocation8 + $0x20] sm:$0xff]  }
 0x13e   : > { %2446 = vmatpush3.bf16.msra.mxu1 %v2695_v23  ;;  %v2711_v23 = vld [vmem:[#allocation8 + $0x88] sm:$0xff]  }
 0x13f   : > { %2447 = vmatprep.subr.bf16.mxu1 %v3098_v22 }
 0x140   : > { %2346 = vmatpush3.bf16.msra.mxu0 %v2680_v41  ;;  %v2720_v41 = vld [vmem:[#allocation8 + $0x68] sm:$0xff]  }
 0x141   : > { %2347 = vmatprep.subr.bf16.mxu0 %v2681_v42  ;;  %v2721_v42 = vld [vmem:[#allocation8 + $0x28] sm:$0xff]  }
 0x142   : > { %2448 = vmatpush3.bf16.msra.mxu1 %v2696_v24  ;;  %v2715_v24 = vld [vmem:[#allocation8 + $0x90] sm:$0xff]  }
 0x143   : > { %2449 = vmatprep.subr.bf16.mxu1 %v3098_v22 }
 0x144   : > { %2348 = vmatpush3.bf16.msra.mxu0 %v2682_v43  ;;  %v2724_v43 = vld [vmem:[#allocation8 + $0x70] sm:$0xff]  }
 0x145   : > { %2349 = vmatprep.subr.bf16.mxu0 %v2683_v44  ;;  %v2725_v44 = vld [vmem:[#allocation8 + $0x30] sm:$0xff]  }
 0x146   : > { %2450 = vmatpush3.bf16.msra.mxu1 %v2697_v25  ;;  %v2718_v25 = vld [vmem:[#allocation8 + $0xd8] sm:$0xff]  }
 0x147   : > { %2451 = vmatprep.subr.bf16.mxu1 %v3098_v22 }
 0x148   : > { %2350 = vmatpush3.bf16.msra.mxu0 %v2684_v45  ;;  %v2728_v45 = vld [vmem:[#allocation8 + $0x78] sm:$0xff]  }
 0x149   : > { %2351 = vmatprep.subr.bf16.mxu0 %v2685_v46  ;;  %v2729_v46 = vld [vmem:[#allocation8 + $0x38] sm:$0xff]  }
 0x14a   : > { %2452 = vmatpush3.bf16.msra.mxu1 %v2698_v26  ;;  %v2719_v26 = vld [vmem:[#allocation8 + $0x98] sm:$0xff]  }
 0x14b   : > { %2453 = vmatprep.subr.bf16.mxu1 %v3098_v22 }
 0x14c   : > { %2352 = vmatpush3.bf16.msra.mxu0 %v2686_v48  ;;  %v2732_v48 = vld [vmem:[%s3469_s25] ss:$16 sps:$4 sm:$0xff]  }
 0x14d   : > { %2353 = vmatprep.subr.bf16.mxu0 %v2687_v49 }
 0x14e   : > { %2454 = vmatpush3.bf16.msra.mxu1 %v2699_v31  ;;  %v2730_v31 = vld [vmem:[#allocation8 + $0xf0] sm:$0xff]  }
 0x14f   : > { %2455 = vmatprep.subr.bf16.mxu1 %v3098_v22 }
 0x150   : > { %2354 = vmatpush3.bf16.msra.mxu0 %v2688_v50 }
 0x151   : > { %2355 = vmatprep.subr.bf16.mxu0 %v2689_v51 }
 0x152   : > { %2456 = vmatpush3.bf16.msra.mxu1 %v2700_v32  ;;  %v2731_v32 = vld [vmem:[#allocation8 + $0xb0] sm:$0xff]  }
 0x153   : > { %2457 = vmatprep.subr.bf16.mxu1 %v3098_v22 }
 0x154   : > { %2356 = vmatpush3.bf16.msra.mxu0 %v2690_v52 }
 0x155   : > { %2372 = vmatprep.subr.bf16.mxu0 %v2701_v27  ;;  %v2722_v27 = vld [vmem:[#allocation8 + $0xe0] sm:$0xff]  }
 0x156   : > { %2458 = vmatpush3.bf16.msra.mxu1 %v2703_v33  ;;  %v2735_v33 = vld [vmem:[#allocation8 + $0xf8] sm:$0xff]  }
 0x157   : > { %1184 = vmatmul.mubr.bf16.vlgmr.msra.gmra.mrb[4].mxu0 %v2691_v53  ;;  %2394 = vmatprep.subr.bf16.mxu1 %v2706_v34  ;;  %v2736_v34 = vld [vmem:[#allocation8 + $0xb8] sm:$0xff]  }
 0x158   : > { %2373 = vmatpush3.bf16.msra.mxu0 %v2702_v28  ;;  %1570 = vmatprep.mubr.bf16.mxu0 %v2734_v47  ;;  %v2723_v28 = vld [vmem:[#allocation8 + $0xa0] sm:$0xff]   ;;  %v1324_v47 = vsub.s32 3, %v3497_v55 }
 0x159   : > { %2374 = vmatprep.subr.bf16.mxu0 %v2704_v29  ;;  %v2726_v29 = vld [vmem:[#allocation8 + $0xe8] sm:$0xff]  }
 0x15c   : > { %2375 = vmatpush3.bf16.msra.mxu0 %v2705_v30  ;;  %v2727_v30 = vld [vmem:[#allocation8 + $0xa8] sm:$0xff]  }
 0x15d   : > { %2376 = vmatprep.subr.bf16.mxu0 %v2708_v35  ;;  %v2737_v35 = vld [vmem:[%s3469_s25 + $0x8] ss:$16 sps:$4 sm:$0xff]  }
 0x160   : > { %2377 = vmatpush3.bf16.msra.mxu0 %v2709_v36 }
 0x161   : > { %2378 = vmatprep.subr.bf16.mxu0 %v2712_v37 }
 0x164   : > { %2379 = vmatpush3.bf16.msra.mxu0 %v2713_v38 }
 0x165   : > { %2380 = vmatprep.subr.bf16.mxu0 %v2716_v39 }
 0x168   : > { %2381 = vmatpush3.bf16.msra.mxu0 %v2717_v40 }
 0x169   : > { %2382 = vmatprep.subr.bf16.mxu0 %v2720_v41 }
 0x16c   : > { %2383 = vmatpush3.bf16.msra.mxu0 %v2721_v42 }
 0x16d   : > { %2384 = vmatprep.subr.bf16.mxu0 %v2724_v43 }
 0x170   : > { %2385 = vmatpush3.bf16.msra.mxu0 %v2725_v44 }
 0x171   : > { %2386 = vmatprep.subr.bf16.mxu0 %v2728_v45 }
 0x174   : > { %2387 = vmatpush3.bf16.msra.mxu0 %v2729_v46 }
 0x175   : > { %2463 = vmatprep.subr.bf16.mxu0 %v3098_v22 }
 0x177   : > { %1571 = vmatmul.mubr.bf16.vlgmr.msra.gmra.mrb[8].mxu0 %v2732_v48  ;;  %v1325_v48 = vrot.slane %v3503_v57, %v1324_v47 }
 0x178   : > { %2479 = vmatprep.mubr.msk.bf16.mxu0 %vm3099_vm0, %v3098_v22 }
 0x20a   : > { %v2313_v58 = vpop.f32.mrb[0].mxu0 }
 0x20b   : > { %v2314_v60 = vpop.f32.mrb[1].mxu0 }
 0x20c   : > { %v2315_v61 = vadd.f32 %v2314_v60, %v2313_v58  ;;  %v2316_v62 = vpop.f32.mrb[2].mxu0  ;;  %v2335_v63 = vpop.f32.mrb[0].mxu1 }
 0x20d   : > { %v2317_v0 = vpop.f32.mrb[3].mxu0  ;;  %v2336_v3 = vpop.f32.mrb[1].mxu1 }
 0x20e   : > { %v1104_v1 = vadd.f32 %v2315_v61, %v750_v59  ;;  %v2318_v2 = vadd.f32 %v2317_v0, %v2316_v62  ;;  %v2337_v4 = vadd.f32 %v2336_v3, %v2335_v63  ;;  %v2338_v5 = vpop.f32.mrb[2].mxu1 }
 0x20f   : > { %v2339_v7 = vpop.f32.mrb[3].mxu1 }
 0x210   : > { %v1107_v6 = vadd.f32 %v2318_v2, %v750_v59  ;;  %v1145_v8 = vadd.f32 %v2337_v4, %v1104_v1  ;;  %v2340_v9 = vadd.f32 %v2339_v7, %v2338_v5  ;;  %v1220_v1 = vsub.s32 1, %v3497_v55 }
 0x211   : > { %v1226_v4 = vsub.s32 2, %v3497_v55 }
 0x212   : > { %v1148_v10 = vadd.f32 %v2340_v9, %v1107_v6  ;;  %v1221_v3 = vrot.slane %v3503_v57, %v1220_v1  ;;  %v2742_v1 = vld [vmem:[#allocation11 + $0x10] sm:$0xff]  }
 0x213   : > { %v1227_v9 = vrot.slane %v3503_v57, %v1226_v4  ;;  %v2745_v4 = vld [vmem:[#allocation11 + $0x28] sm:$0xff]  }
 0x22a   : > { %v2357_v11 = vpop.f32.mrb[4].mxu0 }
 0x22b   : > { %v2358_v12 = vpop.f32.mrb[5].mxu0 }
 0x22c   : > { %v2359_v13 = vadd.f32 %v2358_v12, %v2357_v11  ;;  %v2360_v14 = vpop.f32.mrb[6].mxu0 }
 0x22d   : > { %v2361_v15 = vpop.f32.mrb[7].mxu0 }
 0x22e   : > { %v3506_v16 = vadd.f32 %v2359_v13, %v1145_v8  ;;  %v2362_v17 = vadd.f32 %v2361_v15, %v2360_v14 }
 0x230   : > { %v3508_v18 = vadd.f32 %v2362_v17, %v1148_v10  ;;  %1192 = vadd.xlane.f32.xlu0 %v3506_v16  ;;  %v1198_v19 = vmul.f32 %v3506_v16, %v3506_v16 }
 0x232   : > { %1200 = vadd.xlane.f32.xlu1 %v1198_v19  ;;  %v1199_v20 = vmul.f32 %v3508_v18, %v3508_v18  ;;  %v2739_v19 = vld [vmem:[%s3469_s25 + $0xc] ss:$16 sps:$4 sm:$0xff]  }
 0x234   : > { %1194 = vadd.xlane.f32.xlu0 %v3508_v18 }
 0x236   : > { %1202 = vadd.xlane.f32.xlu1 %v1199_v20 }
 0x24a   : > { %v2388_v36 = vpop.f32.mrb[8].mxu0 }
 0x24b   : > { %v2389_v37 = vpop.f32.mrb[9].mxu0 }
 0x24c   : > { %v2390_v38 = vadd.f32 %v2389_v37, %v2388_v36  ;;  %v2391_v39 = vpop.f32.mrb[10].mxu0 }
 0x24d   : > { %v2392_v40 = vpop.f32.mrb[11].mxu0 }
 0x24e   : > { %v2393_v41 = vadd.f32 %v2392_v40, %v2391_v39 }
 0x2bd   : > { %v1193_v49 = vpop.xlane.xlu0 %1192 }
 0x2be   : > { %v1196_v50 = vmul.f32 0.03125, %v1193_v49  ;;  %v1573_v49 = vadd.f32 %v2390_v38, %v1325_v48 }
 0x2bf   : > { %v1201_v51 = vpop.xlane.xlu1 %1200 }
 0x2c0   : > { %v1206_v52 = vmul.f32 %v1196_v50, %v1196_v50  ;;  %v1204_v53 = vmul.f32 0.03125, %v1201_v51  ;;  %v1210_v2 = vsub.f32 %v3506_v16, %v1196_v50  ;;  %v2707_v16 = vld [vmem:[#allocation8 + $0x80] sm:$0xff]  }
 0x2c1   : > { %v1195_v54 = vpop.xlane.xlu0 %1194 }
 0x2c2   : > { %v1208_v56 = vsub.f32 %v1204_v53, %v1206_v52  ;;  %v1197_v58 = vmul.f32 0.03125, %v1195_v54 }
 0x2c3   : > { %v1203_v59 = vpop.xlane.xlu1 %1202 }
 0x2c4   : > { %v1212_v60 = vadd.f32 1e-05, %v1208_v56  ;;  %v1207_v61 = vmul.f32 %v1197_v58, %v1197_v58  ;;  %v1205_v62 = vmul.f32 0.03125, %v1203_v59  ;;  %v1211_v7 = vsub.f32 %v3508_v18, %v1197_v58  ;;  %v2714_v18 = vld [vmem:[#allocation8 + $0xd0] sm:$0xff]  }
 0x2c5   : > { %v1576_v56 = vadd.f32 %v2393_v41, %v1325_v48  ;;  %v2748_v48 = vld [vmem:[#allocation13] sm:$0xff]  }
 0x2c6   : > { %2764 = vrsqrt.f32 %v1212_v60  ;;  %v1209_v63 = vsub.f32 %v1205_v62, %v1207_v61 }
 0x2c8   : > { %v1213_v0 = vadd.f32 1e-05, %v1209_v63  ;;  %v2740_v63 = vld [vmem:[#allocation11] sm:$0xff]  }
 0x2c9   : > { %2464 = vmatpush3.bf16.msra.mxu0 %v2740_v63 }
 0x2ca   : > { %2766 = vrsqrt.f32 %v1213_v0  ;;  %2465 = vmatprep.subr.bf16.mxu0 %v3098_v22  ;;  %v2741_v0 = vld [vmem:[#allocation11 + $0x8] sm:$0xff]  }
 0x2cd   : > { %2466 = vmatpush3.bf16.msra.mxu0 %v2741_v0 }
 0x2ce   : > { %2467 = vmatprep.subr.bf16.mxu0 %v3098_v22 }
 0x2d0   : > { %v2765_v5 = vpop.eup %2764 }
 0x2d1   : > { %v1216_v6 = vmul.f32 %v2765_v5, %v1210_v2  ;;  %2468 = vmatpush3.bf16.msra.mxu0 %v2742_v1  ;;  %v2743_v2 = vld [vmem:[#allocation11 + $0x18] sm:$0xff]   ;;  %v2746_v5 = vld [vmem:[#allocation11 + $0x30] sm:$0xff]  }
 0x2d2   : > { %2469 = vmatprep.subr.bf16.mxu0 %v3098_v22 }
 0x2d3   : > { %v1222_v8 = vmul.f32 %v1221_v3, %v1216_v6  ;;  %v2747_v6 = vld [vmem:[#allocation11 + $0x38] sm:$0xff]  }
 0x2d4   : > { %v2767_v10 = vpop.eup %2766 }
 0x2d5   : > { %v1217_v11 = vmul.f32 %v2767_v10, %v1211_v7  ;;  %v1228_v13 = vadd.f32 %v1227_v9, %v1222_v8  ;;  %2470 = vmatpush3.bf16.msra.mxu0 %v2743_v2  ;;  %v2756_v7 = vld [vmem:[#allocation14] sm:$0xff]   ;;  %v2757_v8 = vld [vmem:[#allocation14 + $0x8] sm:$0xff]   ;;  %v2759_v10 = vld [vmem:[#allocation14 + $0x18] sm:$0xff]  }
 0x2d6   : > { %2471 = vmatprep.subr.bf16.mxu0 %v3098_v22 }
 0x2d7   : > { %v1223_v12 = vmul.f32 %v1221_v3, %v1217_v11  ;;  %v1230_v15 = vmax.f32 %v1228_v13, 0.0  ;;  %v2744_v3 = vld [vmem:[#allocation11 + $0x20] sm:$0xff]   ;;  %v2762_v13 = vld [vmem:[#allocation14 + $0x30] sm:$0xff]  }
 0x2d8   : > { %v2760_v11 = vld [vmem:[#allocation14 + $0x20] sm:$0xff]  }
 0x2d9   : > { %v1229_v14 = vadd.f32 %v1227_v9, %v1223_v12  ;;  %2472 = vmatpush3.bf16.msra.mxu0 %v2744_v3  ;;  %v2758_v9 = vld [vmem:[#allocation14 + $0x10] sm:$0xff]   ;;  %v2761_v12 = vld [vmem:[#allocation14 + $0x28] sm:$0xff]  }
 0x2da   : > { %2473 = vmatprep.subr.bf16.mxu0 %v3098_v22 }
 0x2db   : > { %v1231_v17 = vmax.f32 %v1229_v14, 0.0 }
 0x2dd   : > { %v1232_v20 = vpack.c.bf16 %v1231_v17, %v1230_v15  ;;  %2474 = vmatpush3.bf16.msra.mxu0 %v2745_v4 }
 0x2de   : > { %2475 = vmatprep.subr.bf16.mxu0 %v3098_v22 }
 0x2df   : > { %2460 = vmatmul.mubr.bf16.vlgmr.msra.gmra.mrb[4].mxu1 %v1232_v20 }
 0x2e0   : > { %2395 = vmatpush3.bf16.msra.mxu1 %v2707_v16  ;;  %1611 = vmatprep.mubr.bf16.mxu1 %v2739_v19 }
 0x2e1   : > { %2396 = vmatprep.subr.bf16.mxu1 %v2710_v21  ;;  %2476 = vmatpush3.bf16.msra.mxu0 %v2746_v5 }
 0x2e2   : > { %2477 = vmatprep.subr.bf16.mxu0 %v3098_v22 }
 0x2e4   : > { %2397 = vmatpush3.bf16.msra.mxu1 %v2711_v23 }
 0x2e5   : > { %2398 = vmatprep.subr.bf16.mxu1 %v2714_v18  ;;  %2478 = vmatpush3.bf16.msra.mxu0 %v2747_v6 }
 0x2e6   : > { %2503 = vmatprep.subr.bf16.mxu0 %v3098_v22 }
 0x2e8   : > { %2399 = vmatpush3.bf16.msra.mxu1 %v2715_v24 }
 0x2e9   : > { %2400 = vmatprep.subr.bf16.mxu1 %v2718_v25 }
 0x2ec   : > { %2401 = vmatpush3.bf16.msra.mxu1 %v2719_v26 }
 0x2ed   : > { %2402 = vmatprep.subr.bf16.mxu1 %v2722_v27 }
 0x2f0   : > { %2403 = vmatpush3.bf16.msra.mxu1 %v2723_v28 }
 0x2f1   : > { %2404 = vmatprep.subr.bf16.mxu1 %v2726_v29  ;;  %v1648_v29 = vsub.s32 4, %v3497_v55 }
 0x2f4   : > { %2405 = vmatpush3.bf16.msra.mxu1 %v2727_v30  ;;  %v1654_v30 = vsub.s32 5, %v3497_v55 }
 0x2f5   : > { %2406 = vmatprep.subr.bf16.mxu1 %v2730_v31 }
 0x2f6   : > { %v1655_v36 = vrot.slane %v3503_v57, %v1654_v30 }
 0x2f8   : > { %2407 = vmatpush3.bf16.msra.mxu1 %v2731_v32  ;;  %v1649_v32 = vrot.slane %v3503_v57, %v1648_v29 }
 0x2f9   : > { %2408 = vmatprep.subr.bf16.mxu1 %v2735_v33 }
 0x2fc   : > { %2409 = vmatpush3.bf16.msra.mxu1 %v2736_v34 }
 0x2fd   : > { %2483 = vmatprep.subr.bf16.mxu1 %v3098_v22 }
 0x2ff   : > { %1612 = vmatmul.mubr.bf16.vlgmr.msra.gmra.mrb[8].mxu1 %v2737_v35 }
 0x300   : > { %2499 = vmatprep.mubr.msk.bf16.mxu1 %vm3099_vm0, %v3098_v22  ;;  %2484 = vmatpush3.bf16.msra.mxu1 %v2756_v7 }
 0x301   : > { %2485 = vmatprep.subr.bf16.mxu1 %v3098_v22 }
 0x304   : > { %2486 = vmatpush3.bf16.msra.mxu1 %v2757_v8 }
 0x305   : > { %2487 = vmatprep.subr.bf16.mxu1 %v3098_v22 }
 0x308   : > { %2488 = vmatpush3.bf16.msra.mxu1 %v2758_v9 }
 0x309   : > { %2489 = vmatprep.subr.bf16.mxu1 %v3098_v22 }
 0x30c   : > { %2490 = vmatpush3.bf16.msra.mxu1 %v2759_v10 }
 0x30d   : > { %2491 = vmatprep.subr.bf16.mxu1 %v3098_v22 }
 0x310   : > { %2492 = vmatpush3.bf16.msra.mxu1 %v2760_v11 }
 0x311   : > { %2493 = vmatprep.subr.bf16.mxu1 %v3098_v22 }
 0x314   : > { %2494 = vmatpush3.bf16.msra.mxu1 %v2761_v12 }
 0x315   : > { %2495 = vmatprep.subr.bf16.mxu1 %v3098_v22 }
 0x318   : > { %2496 = vmatpush3.bf16.msra.mxu1 %v2762_v13 }
 0x319   : > { %2497 = vmatprep.subr.bf16.mxu1 %v3098_v22 }
 0x3b2   : > { %v3542_v42 = vpop.f32.mrb[4].mxu1 }
 0x3b3   : > { %v2461_v43 = vpop.f32.mrb[5].mxu1 }
 0x3b4   : > { %v3544_v44 = vpop.f32.mrb[6].mxu1 }
 0x3b5   : > { %v1750_v45 = vpack.c.bf16 %v3544_v44, %v3542_v42  ;;  %v2462_v46 = vpop.f32.mrb[7].mxu1 }
 0x3d2   : > { %v2410_v50 = vpop.f32.mrb[8].mxu1 }
 0x3d3   : > { %v2411_v51 = vpop.f32.mrb[9].mxu1 }
 0x3d4   : > { %v2412_v52 = vadd.f32 %v2411_v51, %v2410_v50  ;;  %v2413_v53 = vpop.f32.mrb[10].mxu1  ;;  %v2749_v50 = vld [vmem:[#allocation13 + $0x8] sm:$0xff]   ;;  %v2750_v51 = vld [vmem:[#allocation13 + $0x10] sm:$0xff]  }
 0x3d5   : > { %v2414_v54 = vpop.f32.mrb[11].mxu1 }
 0x3d6   : > { %v3550_v58 = vadd.f32 %v2412_v52, %v1573_v49  ;;  %v2415_v59 = vadd.f32 %v2414_v54, %v2413_v53  ;;  %v2751_v52 = vld [vmem:[#allocation13 + $0x18] sm:$0xff]   ;;  %v2752_v53 = vld [vmem:[#allocation13 + $0x20] sm:$0xff]   ;;  %v2753_v54 = vld [vmem:[#allocation13 + $0x28] sm:$0xff]  }
 0x3d8   : > { %v3552_v60 = vadd.f32 %v2415_v59, %v1576_v56  ;;  %1620 = vadd.xlane.f32.xlu0 %v3550_v58  ;;  %v1626_v61 = vmul.f32 %v3550_v58, %v3550_v58  ;;  %v2754_v56 = vld [vmem:[#allocation13 + $0x30] sm:$0xff]   ;;  %v2763_v59 = vld [vmem:[#allocation14 + $0x38] sm:$0xff]  }
 0x3d9   : > { %2498 = vmatpush3.bf16.msra.mxu1 %v2763_v59 }
 0x3da   : > { %1622 = vadd.xlane.f32.xlu1 %v3552_v60  ;;  %v1627_v62 = vmul.f32 %v3552_v60, %v3552_v60 }
 0x3dc   : > { %1628 = vadd.xlane.f32.xlu0 %v1626_v61 }
 0x3de   : > { %1630 = vadd.xlane.f32.xlu1 %v1627_v62 }
 0x465   : > { %v1621_v14 = vpop.xlane.xlu0 %1620 }
 0x466   : > { %v1624_v15 = vmul.f32 0.03125, %v1621_v14 }
 0x467   : > { %v1623_v17 = vpop.xlane.xlu1 %1622 }
 0x468   : > { %v1625_v16 = vmul.f32 0.03125, %v1623_v17  ;;  %v1634_v20 = vmul.f32 %v1624_v15, %v1624_v15  ;;  %v1638_v31 = vsub.f32 %v3550_v58, %v1624_v15  ;;  %v2755_v58 = vld [vmem:[#allocation13 + $0x38] sm:$0xff]  }
 0x469   : > { %v1629_v19 = vpop.xlane.xlu0 %1628 }
 0x46a   : > { %v1632_v21 = vmul.f32 0.03125, %v1629_v19  ;;  %v1635_v18 = vmul.f32 %v1625_v16, %v1625_v16  ;;  %v1639_v34 = vsub.f32 %v3552_v60, %v1625_v16 }
 0x46b   : > { %v1631_v23 = vpop.xlane.xlu1 %1630 }
 0x46c   : > { %v1636_v24 = vsub.f32 %v1632_v21, %v1634_v20  ;;  %v1633_v25 = vmul.f32 0.03125, %v1631_v23 }
 0x46e   : > { %v1640_v26 = vadd.f32 1e-05, %v1636_v24  ;;  %v1637_v27 = vsub.f32 %v1633_v25, %v1635_v18 }
 0x470   : > { %2768 = vrsqrt.f32 %v1640_v26  ;;  %v1641_v28 = vadd.f32 1e-05, %v1637_v27 }
 0x472   : > { %2770 = vrsqrt.f32 %v1641_v28 }
 0x47a   : > { %v2769_v33 = vpop.eup %2768 }
 0x47b   : > { %v1644_v35 = vmul.f32 %v2769_v33, %v1638_v31 }
 0x47c   : > { %v2771_v37 = vpop.eup %2770 }
 0x47d   : > { %v1645_v38 = vmul.f32 %v2771_v37, %v1639_v34  ;;  %v1650_v39 = vmul.f32 %v1649_v32, %v1644_v35 }
 0x47f   : > { %v1651_v40 = vmul.f32 %v1649_v32, %v1645_v38  ;;  %v1656_v41 = vadd.f32 %v1655_v36, %v1650_v39 }
 0x481   : > { %v1657_v43 = vadd.f32 %v1655_v36, %v1651_v40  ;;  %v1658_v46 = vmax.f32 %v1656_v41, 0.0 }
 0x483   : > { %v1659_v47 = vmax.f32 %v1657_v43, 0.0 }
 0x485   : > { %v1660_v49 = vpack.c.bf16 %v1659_v47, %v1658_v46 }
 0x487   : > { %2480 = vmatmul.mubr.bf16.vlgmr.msra.gmra.mrb[12].mxu0 %v1660_v49 }
 0x488   : > { %2504 = vmatpush3.bf16.msra.mxu0 %v2748_v48  ;;  %2519 = vmatprep.mubr.msk.bf16.mxu0 %vm3099_vm0, %v3098_v22 }
 0x489   : > { %2505 = vmatprep.subr.bf16.mxu0 %v3098_v22 }
 0x48c   : > { %2506 = vmatpush3.bf16.msra.mxu0 %v2749_v50 }
 0x48d   : > { %2507 = vmatprep.subr.bf16.mxu0 %v3098_v22 }
 0x490   : > { %2508 = vmatpush3.bf16.msra.mxu0 %v2750_v51 }
 0x491   : > { %2509 = vmatprep.subr.bf16.mxu0 %v3098_v22 }
 0x494   : > { %2510 = vmatpush3.bf16.msra.mxu0 %v2751_v52 }
 0x495   : > { %2511 = vmatprep.subr.bf16.mxu0 %v3098_v22 }
 0x498   : > { %2512 = vmatpush3.bf16.msra.mxu0 %v2752_v53 }
 0x499   : > { %2513 = vmatprep.subr.bf16.mxu0 %v3098_v22 }
 0x49c   : > { %2514 = vmatpush3.bf16.msra.mxu0 %v2753_v54 }
 0x49d   : > { %2515 = vmatprep.subr.bf16.mxu0 %v3098_v22 }
 0x4a0   : > { %2516 = vmatpush3.bf16.msra.mxu0 %v2754_v56 }
 0x4a1   : > { %2517 = vmatprep.subr.bf16.mxu0 %v3098_v22  ;;  %v1932_v22 = vsub.s32 6, %v3497_v55 }
 0x4a3   : > { %v1933_v42 = vrot.slane %v3503_v57, %v1932_v22 }
 0x4a4   : > { %2518 = vmatpush3.bf16.msra.mxu0 %v2755_v58 }
 0x4a7   : > { %2520 = vmatmul.mubr.bf16.vlgmr.msra.gmra.mrb[16].mxu0 %v1750_v45 }
 0x55a   : > { %v1743_v60 = vpop.f32.mrb[12].mxu0 }
 0x55b   : > { %v2481_v61 = vpop.f32.mrb[13].mxu0 }
 0x55c   : > { %v1746_v62 = vpop.f32.mrb[14].mxu0 }
 0x55d   : > { %v1751_v63 = vpack.c.bf16 %v1746_v62, %v1743_v60  ;;  %v2482_v0 = vpop.f32.mrb[15].mxu0 }
 0x55f   : > { %2500 = vmatmul.mubr.bf16.vlgmr.msra.gmra.mrb[12].mxu1 %v1751_v63 }
 0x57a   : > { %v1923_v1 = vpop.f32.mrb[16].mxu0 }
 0x57b   : > { %v2521_v2 = vpop.f32.mrb[17].mxu0 }
 0x57c   : > { %v1926_v3 = vpop.f32.mrb[18].mxu0 }
 0x57d   : > { %v2522_v4 = vpop.f32.mrb[19].mxu0 }
 0x632   : > { %v1834_v5 = vpop.f32.mrb[12].mxu1 }
 0x633   : > { %v1924_v6 = vadd.f32 %v1923_v1, %v1834_v5  ;;  %v2501_v44 = vpop.f32.mrb[13].mxu1 }
 0x634   : > { %v1837_v45 = vpop.f32.mrb[14].mxu1 }
 0x635   : > { %v1927_v7 = vadd.f32 %v1926_v3, %v1837_v45  ;;  %v2502_v8 = vpop.f32.mrb[15].mxu1  ;;  %v1934_v9 = vadd.f32 %v1933_v42, %v1924_v6  ;;  %1953 = sbr.rel (!%p3706_p0) target bundleno = 1625 (0x659), region = 92 }
 0x637   : > { %v1935_v10 = vadd.f32 %v1933_v42, %v1927_v7 }
 0x639   : > { %v2295_v11 = vpack.c.bf16 %v1935_v10, %v1934_v9 }
 0x63b   : > { %2296 = vst [vmem:[%s493_s29] sm:$0xff] %v2295_v11  }
 0x63c   : > { %s3721_s16 = smov (!%p1956_p7, %s1955_s16), 2 }
 0x63d   : > { %s3600_s28 = sshll.u32 %s3721_s16, 6 }
 0x63e   : > { %s1960_s26 = ssub.s32 128, %s3600_s28 }
 0x63f   : > { %1961 = vsyncadd %s1947_s9, %s1960_s26  ;;  %p2280_p8 = scmp.ne.s32.totalorder %s3600_s28, 0  ;;  %s2291_s19 = sshll.u32 %s3174_s13, 7 }
 0x640   : > { %s3707_s18 = sld [smem:[#allocation31_spill]]  ;;  %s1966_s24 = sshll.u32 %s493_s29, 4  ;;  %s3612_s24 = int_to_ptr.vmem [resolvable:$true] %s1966_s24 }
 0x641   : > { %s2996_s3 = scalar_lea.vmem %s3612_s24, %s3600_s28  ;;  %s3100_s25 = smov [#allocation16]  }
 0x642   : > { %p2997_p10 = scmp.ne.s32.totalorder %s3612_s24, %s2996_s3  ;;  %s3000_s20 = sshll.u32 %s3100_s25, 4  ;;  %s3001_s20 = int_to_ptr.vmem [resolvable:$false] %s3000_s20 }
 0x643   : > { %s3002_s13 = scalar_lea.vmem %s3001_s20, 256  ;;  %p3003_p2 = scmp.lt.s32.totalorder %s3612_s24, %s3001_s20 }
 0x644   : > { %p2998_p9 = pnand %p2997_p10, %p2280_p8  ;;  %p3004_p4 = scmp.lt.s32.totalorder %s3002_s13, %s2996_s3 }
 0x646   : > { %s3610_s23 = scalar_lea.hbm %s3707_s18, %s2291_s19  ;;  %p2999_p1 = pneg %p2998_p9 }
 0x647   : > { %p3005_p3 = por %p3004_p4, %p3003_p2 }
 0x649   : > { %p3006_p5 = pnand %p3005_p3, %p2999_p1 }
 0x64b   : > { %3009 = shalt.err (!%p3006_p5)
}
 0x64c   : > { %s3010_s30 = scalar_lea.hbm %s3610_s23, %s3600_s28  ;;  %s3014_s29 = scalar_lea.hbm %s3707_s18, 320 }
 0x64d   : > { %p3011_p6 = scmp.ne.s32.totalorder %s3610_s23, %s3010_s30  ;;  %p3015_p12 = scmp.lt.u32.totalorder %s3610_s23, %s3707_s18 }
 0x64e   : > { %p3016_p0 = scmp.lt.u32.totalorder %s3014_s29, %s3010_s30  ;;  %p3018_p10 = scmp.lt.u32.totalorder %s3010_s30, %s3610_s23 }
 0x64f   : > { %p3012_p11 = pnand %p3011_p6, %p2280_p8 }
 0x650   : > { %p3017_p7 = por %p3016_p0, %p3015_p12 }
 0x651   : > { %p3013_p13 = pneg %p3012_p11 }
 0x652   : > { %p3019_p9 = por %p3018_p10, %p3017_p7 }
 0x654   : > { %p3020_p1 = pnand %p3019_p9, %p3013_p13 }
 0x656   : > { %3023 = shalt.err (!%p3020_p1)
}
 0x657   : > { %s3101_s16 = smov 64   ;;  %s3102_s26 = smov 4  }
 0x658   : > { %1972 = dma.vmem_to_hbm [thread:$0]  (%p2280_p8), %s3612_s24, %s3600_s28, %s3610_s23, %s1947_s9, %s3101_s16, %s3101_s16, %s3102_s26  }
 0x659 PF: > { %s3708_s19 = sld [smem:[#allocation24_spill]]  ;;  %s3709_s21 = sld [smem:[#allocation28_spill]] }
 0x65a   : > { %p2588_p2 = scmp.ge.s32.totalorder %s3082_s12, 2 }
 0x65f   : > { %s1981_s15 = sand.u32 1, %s3708_s19   ;;  %p3710_p4 = scmp.ne.s32.totalorder %s3709_s21, 0 }
 0x660   : > { %s1982_s3 = scalar_lea.sflag [#allocation4], %s1981_s15 }
 0x661   : > { %p2573_p3 = pnand %p2588_p2, %p3710_p4 }
 0x663   : > { %3065 = dma.done.wait (!%p2573_p3), %s1982_s3, 128  }
 0x664   : > { %3067 = vsyncadd (!%p2573_p3), %s1982_s3, 4294967168  ;;  %s3711_s12 = sld [smem:[#allocation25_spill]]  ;;  %s3712_s25 = sld [smem:[#allocation26_spill]] }
 0x665   : > { %s3713_s30 = smov %s3074_s10  ;;  %s3714_s10 = smov %s3078_s11 }
 0x66a   : > { %p28_p5 = scmp.ge.s32.totalorder %s3711_s12, 5   ;;  %s3715_s11 = smov %s3712_s25 }
 0x66c   :  { %30 = sbr.rel (!%p28_p5) target bundleno = 14 (0xe), region = 138 }
 0x673   :  { %1987 = vsyncpa [#allocation3], 1 }
 0x674   :  { %1989 = vsyncpa [#allocation3 + $0x1], 1 }
 0x675   :  { %1990 = vsyncpa [#allocation6], 1 }
 0x676   :  { %1992 = vsyncpa [#allocation6 + $0x1], 1 }
 0x677   :  { %1993 = vsyncpa [#allocation9], 1 }
 0x678   :  { %1994 = vsyncpa [#allocation12], 1 }
 0x679   :  { %1995 = vsyncpa [#allocation15], 1 }
 0x67a   :  { %1996 = vsyncpa [#allocation4], 1 }
 0x67b   :  { %1998 = vsyncpa [#allocation4 + $0x1], 1 }

// kernel: tpu_custom_call.1
= control target key start
LH: loop header
LB: loop body
LE: loop exit
PB: predicated region body
PF: predicated region fallthrough
CT: control target
= control target key end

     0   :  { %s3657_s0 = inlined_call_operand.hbm [shape: bf16[40,768], index: 0, kind: input, shape index: {}]   ;;  %s3658_s1 = inlined_call_operand.hbm [shape: bf16[40,512], index: 1, kind: input, shape index: {}]   ;;  %s3659_s2 = inlined_call_operand.hbm [shape: bf16[768,128], index: 2, kind: input, shape index: {}]   ;;  %s3660_s3 = inlined_call_operand.hbm [shape: bf16[512,128], index: 3, kind: input, shape index: {}]   ;;  %s3661_s4 = inlined_call_operand.hbm [shape: bf16[128,128], index: 4, kind: input, shape index: {}]   ;;  %s3662_s5 = inlined_call_operand.hbm [shape: bf16[128,128], index: 5, kind: input, shape index: {}]   ;;  %s3663_s6 = inlined_call_operand.hbm [shape: bf16[128,128], index: 6, kind: input, shape index: {}]   ;;  %s3664_s7 = inlined_call_operand.hbm [shape: bf16[128,128], index: 7, kind: input, shape index: {}]   ;;  %s3665_s8 = inlined_call_operand.vmem [shape: f32[8,128], index: 8, kind: input, shape index: {}]   ;;  %s3666_s9 = inlined_call_operand.hbm [shape: bf16[40,128], index: 9, kind: output, shape index: {}]  }
   0x1   :  { %3676 = sst [smem:[#allocation29_spill]] %s3660_s3 }
   0x2   :  { %3677 = sst [smem:[#allocation30_spill]] %s3665_s8 }
   0x3   :  { %3678 = sst [smem:[#allocation31_spill]] %s3666_s9 }
   0x4   :  { %14 = vsyncpa [#allocation3], 0 }
   0x5   :  { %16 = vsyncpa [#allocation3 + $0x1], 0 }
   0x6   :  { %17 = vsyncpa [#allocation6], 0 }
   0x7   :  { %19 = vsyncpa [#allocation6 + $0x1], 0 }
   0x8   :  { %20 = vsyncpa [#allocation9], 0 }
   0x9   :  { %21 = vsyncpa [#allocation12], 0 }
   0xa   :  { %22 = vsyncpa [#allocation15], 0 }
   0xb   :  { %23 = vsyncpa [#allocation4], 0 }
   0xc   :  { %25 = vsyncpa [#allocation4 + $0x1], 0  ;;  %s3153_s30 = smov 0   ;;  %s3155_s10 = smov 0  }
   0xd   :  { %s3157_s11 = smov 0   ;;  %s3159_s12 = smov 0  }
   0xe LB: > { %3679 = sst [smem:[#allocation24_spill]] %s3070_s30  ;;  %s3174_s13 = sadd.s32 4294967295, %s3082_s12   ;;  %s3082_s12 = sphi %s3159_s12, %s3711_s12   ;;  %s3078_s11 = sphi %s3157_s11, %s3715_s11   ;;  %s3074_s10 = sphi %s3155_s10, %s3714_s10   ;;  %s3070_s30 = sphi %s3153_s30, %s3713_s30  }
   0xf   : > { %s2119_s14 = sadd.s32 4294967294, %s3082_s12   ;;  %s3178_s15 = sadd.s32 1, %s3082_s12  }
  0x10   : > { %3680 = sst [smem:[#allocation25_spill]] %s3178_s15  ;;  %s38_s16 = sadd.s32 1, %s3078_s11 }
  0x11   : > { %s35_s17 = ssub.s32 %s3082_s12, %s3178_s15  ;;  %p45_p0 = scmp.ne.s32.totalorder %s3078_s11, %s3074_s10 }
  0x12   : > { %p36_p1 = scmp.eq.s32.totalorder %s35_s17, 0  ;;  %p46_p2 = scmp.eq.s32.totalorder %s3082_s12, 0 }
  0x13   : > { %p51_p3 = scmp.ne.s32.totalorder %s3074_s10, %s3070_s30  ;;  %p3669_p4 = scmp.eq.s32.totalorder %s3174_s13, 0 }
  0x14   : > { %s3190_s18 = scalar_select %p36_p1, %s3078_s11, %s38_s16  }
  0x15   : > { %p3192_p5 = por %p46_p2, %p45_p0  ;;  %p3198_p6 = por %p3669_p4, %p51_p3 }
  0x16   : > { %3681 = sst [smem:[#allocation26_spill]] %s3190_s18  ;;  %p248_p7 = scmp.eq.s32.totalorder %s3174_s13, 2 }
  0x17   : > { %s3682_s19 = scalar_select %p3192_p5, 1, 0 }
  0x18   : > { %s3683_s20 = scalar_select %p3198_p6, 1, 0 }
  0x19   : > { %p254_p8 = scmp.eq.s32.totalorder %s2119_s14, 2  ;;  %p2120_p9 = scmp.ge.s32.totalorder %s3082_s12, 1 }
  0x1a   : > { %p261_p10 = scmp.lt.s32.totalorder %s3082_s12, 4  ;;  %p3205_p11 = por %p248_p7, %p45_p0 }
  0x1b   : > { %p3209_p12 = por %p254_p8, %p51_p3  ;;  %s3084_s24 = smov [#allocation8]  }
  0x1c   : > { %s3684_s21 = scalar_select %p3205_p11, 1, 0 }
  0x1d   : > { %s3686_s22 = scalar_select %p3209_p12, 1, 0 }
  0x1e   : > { %3685 = sst [smem:[#allocation27_spill]] %s3684_s21  ;;  %p3213_p13 = pnand %p2120_p9, %p261_p10 }
  0x1f   : > { %3687 = sst [smem:[#allocation28_spill]] %s3686_s22  ;;  %s286_s25 = sshll.u32 %s3084_s24, 4  ;;  %s287_s25 = int_to_ptr.vmem [resolvable:$true] %s286_s25 }
  0x20   : > { %s3688_s23 = scalar_select %p3213_p13, 1, 0 }
  0x21   : > { %p2553_p1 = pneg %p3213_p13  ;;  %s3085_s27 = smov [#allocation11]  }
  0x22   : > { %s312_s28 = sshll.u32 %s3085_s27, 4  ;;  %s3690_s3 = sld [smem:[#allocation29_spill]]  ;;  %s3225_s28 = int_to_ptr.vmem [resolvable:$true] %s312_s28 }
  0x23   : > { %p3221_p2 = pnand %p2553_p1, %p3669_p4 }
  0x25   : > { %p3235_p3 = pneg %p3221_p2 }
  0x28   : > { %s2772_s16 = scalar_lea.hbm %s3690_s3, 4096 }
  0x29   : > { %p2773_p0 = scmp.ne.s32.totalorder %s3690_s3, %s2772_s16  ;;  %p2779_p9 = scmp.lt.u32.totalorder %s2772_s16, %s3690_s3 }
  0x2b   : > { %p2775_p7 = pnand %p3235_p3, %p2773_p0 }
  0x2d   : > { %p2776_p8 = pneg %p2775_p7 }
  0x2f   : > { %p2781_p10 = pnand %p2779_p9, %p2776_p8 }
  0x31   : > { %2784 = shalt.err (!%p2781_p10)
}
  0x32   : > { %s2785_s29 = scalar_lea.vmem %s287_s25, 4096  ;;  %p2793_p11 = scmp.lt.s32.totalorder %s287_s25, %s287_s25 }
  0x33   : > { %p2786_p1 = scmp.ne.s32.totalorder %s287_s25, %s2785_s29  ;;  %p2794_p6 = scmp.lt.s32.totalorder %s2785_s29, %s2785_s29 }
  0x35   : > { %p2788_p4 = pnand %p2786_p1, %p3235_p3  ;;  %p2795_p13 = por %p2794_p6, %p2793_p11 }
  0x37   : > { %p2789_p12 = pneg %p2788_p4 }
  0x39   : > { %p2796_p5 = pnand %p2795_p13, %p2789_p12 }
  0x3b   : > { %2799 = shalt.err (!%p2796_p5)
}
  0x3c   : > { %s3086_s18 = smov 64   ;;  %s3087_s14 = smov 4  }
  0x3d   : > { %2559 = dma.hbm_to_vmem [thread:$0]  (!%p3221_p2), %s3690_s3, 4096, %s287_s25, [#allocation9], %s3086_s18, %s3086_s18, %s3087_s14  }
  0x3e   : > { %s2800_s22 = scalar_lea.hbm %s3662_s5, 1024 }
  0x3f   : > { %p2801_p4 = scmp.ne.s32.totalorder %s3662_s5, %s2800_s22  ;;  %p2807_p11 = scmp.lt.u32.totalorder %s2800_s22, %s3662_s5 }
  0x41   : > { %p2803_p5 = pnand %p2801_p4, %p3235_p3 }
  0x43   : > { %p2804_p6 = pneg %p2803_p5 }
  0x45   : > { %p2809_p12 = pnand %p2807_p11, %p2804_p6 }
  0x47   : > { %2812 = shalt.err (!%p2809_p12)
}
  0x48   : > { %s2813_s25 = scalar_lea.vmem %s3225_s28, 1024  ;;  %p2821_p8 = scmp.lt.s32.totalorder %s3225_s28, %s3225_s28 }
  0x49   : > { %p2814_p13 = scmp.ne.s32.totalorder %s3225_s28, %s2813_s25  ;;  %p2822_p9 = scmp.lt.s32.totalorder %s2813_s25, %s2813_s25 }
  0x4b   : > { %p2816_p0 = pnand %p2814_p13, %p3235_p3  ;;  %p2823_p10 = por %p2822_p9, %p2821_p8 }
  0x4d   : > { %p2817_p7 = pneg %p2816_p0 }
  0x4f   : > { %p2824_p1 = pnand %p2823_p10, %p2817_p7 }
  0x51   : > { %2827 = shalt.err (!%p2824_p1)
}
  0x52   : > { %2565 = dma.hbm_to_vmem [thread:$0]  (!%p3221_p2), %s3662_s5, 1024, %s3225_s28, [#allocation12], %s3086_s18, %s3086_s18, %s3087_s14  }
  0x53   : > { %s3088_s21 = smov [#allocation7]   ;;  %s3089_s15 = smov [#allocation10]  }
  0x54   : > { %s273_s22 = sshll.u32 %s3088_s21, 4  ;;  %s299_s16 = sshll.u32 %s3089_s15, 4  ;;  %s274_s22 = int_to_ptr.vmem [resolvable:$true] %s273_s22  ;;  %s300_s16 = int_to_ptr.vmem [resolvable:$true] %s299_s16 }
  0x55   : > { %s2828_s29 = scalar_lea.hbm %s3659_s2, 6144 }
  0x56   : > { %p2829_p4 = scmp.ne.s32.totalorder %s3659_s2, %s2828_s29  ;;  %p2835_p11 = scmp.lt.u32.totalorder %s2828_s29, %s3659_s2 }
  0x58   : > { %p2831_p5 = pnand %p2829_p4, %p3235_p3 }
  0x5a   : > { %p2832_p6 = pneg %p2831_p5 }
  0x5c   : > { %p2837_p12 = pnand %p2835_p11, %p2832_p6 }
  0x5e   : > { %2840 = shalt.err (!%p2837_p12)
}
  0x5f   : > { %s2841_s28 = scalar_lea.vmem %s274_s22, 6144  ;;  %p2849_p8 = scmp.lt.s32.totalorder %s274_s22, %s274_s22 }
  0x60   : > { %p2842_p13 = scmp.ne.s32.totalorder %s274_s22, %s2841_s28  ;;  %p2850_p9 = scmp.lt.s32.totalorder %s2841_s28, %s2841_s28 }
  0x62   : > { %p2844_p0 = pnand %p2842_p13, %p3235_p3  ;;  %p2851_p10 = por %p2850_p9, %p2849_p8 }
  0x64   : > { %p2845_p7 = pneg %p2844_p0 }
  0x66   : > { %p2852_p1 = pnand %p2851_p10, %p2845_p7 }
  0x68   : > { %2855 = shalt.err (!%p2852_p1)
}
  0x69   : > { %2556 = dma.hbm_to_vmem [thread:$0]  (!%p3221_p2), %s3659_s2, 6144, %s274_s22, [#allocation6], %s3086_s18, %s3086_s18, %s3087_s14  }
  0x6a   : > { %s2856_s15 = scalar_lea.hbm %s3661_s4, 1024 }
  0x6b   : > { %p2857_p4 = scmp.ne.s32.totalorder %s3661_s4, %s2856_s15  ;;  %p2863_p11 = scmp.lt.u32.totalorder %s2856_s15, %s3661_s4 }
  0x6d   : > { %p2859_p5 = pnand %p2857_p4, %p3235_p3 }
  0x6f   : > { %p2860_p6 = pneg %p2859_p5 }
  0x71   : > { %p2865_p12 = pnand %p2863_p11, %p2860_p6 }
  0x73   : > { %2868 = shalt.err (!%p2865_p12)
}
  0x74   : > { %s2869_s9 = scalar_lea.vmem %s300_s16, 1024  ;;  %p2877_p8 = scmp.lt.s32.totalorder %s300_s16, %s300_s16 }
  0x75   : > { %p2870_p13 = scmp.ne.s32.totalorder %s300_s16, %s2869_s9  ;;  %p2878_p9 = scmp.lt.s32.totalorder %s2869_s9, %s2869_s9 }
  0x77   : > { %p2872_p0 = pnand %p2870_p13, %p3235_p3  ;;  %p2879_p10 = por %p2878_p9, %p2877_p8 }
  0x79   : > { %p2873_p7 = pneg %p2872_p0 }
  0x7b   : > { %p2880_p1 = pnand %p2879_p10, %p2873_p7 }
  0x7d   : > { %2883 = shalt.err (!%p2880_p1)
}
  0x7e   : > { %2562 = dma.hbm_to_vmem [thread:$0]  (!%p3221_p2), %s3661_s4, 1024, %s300_s16, [#allocation9], %s3086_s18, %s3086_s18, %s3087_s14  }
  0x7f   : > { %s3090_s3 = smov [#allocation13]   ;;  %s3091_s30 = smov [#allocation14]  }
  0x80   : > { %s325_s8 = sshll.u32 %s3090_s3, 4  ;;  %s338_s21 = sshll.u32 %s3091_s30, 4  ;;  %s326_s8 = int_to_ptr.vmem [resolvable:$true] %s325_s8  ;;  %s339_s21 = int_to_ptr.vmem [resolvable:$true] %s338_s21 }
  0x81   : > { %s2884_s27 = scalar_lea.hbm %s3663_s6, 1024 }
  0x82   : > { %p2885_p4 = scmp.ne.s32.totalorder %s3663_s6, %s2884_s27  ;;  %p2891_p11 = scmp.lt.u32.totalorder %s2884_s27, %s3663_s6 }
  0x84   : > { %p2887_p5 = pnand %p2885_p4, %p3235_p3 }
  0x86   : > { %p2888_p6 = pneg %p2887_p5 }
  0x88   : > { %p2893_p12 = pnand %p2891_p11, %p2888_p6 }
  0x8a   : > { %2896 = shalt.err (!%p2893_p12)
}
  0x8b   : > { %s2897_s16 = scalar_lea.vmem %s326_s8, 1024  ;;  %p2905_p8 = scmp.lt.s32.totalorder %s326_s8, %s326_s8 }
  0x8c   : > { %p2898_p13 = scmp.ne.s32.totalorder %s326_s8, %s2897_s16  ;;  %p2906_p9 = scmp.lt.s32.totalorder %s2897_s16, %s2897_s16 }
  0x8e   : > { %p2900_p0 = pnand %p2898_p13, %p3235_p3  ;;  %p2907_p10 = por %p2906_p9, %p2905_p8 }
  0x90   : > { %p2901_p7 = pneg %p2900_p0 }
  0x92   : > { %p2908_p1 = pnand %p2907_p10, %p2901_p7 }
  0x94   : > { %2911 = shalt.err (!%p2908_p1)
}
  0x95   : > { %2568 = dma.hbm_to_vmem [thread:$0]  (!%p3221_p2), %s3663_s6, 1024, %s326_s8, [#allocation12], %s3086_s18, %s3086_s18, %s3087_s14  }
  0x96   : > { %s2912_s17 = scalar_lea.hbm %s3664_s7, 1024 }
  0x97   : > { %p2913_p4 = scmp.ne.s32.totalorder %s3664_s7, %s2912_s17  ;;  %p2919_p11 = scmp.lt.u32.totalorder %s2912_s17, %s3664_s7 }
  0x99   : > { %p2915_p5 = pnand %p2913_p4, %p3235_p3 }
  0x9b   : > { %p2916_p6 = pneg %p2915_p5 }
  0x9d   : > { %p2921_p12 = pnand %p2919_p11, %p2916_p6 }
  0x9f   : > { %2924 = shalt.err (!%p2921_p12)
}
  0xa0   : > { %s2925_s22 = scalar_lea.vmem %s339_s21, 1024  ;;  %p2933_p8 = scmp.lt.s32.totalorder %s339_s21, %s339_s21 }
  0xa1   : > { %p2926_p13 = scmp.ne.s32.totalorder %s339_s21, %s2925_s22  ;;  %p2934_p9 = scmp.lt.s32.totalorder %s2925_s22, %s2925_s22 }
  0xa3   : > { %p2928_p0 = pnand %p2926_p13, %p3235_p3  ;;  %p2935_p10 = por %p2934_p9, %p2933_p8 }
  0xa5   : > { %p2929_p7 = pneg %p2928_p0 }
  0xa7   : > { %p2936_p1 = pnand %p2935_p10, %p2929_p7 }
  0xa9   : > { %2939 = shalt.err (!%p2936_p1)
}
  0xaa   : > { %2571 = dma.hbm_to_vmem [thread:$0]  (!%p3221_p2), %s3664_s7, 1024, %s339_s21, [#allocation15], %s3086_s18, %s3086_s18, %s3087_s14  }
  0xab   : > { %p2127_p4 = scmp.ge.s32.totalorder %s3082_s12, 3 }
  0xac   : > { %p3692_p3 = scmp.ne.s32.totalorder (!%p2127_p4), %s3682_s19, 0 }
  0xad   : > { %351 = sbr.rel (%p2127_p4) target bundleno = 253 (0xfd), region = 44 }
  0xb4   : > { %354 = sbr.rel (!%p3692_p3) target bundleno = 216 (0xd8), region = 48  ;;  %s355_s24 = sand.u32 (%p3692_p3), 1, %s3078_s11  }
  0xb5   : > { %s2128_s28 = sshll.u32 (%p3692_p3), %s3082_s12, 1  ;;  %s2523_s3 = smul.u32 (%p3692_p3), 48, %s355_s24 }
  0xb6   : > { %s361_s30 = ssub.s32 (%p3692_p3), 5, %s2128_s28  ;;  %s3372_s17 = scalar_lea.sflag (%p3692_p3), [#allocation3], %s355_s24 }
  0xb7   : > { %p362_p5 = scmp.lt.s32.totalorder (%p3692_p3), %s361_s30, 2  ;;  %s359_s18 = scalar_lea.vmem (%p3692_p3), [#allocation2], %s2523_s3 }
  0xbb   : > { %s3717_s30 = smov (!%p362_p5, %s361_s30), 2 }
  0xbc   : > { %s3369_s26 = smul.u32 384, %s3717_s30 }
  0xbe   : > { %s367_s15 = ssub.s32 768, %s3369_s26 }
  0xbf   : > { %368 = vsyncadd %s3372_s17, %s367_s15  ;;  %p2131_p2 = scmp.ne.s32.totalorder %s3369_s26, 0  ;;  %s2524_s14 = smul.u32 768, %s3082_s12 }
  0xc0   : > { %s374_s21 = sshll.u32 %s359_s18, 4  ;;  %s2944_s16 = scalar_lea.hbm %s3657_s0, 1920  ;;  %s3382_s21 = int_to_ptr.vmem [resolvable:$true] %s374_s21 }
  0xc1   : > { %s3380_s25 = scalar_lea.hbm %s3657_s0, %s2524_s14 }
  0xc2   : > { %s2940_s9 = scalar_lea.hbm %s3380_s25, %s3369_s26  ;;  %p2945_p13 = scmp.lt.u32.totalorder %s3380_s25, %s3657_s0 }
  0xc3   : > { %p2941_p6 = scmp.ne.s32.totalorder %s3380_s25, %s2940_s9  ;;  %p2946_p0 = scmp.lt.u32.totalorder %s2944_s16, %s2940_s9 }
  0xc4   : > { %p2948_p8 = scmp.lt.u32.totalorder %s2940_s9, %s3380_s25 }
  0xc5   : > { %p2942_p11 = pnand %p2941_p6, %p2131_p2  ;;  %p2947_p7 = por %p2946_p0, %p2945_p13 }
  0xc7   : > { %p2943_p12 = pneg %p2942_p11  ;;  %p2949_p9 = por %p2948_p8, %p2947_p7 }
  0xc9   : > { %p2950_p10 = pnand %p2949_p9, %p2943_p12 }
  0xcb   : > { %2953 = shalt.err (!%p2950_p10)
}
  0xcc   : > { %s2954_s3 = scalar_lea.vmem %s3382_s21, %s3369_s26  ;;  %s3092_s30 = smov [#allocation2]  }
  0xcd   : > { %p2955_p1 = scmp.ne.s32.totalorder %s3382_s21, %s2954_s3  ;;  %s2958_s15 = sshll.u32 %s3092_s30, 4  ;;  %s2959_s15 = int_to_ptr.vmem [resolvable:$false] %s2958_s15 }
  0xce   : > { %s2960_s18 = scalar_lea.vmem %s2959_s15, 1536  ;;  %p2961_p5 = scmp.lt.s32.totalorder %s3382_s21, %s2959_s15 }
  0xcf   : > { %p2956_p4 = pnand %p2955_p1, %p2131_p2  ;;  %p2962_p6 = scmp.lt.s32.totalorder %s2960_s18, %s2954_s3 }
  0xd1   : > { %p2957_p3 = pneg %p2956_p4  ;;  %p2963_p11 = por %p2962_p6, %p2961_p5 }
  0xd3   : > { %p2964_p13 = pnand %p2963_p11, %p2957_p3 }
  0xd5   : > { %2967 = shalt.err (!%p2964_p13)
}
  0xd6   : > { %s3093_s14 = smov 384   ;;  %s3094_s27 = smov 24  }
  0xd7   : > { %380 = dma.hbm_to_vmem [thread:$0]  (%p2131_p2), %s3380_s25, %s3369_s26, %s3382_s21, %s3372_s17, %s3093_s14, %s3093_s14, %s3094_s27  }
  0xd8 PF: > { %p3693_p12 = scmp.ne.s32.totalorder %s3682_s19, 0 }
  0xd9   : > { %s384_s29 = sand.u32 (%p3693_p12), 1, %s3082_s12   ;;  %s386_s9 = sand.u32 (%p3693_p12), 1, %s3078_s11  }
  0xda   : > { %383 = sbr.rel (!%p3693_p12) target bundleno = 253 (0xfd), region = 52  ;;  %s2135_s22 = sshll.u32 (%p3693_p12), %s386_s9, 5 }
  0xdb   : > { %s2136_s8 = sshll.u32 (%p3693_p12), %s3082_s12, 1  ;;  %s3417_s3 = scalar_lea.sflag (%p3693_p12), [#allocation6], %s384_s29 }
  0xdc   : > { %s390_s16 = ssub.s32 (%p3693_p12), 5, %s2136_s8  ;;  %s388_s26 = scalar_lea.vmem (%p3693_p12), [#allocation5], %s2135_s22 }
  0xdd   : > { %p391_p0 = scmp.lt.s32.totalorder (%p3693_p12), %s390_s16, 2 }
  0xe1   : > { %s3719_s16 = smov (!%p391_p0, %s390_s16), 2 }
  0xe2   : > { %s3414_s24 = sshll.u32 %s3719_s16, 8 }
  0xe3   : > { %s396_s28 = ssub.s32 512, %s3414_s24 }
  0xe4   : > { %397 = vsyncadd %s3417_s3, %s396_s28  ;;  %p2139_p2 = scmp.ne.s32.totalorder %s3414_s24, 0  ;;  %s2288_s19 = sshll.u32 %s3082_s12, 9 }
  0xe5   : > { %s3425_s25 = scalar_lea.hbm %s3658_s1, %s2288_s19  ;;  %s403_s30 = sshll.u32 %s388_s26, 4  ;;  %s3427_s30 = int_to_ptr.vmem [resolvable:$true] %s403_s30 }
  0xe6   : > { %s2968_s15 = scalar_lea.hbm %s3425_s25, %s3414_s24  ;;  %s2972_s27 = scalar_lea.hbm %s3658_s1, 1280 }
  0xe7   : > { %p2969_p7 = scmp.ne.s32.totalorder %s3425_s25, %s2968_s15  ;;  %p2973_p10 = scmp.lt.u32.totalorder %s3425_s25, %s3658_s1 }
  0xe8   : > { %p2974_p1 = scmp.lt.u32.totalorder %s2972_s27, %s2968_s15  ;;  %p2976_p3 = scmp.lt.u32.totalorder %s2968_s15, %s3425_s25 }
  0xe9   : > { %p2970_p8 = pnand %p2969_p7, %p2139_p2 }
  0xea   : > { %p2975_p4 = por %p2974_p1, %p2973_p10 }
  0xeb   : > { %p2971_p9 = pneg %p2970_p8 }
  0xec   : > { %p2977_p5 = por %p2976_p3, %p2975_p4 }
  0xee   : > { %p2978_p6 = pnand %p2977_p5, %p2971_p9 }
  0xf0   : > { %2981 = shalt.err (!%p2978_p6)
}
  0xf1   : > { %s2982_s22 = scalar_lea.vmem %s3427_s30, %s3414_s24  ;;  %s3095_s8 = smov [#allocation5]  }
  0xf2   : > { %p2983_p11 = scmp.ne.s32.totalorder %s3427_s30, %s2982_s22  ;;  %s2986_s16 = sshll.u32 %s3095_s8, 4  ;;  %s2987_s16 = int_to_ptr.vmem [resolvable:$false] %s2986_s16 }
  0xf3   : > { %s2988_s28 = scalar_lea.vmem %s2987_s16, 1024  ;;  %p2989_p0 = scmp.lt.s32.totalorder %s3427_s30, %s2987_s16 }
  0xf4   : > { %p2984_p13 = pnand %p2983_p11, %p2139_p2  ;;  %p2990_p7 = scmp.lt.s32.totalorder %s2988_s28, %s2982_s22 }
  0xf6   : > { %p2985_p12 = pneg %p2984_p13  ;;  %p2991_p8 = por %p2990_p7, %p2989_p0 }
  0xf8   : > { %p2992_p10 = pnand %p2991_p8, %p2985_p12 }
  0xfa   : > { %2995 = shalt.err (!%p2992_p10)
}
  0xfb   : > { %s3096_s26 = smov 256   ;;  %s3097_s19 = smov 16  }
  0xfc   : > { %409 = dma.hbm_to_vmem [thread:$0]  (%p2139_p2), %s3425_s25, %s3414_s24, %s3427_s30, %s3417_s3, %s3096_s26, %s3096_s26, %s3097_s19  }
  0xfd PF: > { %p3694_p9 = scmp.ne.s32.totalorder %s3688_s23, 0 }
  0xfe   : > { %s3457_s17 = sand.u32 (!%p3694_p9), 1, %s3074_s10   ;;  %p3695_p1 = scmp.ne.s32.totalorder (!%p3694_p9), %s3683_s20, 0 }
  0xff   : > { %415 = sbr.rel (%p3694_p9) target bundleno = 1625 (0x659), region = 56  ;;  %s418_s15 = scalar_lea.sflag (!%p3694_p9), [#allocation3], %s3457_s17 }
 0x100   : > { %s2525_s21 = smul.u32 (!%p3694_p9), 48, %s3457_s17 }
 0x102   : > { %s3461_s18 = scalar_lea.vmem (!%p3694_p9), [#allocation2], %s2525_s21 }
 0x106   : > { %3041 = dma.done.wait (%p3695_p1), %s418_s15, 768  }
 0x107   : > { %3043 = vsyncadd (%p3695_p1), %s418_s15, 4294966528  ;;  %s426_s23 = sand.u32 1, %s3174_s13   ;;  %s2145_s24 = sshll.u32 %s3457_s17, 5 }
 0x108   : > { %s427_s3 = scalar_lea.sflag [#allocation6], %s426_s23  ;;  %s3469_s25 = scalar_lea.vmem [#allocation5], %s2145_s24 }
 0x109   : > { %3045 = dma.done.wait (%p3695_p1), %s427_s3, 512  }
 0x10a   : > { %3047 = vsyncadd (%p3695_p1), %s427_s3, 4294966784  ;;  %p3696_p2 = scmp.eq.s32.totalorder %s3174_s13, 0 }
 0x10c   : > { %3049 = dma.done.wait (%p3696_p2), [#allocation6], 6144   ;;  %p3697_p4 = pmov %p3696_p2 }
 0x10d   : > { %p3698_p3 = pmov %p3696_p2 }
 0x10e   : > { %3051 = vsyncadd (%p3697_p4), [#allocation6], 4294961152 }
 0x10f   : > { %3053 = dma.done.wait (%p3698_p3), [#allocation9], 5120   ;;  %p3699_p5 = pmov %p3696_p2 }
 0x110   : > { %p3700_p6 = pmov %p3696_p2 }
 0x111   : > { %3055 = vsyncadd (%p3699_p5), [#allocation9], 4294962176 }
 0x112   : > { %3057 = dma.done.wait (%p3700_p6), [#allocation12], 2048   ;;  %p3701_p11 = pmov %p3696_p2 }
 0x113   : > { %p3702_p13 = pmov %p3696_p2 }
 0x114   : > { %3059 = vsyncadd (%p3701_p11), [#allocation12], 4294965248 }
 0x115   : > { %3061 = dma.done.wait (%p3702_p13), [#allocation15], 1024   ;;  %p3703_p12 = pmov %p3696_p2 }
 0x116   : > { %v2637_v0 = vld [vmem:[#allocation7 + $0x40] sm:$0xff]   ;;  %v2641_v4 = vld [vmem:[#allocation7 + $0x48] sm:$0xff]   ;;  %v2645_v8 = vld [vmem:[#allocation7 + $0x50] sm:$0xff]   ;;  %v747_v54 = vlaneseq  ;;  %s3704_s14 = sld [smem:[#allocation30_spill]]  ;;  %vm3099_vm0 = vmmov 0   ;;  %s2152_s27 = sshll.u32 %s3457_s17, 3 }
 0x117   : > { %3063 = vsyncadd (%p3703_p12), [#allocation15], 4294966272  ;;  %v2638_v1 = vld [vmem:[#allocation7] sm:$0xff]   ;;  %2297 = vmatprep.subr.bf16.mxu0 %v2637_v0  ;;  %v2642_v5 = vld [vmem:[#allocation7 + $0x8] sm:$0xff]   ;;  %s493_s29 = scalar_lea.vmem [#allocation16], %s2152_s27  ;;  %s1947_s9 = scalar_lea.sflag [#allocation4], %s3457_s17 }
 0x118   : > { %v2639_v2 = vld [vmem:[#allocation7 + $0xc0] sm:$0xff]   ;;  %2298 = vmatpush3.bf16.msra.mxu0 %v2638_v1  ;;  %v2643_v6 = vld [vmem:[#allocation7 + $0xc8] sm:$0xff]   ;;  %v2646_v9 = vld [vmem:[#allocation7 + $0x10] sm:$0xff]   ;;  %v3497_v55 = vshrl.u32 %v747_v54, 7  ;;  %s3705_s22 = sld [smem:[#allocation27_spill]] }
 0x119   : > { %v2640_v3 = vld [vmem:[#allocation7 + $0x80] sm:$0xff]   ;;  %2319 = vmatprep.subr.bf16.mxu1 %v2639_v2  ;;  %2299 = vmatprep.subr.bf16.mxu0 %v2641_v4  ;;  %v2644_v7 = vld [vmem:[#allocation7 + $0x88] sm:$0xff]   ;;  %v2647_v10 = vld [vmem:[#allocation7 + $0xd0] sm:$0xff]  }
 0x11a   : > { %2320 = vmatpush3.bf16.msra.mxu1 %v2640_v3  ;;  %v2648_v11 = vld [vmem:[#allocation7 + $0x90] sm:$0xff]   ;;  %v2649_v12 = vld [vmem:[#allocation7 + $0x58] sm:$0xff]   ;;  %v2653_v16 = vld [vmem:[#allocation7 + $0x60] sm:$0xff]   ;;  %v749_v56 = vsub.s32 0, %v3497_v55 }
 0x11b   : > { %2321 = vmatprep.subr.bf16.mxu1 %v2643_v6  ;;  %v2650_v13 = vld [vmem:[#allocation7 + $0x18] sm:$0xff]   ;;  %v2654_v17 = vld [vmem:[#allocation7 + $0x20] sm:$0xff]   ;;  %v2657_v20 = vld [vmem:[#allocation7 + $0x68] sm:$0xff]  }
 0x11c   : > { %2300 = vmatpush3.bf16.msra.mxu0 %v2642_v5  ;;  %v2651_v14 = vld [vmem:[#allocation7 + $0xd8] sm:$0xff]   ;;  %v2655_v18 = vld [vmem:[#allocation7 + $0xe0] sm:$0xff]   ;;  %v2658_v21 = vld [vmem:[#allocation7 + $0x28] sm:$0xff]  }
 0x11d   : > { %2301 = vmatprep.subr.bf16.mxu0 %v2645_v8  ;;  %v2652_v15 = vld [vmem:[#allocation7 + $0x98] sm:$0xff]   ;;  %v2656_v19 = vld [vmem:[#allocation7 + $0xa0] sm:$0xff]   ;;  %v2659_v22 = vld [vmem:[#allocation7 + $0xe8] sm:$0xff]  }
 0x11e   : > { %2322 = vmatpush3.bf16.msra.mxu1 %v2644_v7  ;;  %v2660_v23 = vld [vmem:[#allocation7 + $0xa8] sm:$0xff]   ;;  %v2661_v24 = vld [vmem:[#allocation7 + $0x70] sm:$0xff]   ;;  %v2665_v28 = vld [vmem:[#allocation7 + $0x78] sm:$0xff]   ;;  %p3706_p0 = scmp.ne.s32.totalorder %s3705_s22, 0 }
 0x11f   : > { %2323 = vmatprep.subr.bf16.mxu1 %v2647_v10  ;;  %v2662_v25 = vld [vmem:[#allocation7 + $0x30] sm:$0xff]   ;;  %v2666_v29 = vld [vmem:[#allocation7 + $0x38] sm:$0xff]   ;;  %v2672_v34 = vld [vmem:[#allocation7 + $0x140] sm:$0xff]   ;;  %s2278_s8 = sshll.u32 (%p3706_p0), %s3174_s13, 1 }
 0x120   : > { %2302 = vmatpush3.bf16.msra.mxu0 %v2646_v9  ;;  %v2663_v26 = vld [vmem:[#allocation7 + $0xf0] sm:$0xff]   ;;  %v2667_v30 = vld [vmem:[#allocation7 + $0xf8] sm:$0xff]   ;;  %v2676_v37 = vld [vmem:[#allocation7 + $0x100] sm:$0xff]   ;;  %s1955_s16 = ssub.s32 (%p3706_p0), 5, %s2278_s8 }
 0x121   : > { %2303 = vmatprep.subr.bf16.mxu0 %v2649_v12  ;;  %v2664_v27 = vld [vmem:[#allocation7 + $0xb0] sm:$0xff]   ;;  %v2671_v33 = vld [vmem:[#allocation7 + $0xb8] sm:$0xff]   ;;  %v2677_v38 = vld [vmem:[#allocation7 + $0x148] sm:$0xff]   ;;  %p1956_p7 = scmp.lt.s32.totalorder (%p3706_p0), %s1955_s16, 2 }
 0x122   : > { %2324 = vmatpush3.bf16.msra.mxu1 %v2648_v11  ;;  %v2668_v31 = vld [vmem:[%s3461_s18] ss:$24 sps:$4 sm:$0xff]   ;;  %v2670_v32 = vld [vmem:[%s3461_s18 + $0x4] ss:$24 sps:$4 sm:$0xff]   ;;  %v2693_v47 = vld [vmem:[%s3461_s18 + $0x14] ss:$24 sps:$4 sm:$0xff]  }
 0x123   : > { %2325 = vmatprep.subr.bf16.mxu1 %v2651_v14  ;;  %1101 = vmatprep.mubr.bf16.mxu0 %v2670_v32  ;;  %v2673_v35 = vld [vmem:[%s3461_s18 + $0x8] ss:$24 sps:$4 sm:$0xff]   ;;  %v2675_v36 = vld [vmem:[%s3461_s18 + $0xc] ss:$24 sps:$4 sm:$0xff]  }
 0x124   : > { %2304 = vmatpush3.bf16.msra.mxu0 %v2650_v13  ;;  %1142 = vmatprep.mubr.bf16.mxu1 %v2675_v36  ;;  %v2678_v39 = vld [vmem:[#allocation7 + $0x108] sm:$0xff]   ;;  %v2679_v40 = vld [vmem:[#allocation7 + $0x150] sm:$0xff]   ;;  %v2681_v42 = vld [vmem:[#allocation7 + $0x158] sm:$0xff]  }
 0x125   : > { %2305 = vmatprep.subr.bf16.mxu0 %v2653_v16  ;;  %v2680_v41 = vld [vmem:[#allocation7 + $0x110] sm:$0xff]   ;;  %v2682_v43 = vld [vmem:[#allocation7 + $0x118] sm:$0xff]   ;;  %v2683_v44 = vld [vmem:[#allocation7 + $0x160] sm:$0xff]  }
 0x126   : > { %2326 = vmatpush3.bf16.msra.mxu1 %v2652_v15  ;;  %v2684_v45 = vld [vmem:[#allocation7 + $0x120] sm:$0xff]   ;;  %v2685_v46 = vld [vmem:[#allocation7 + $0x168] sm:$0xff]   ;;  %v2687_v49 = vld [vmem:[#allocation7 + $0x170] sm:$0xff]  }
 0x127   : > { %2327 = vmatprep.subr.bf16.mxu1 %v2655_v18  ;;  %v2686_v48 = vld [vmem:[#allocation7 + $0x128] sm:$0xff]   ;;  %v2688_v50 = vld [vmem:[#allocation7 + $0x130] sm:$0xff]   ;;  %v2689_v51 = vld [vmem:[#allocation7 + $0x178] sm:$0xff]  }
 0x128   : > { %2306 = vmatpush3.bf16.msra.mxu0 %v2654_v17  ;;  %v2690_v52 = vld [vmem:[#allocation7 + $0x138] sm:$0xff]   ;;  %v3503_v57 = vld [vmem:[%s3704_s14] sm:$0xff]  ;;  %v2700_v32 = vld [vmem:[#allocation10 + $0x30] sm:$0xff]  }
 0x129   : > { %2307 = vmatprep.subr.bf16.mxu0 %v2657_v20  ;;  %v2691_v53 = vld [vmem:[%s3461_s18 + $0x10] ss:$24 sps:$4 sm:$0xff]   ;;  %v750_v59 = vrot.slane %v3503_v57, %v749_v56 }
 0x12a   : > { %2328 = vmatpush3.bf16.msra.mxu1 %v2656_v19  ;;  %v2709_v36 = vld [vmem:[#allocation8 + $0x10] sm:$0xff]  }
 0x12b   : > { %2329 = vmatprep.subr.bf16.mxu1 %v2659_v22  ;;  %v3098_v22 = vmov 0.0  }
 0x12c   : > { %2308 = vmatpush3.bf16.msra.mxu0 %v2658_v21  ;;  %v2694_v21 = vld [vmem:[#allocation10] sm:$0xff]  }
 0x12d   : > { %2309 = vmatprep.subr.bf16.mxu0 %v2661_v24  ;;  %v2696_v24 = vld [vmem:[#allocation10 + $0x10] sm:$0xff]  }
 0x12e   : > { %2330 = vmatpush3.bf16.msra.mxu1 %v2660_v23  ;;  %v2695_v23 = vld [vmem:[#allocation10 + $0x8] sm:$0xff]  }
 0x12f   : > { %2331 = vmatprep.subr.bf16.mxu1 %v2663_v26  ;;  %v2698_v26 = vld [vmem:[#allocation10 + $0x20] sm:$0xff]  }
 0x130   : > { %2310 = vmatpush3.bf16.msra.mxu0 %v2662_v25  ;;  %v2697_v25 = vld [vmem:[#allocation10 + $0x18] sm:$0xff]  }
 0x131   : > { %2311 = vmatprep.subr.bf16.mxu0 %v2665_v28  ;;  %v2702_v28 = vld [vmem:[#allocation8] sm:$0xff]  }
 0x132   : > { %2332 = vmatpush3.bf16.msra.mxu1 %v2664_v27  ;;  %v2701_v27 = vld [vmem:[#allocation8 + $0x40] sm:$0xff]  }
 0x133   : > { %2333 = vmatprep.subr.bf16.mxu1 %v2667_v30  ;;  %v2705_v30 = vld [vmem:[#allocation8 + $0x8] sm:$0xff]  }
 0x134   : > { %2312 = vmatpush3.bf16.msra.mxu0 %v2666_v29  ;;  %v2704_v29 = vld [vmem:[#allocation8 + $0x48] sm:$0xff]  }
 0x135   : > { %2341 = vmatprep.subr.bf16.mxu0 %v2672_v34  ;;  %v2706_v34 = vld [vmem:[#allocation8 + $0xc0] sm:$0xff]  }
 0x136   : > { %2334 = vmatpush3.bf16.msra.mxu1 %v2671_v33  ;;  %v2703_v33 = vld [vmem:[#allocation10 + $0x38] sm:$0xff]  }
 0x137   : > { %1102 = vmatmul.mubr.bf16.vlgmr.msra.gmra.mrb[0].mxu0 %v2668_v31  ;;  %2443 = vmatprep.subr.bf16.mxu1 %v3098_v22  ;;  %v2699_v31 = vld [vmem:[#allocation10 + $0x28] sm:$0xff]  }
 0x138   : > { %2342 = vmatpush3.bf16.msra.mxu0 %v2676_v37  ;;  %1183 = vmatprep.mubr.bf16.mxu0 %v2693_v47  ;;  %v2712_v37 = vld [vmem:[#allocation8 + $0x58] sm:$0xff]   ;;  %v2734_v47 = vld [vmem:[%s3469_s25 + $0x4] ss:$16 sps:$4 sm:$0xff]  }
 0x139   : > { %1143 = vmatmul.mubr.bf16.vlgmr.msra.gmra.mrb[0].mxu1 %v2673_v35  ;;  %2343 = vmatprep.subr.bf16.mxu0 %v2677_v38  ;;  %v2708_v35 = vld [vmem:[#allocation8 + $0x50] sm:$0xff]   ;;  %v2713_v38 = vld [vmem:[#allocation8 + $0x18] sm:$0xff]  }
 0x13a   : > { %2444 = vmatpush3.bf16.msra.mxu1 %v2694_v21  ;;  %2459 = vmatprep.mubr.msk.bf16.mxu1 %vm3099_vm0, %v3098_v22  ;;  %v2710_v21 = vld [vmem:[#allocation8 + $0xc8] sm:$0xff]  }
 0x13b   : > { %2445 = vmatprep.subr.bf16.mxu1 %v3098_v22 }
 0x13c   : > { %2344 = vmatpush3.bf16.msra.mxu0 %v2678_v39  ;;  %v2716_v39 = vld [vmem:[#allocation8 + $0x60] sm:$0xff]  }
 0x13d   : > { %2345 = vmatprep.subr.bf16.mxu0 %v2679_v40  ;;  %v2717_v40 = vld [vmem:[#allocation8 + $0x20] sm:$0xff]  }
 0x13e   : > { %2446 = vmatpush3.bf16.msra.mxu1 %v2695_v23  ;;  %v2711_v23 = vld [vmem:[#allocation8 + $0x88] sm:$0xff]  }
 0x13f   : > { %2447 = vmatprep.subr.bf16.mxu1 %v3098_v22 }
 0x140   : > { %2346 = vmatpush3.bf16.msra.mxu0 %v2680_v41  ;;  %v2720_v41 = vld [vmem:[#allocation8 + $0x68] sm:$0xff]  }
 0x141   : > { %2347 = vmatprep.subr.bf16.mxu0 %v2681_v42  ;;  %v2721_v42 = vld [vmem:[#allocation8 + $0x28] sm:$0xff]  }
 0x142   : > { %2448 = vmatpush3.bf16.msra.mxu1 %v2696_v24  ;;  %v2715_v24 = vld [vmem:[#allocation8 + $0x90] sm:$0xff]  }
 0x143   : > { %2449 = vmatprep.subr.bf16.mxu1 %v3098_v22 }
 0x144   : > { %2348 = vmatpush3.bf16.msra.mxu0 %v2682_v43  ;;  %v2724_v43 = vld [vmem:[#allocation8 + $0x70] sm:$0xff]  }
 0x145   : > { %2349 = vmatprep.subr.bf16.mxu0 %v2683_v44  ;;  %v2725_v44 = vld [vmem:[#allocation8 + $0x30] sm:$0xff]  }
 0x146   : > { %2450 = vmatpush3.bf16.msra.mxu1 %v2697_v25  ;;  %v2718_v25 = vld [vmem:[#allocation8 + $0xd8] sm:$0xff]  }
 0x147   : > { %2451 = vmatprep.subr.bf16.mxu1 %v3098_v22 }
 0x148   : > { %2350 = vmatpush3.bf16.msra.mxu0 %v2684_v45  ;;  %v2728_v45 = vld [vmem:[#allocation8 + $0x78] sm:$0xff]  }
 0x149   : > { %2351 = vmatprep.subr.bf16.mxu0 %v2685_v46  ;;  %v2729_v46 = vld [vmem:[#allocation8 + $0x38] sm:$0xff]  }
 0x14a   : > { %2452 = vmatpush3.bf16.msra.mxu1 %v2698_v26  ;;  %v2719_v26 = vld [vmem:[#allocation8 + $0x98] sm:$0xff]  }
 0x14b   : > { %2453 = vmatprep.subr.bf16.mxu1 %v3098_v22 }
 0x14c   : > { %2352 = vmatpush3.bf16.msra.mxu0 %v2686_v48  ;;  %v2732_v48 = vld [vmem:[%s3469_s25] ss:$16 sps:$4 sm:$0xff]  }
 0x14d   : > { %2353 = vmatprep.subr.bf16.mxu0 %v2687_v49 }
 0x14e   : > { %2454 = vmatpush3.bf16.msra.mxu1 %v2699_v31  ;;  %v2730_v31 = vld [vmem:[#allocation8 + $0xf0] sm:$0xff]  }
 0x14f   : > { %2455 = vmatprep.subr.bf16.mxu1 %v3098_v22 }
 0x150   : > { %2354 = vmatpush3.bf16.msra.mxu0 %v2688_v50 }
 0x151   : > { %2355 = vmatprep.subr.bf16.mxu0 %v2689_v51 }
 0x152   : > { %2456 = vmatpush3.bf16.msra.mxu1 %v2700_v32  ;;  %v2731_v32 = vld [vmem:[#allocation8 + $0xb0] sm:$0xff]  }
 0x153   : > { %2457 = vmatprep.subr.bf16.mxu1 %v3098_v22 }
 0x154   : > { %2356 = vmatpush3.bf16.msra.mxu0 %v2690_v52 }
 0x155   : > { %2372 = vmatprep.subr.bf16.mxu0 %v2701_v27  ;;  %v2722_v27 = vld [vmem:[#allocation8 + $0xe0] sm:$0xff]  }
 0x156   : > { %2458 = vmatpush3.bf16.msra.mxu1 %v2703_v33  ;;  %v2735_v33 = vld [vmem:[#allocation8 + $0xf8] sm:$0xff]  }
 0x157   : > { %1184 = vmatmul.mubr.bf16.vlgmr.msra.gmra.mrb[4].mxu0 %v2691_v53  ;;  %2394 = vmatprep.subr.bf16.mxu1 %v2706_v34  ;;  %v2736_v34 = vld [vmem:[#allocation8 + $0xb8] sm:$0xff]  }
 0x158   : > { %2373 = vmatpush3.bf16.msra.mxu0 %v2702_v28  ;;  %1570 = vmatprep.mubr.bf16.mxu0 %v2734_v47  ;;  %v2723_v28 = vld [vmem:[#allocation8 + $0xa0] sm:$0xff]   ;;  %v1324_v47 = vsub.s32 3, %v3497_v55 }
 0x159   : > { %2374 = vmatprep.subr.bf16.mxu0 %v2704_v29  ;;  %v2726_v29 = vld [vmem:[#allocation8 + $0xe8] sm:$0xff]  }
 0x15c   : > { %2375 = vmatpush3.bf16.msra.mxu0 %v2705_v30  ;;  %v2727_v30 = vld [vmem:[#allocation8 + $0xa8] sm:$0xff]  }
 0x15d   : > { %2376 = vmatprep.subr.bf16.mxu0 %v2708_v35  ;;  %v2737_v35 = vld [vmem:[%s3469_s25 + $0x8] ss:$16 sps:$4 sm:$0xff]  }
 0x160   : > { %2377 = vmatpush3.bf16.msra.mxu0 %v2709_v36 }
 0x161   : > { %2378 = vmatprep.subr.bf16.mxu0 %v2712_v37 }
 0x164   : > { %2379 = vmatpush3.bf16.msra.mxu0 %v2713_v38 }
 0x165   : > { %2380 = vmatprep.subr.bf16.mxu0 %v2716_v39 }
 0x168   : > { %2381 = vmatpush3.bf16.msra.mxu0 %v2717_v40 }
 0x169   : > { %2382 = vmatprep.subr.bf16.mxu0 %v2720_v41 }
 0x16c   : > { %2383 = vmatpush3.bf16.msra.mxu0 %v2721_v42 }
 0x16d   : > { %2384 = vmatprep.subr.bf16.mxu0 %v2724_v43 }
 0x170   : > { %2385 = vmatpush3.bf16.msra.mxu0 %v2725_v44 }
 0x171   : > { %2386 = vmatprep.subr.bf16.mxu0 %v2728_v45 }
 0x174   : > { %2387 = vmatpush3.bf16.msra.mxu0 %v2729_v46 }
 0x175   : > { %2463 = vmatprep.subr.bf16.mxu0 %v3098_v22 }
 0x177   : > { %1571 = vmatmul.mubr.bf16.vlgmr.msra.gmra.mrb[8].mxu0 %v2732_v48  ;;  %v1325_v48 = vrot.slane %v3503_v57, %v1324_v47 }
 0x178   : > { %2479 = vmatprep.mubr.msk.bf16.mxu0 %vm3099_vm0, %v3098_v22 }
 0x20a   : > { %v2313_v58 = vpop.f32.mrb[0].mxu0 }
 0x20b   : > { %v2314_v60 = vpop.f32.mrb[1].mxu0 }
 0x20c   : > { %v2315_v61 = vadd.f32 %v2314_v60, %v2313_v58  ;;  %v2316_v62 = vpop.f32.mrb[2].mxu0  ;;  %v2335_v63 = vpop.f32.mrb[0].mxu1 }
 0x20d   : > { %v2317_v0 = vpop.f32.mrb[3].mxu0  ;;  %v2336_v3 = vpop.f32.mrb[1].mxu1 }
 0x20e   : > { %v1104_v1 = vadd.f32 %v2315_v61, %v750_v59  ;;  %v2318_v2 = vadd.f32 %v2317_v0, %v2316_v62  ;;  %v2337_v4 = vadd.f32 %v2336_v3, %v2335_v63  ;;  %v2338_v5 = vpop.f32.mrb[2].mxu1 }
 0x20f   : > { %v2339_v7 = vpop.f32.mrb[3].mxu1 }
 0x210   : > { %v1107_v6 = vadd.f32 %v2318_v2, %v750_v59  ;;  %v1145_v8 = vadd.f32 %v2337_v4, %v1104_v1  ;;  %v2340_v9 = vadd.f32 %v2339_v7, %v2338_v5  ;;  %v1220_v1 = vsub.s32 1, %v3497_v55 }
 0x211   : > { %v1226_v4 = vsub.s32 2, %v3497_v55 }
 0x212   : > { %v1148_v10 = vadd.f32 %v2340_v9, %v1107_v6  ;;  %v1221_v3 = vrot.slane %v3503_v57, %v1220_v1  ;;  %v2742_v1 = vld [vmem:[#allocation11 + $0x10] sm:$0xff]  }
 0x213   : > { %v1227_v9 = vrot.slane %v3503_v57, %v1226_v4  ;;  %v2745_v4 = vld [vmem:[#allocation11 + $0x28] sm:$0xff]  }
 0x22a   : > { %v2357_v11 = vpop.f32.mrb[4].mxu0 }
 0x22b   : > { %v2358_v12 = vpop.f32.mrb[5].mxu0 }
 0x22c   : > { %v2359_v13 = vadd.f32 %v2358_v12, %v2357_v11  ;;  %v2360_v14 = vpop.f32.mrb[6].mxu0 }
 0x22d   : > { %v2361_v15 = vpop.f32.mrb[7].mxu0 }
 0x22e   : > { %v3506_v16 = vadd.f32 %v2359_v13, %v1145_v8  ;;  %v2362_v17 = vadd.f32 %v2361_v15, %v2360_v14 }
 0x230   : > { %v3508_v18 = vadd.f32 %v2362_v17, %v1148_v10  ;;  %1192 = vadd.xlane.f32.xlu0 %v3506_v16  ;;  %v1198_v19 = vmul.f32 %v3506_v16, %v3506_v16 }
 0x232   : > { %1200 = vadd.xlane.f32.xlu1 %v1198_v19  ;;  %v1199_v20 = vmul.f32 %v3508_v18, %v3508_v18  ;;  %v2739_v19 = vld [vmem:[%s3469_s25 + $0xc] ss:$16 sps:$4 sm:$0xff]  }
 0x234   : > { %1194 = vadd.xlane.f32.xlu0 %v3508_v18 }
 0x236   : > { %1202 = vadd.xlane.f32.xlu1 %v1199_v20 }
 0x24a   : > { %v2388_v36 = vpop.f32.mrb[8].mxu0 }
 0x24b   : > { %v2389_v37 = vpop.f32.mrb[9].mxu0 }
 0x24c   : > { %v2390_v38 = vadd.f32 %v2389_v37, %v2388_v36  ;;  %v2391_v39 = vpop.f32.mrb[10].mxu0 }
 0x24d   : > { %v2392_v40 = vpop.f32.mrb[11].mxu0 }
 0x24e   : > { %v2393_v41 = vadd.f32 %v2392_v40, %v2391_v39 }
 0x2bd   : > { %v1193_v49 = vpop.xlane.xlu0 %1192 }
 0x2be   : > { %v1196_v50 = vmul.f32 0.03125, %v1193_v49  ;;  %v1573_v49 = vadd.f32 %v2390_v38, %v1325_v48 }
 0x2bf   : > { %v1201_v51 = vpop.xlane.xlu1 %1200 }
 0x2c0   : > { %v1206_v52 = vmul.f32 %v1196_v50, %v1196_v50  ;;  %v1204_v53 = vmul.f32 0.03125, %v1201_v51  ;;  %v1210_v2 = vsub.f32 %v3506_v16, %v1196_v50  ;;  %v2707_v16 = vld [vmem:[#allocation8 + $0x80] sm:$0xff]  }
 0x2c1   : > { %v1195_v54 = vpop.xlane.xlu0 %1194 }
 0x2c2   : > { %v1208_v56 = vsub.f32 %v1204_v53, %v1206_v52  ;;  %v1197_v58 = vmul.f32 0.03125, %v1195_v54 }
 0x2c3   : > { %v1203_v59 = vpop.xlane.xlu1 %1202 }
 0x2c4   : > { %v1212_v60 = vadd.f32 1e-05, %v1208_v56  ;;  %v1207_v61 = vmul.f32 %v1197_v58, %v1197_v58  ;;  %v1205_v62 = vmul.f32 0.03125, %v1203_v59  ;;  %v1211_v7 = vsub.f32 %v3508_v18, %v1197_v58  ;;  %v2714_v18 = vld [vmem:[#allocation8 + $0xd0] sm:$0xff]  }
 0x2c5   : > { %v1576_v56 = vadd.f32 %v2393_v41, %v1325_v48  ;;  %v2748_v48 = vld [vmem:[#allocation13] sm:$0xff]  }
 0x2c6   : > { %2764 = vrsqrt.f32 %v1212_v60  ;;  %v1209_v63 = vsub.f32 %v1205_v62, %v1207_v61 }
 0x2c8   : > { %v1213_v0 = vadd.f32 1e-05, %v1209_v63  ;;  %v2740_v63 = vld [vmem:[#allocation11] sm:$0xff]  }
 0x2c9   : > { %2464 = vmatpush3.bf16.msra.mxu0 %v2740_v63 }
 0x2ca   : > { %2766 = vrsqrt.f32 %v1213_v0  ;;  %2465 = vmatprep.subr.bf16.mxu0 %v3098_v22  ;;  %v2741_v0 = vld [vmem:[#allocation11 + $0x8] sm:$0xff]  }
 0x2cd   : > { %2466 = vmatpush3.bf16.msra.mxu0 %v2741_v0 }
 0x2ce   : > { %2467 = vmatprep.subr.bf16.mxu0 %v3098_v22 }
 0x2d0   : > { %v2765_v5 = vpop.eup %2764 }
 0x2d1   : > { %v1216_v6 = vmul.f32 %v2765_v5, %v1210_v2  ;;  %2468 = vmatpush3.bf16.msra.mxu0 %v2742_v1  ;;  %v2743_v2 = vld [vmem:[#allocation11 + $0x18] sm:$0xff]   ;;  %v2746_v5 = vld [vmem:[#allocation11 + $0x30] sm:$0xff]  }
 0x2d2   : > { %2469 = vmatprep.subr.bf16.mxu0 %v3098_v22 }
 0x2d3   : > { %v1222_v8 = vmul.f32 %v1221_v3, %v1216_v6  ;;  %v2747_v6 = vld [vmem:[#allocation11 + $0x38] sm:$0xff]  }
 0x2d4   : > { %v2767_v10 = vpop.eup %2766 }
 0x2d5   : > { %v1217_v11 = vmul.f32 %v2767_v10, %v1211_v7  ;;  %v1228_v13 = vadd.f32 %v1227_v9, %v1222_v8  ;;  %2470 = vmatpush3.bf16.msra.mxu0 %v2743_v2  ;;  %v2756_v7 = vld [vmem:[#allocation14] sm:$0xff]   ;;  %v2757_v8 = vld [vmem:[#allocation14 + $0x8] sm:$0xff]   ;;  %v2759_v10 = vld [vmem:[#allocation14 + $0x18] sm:$0xff]  }
 0x2d6   : > { %2471 = vmatprep.subr.bf16.mxu0 %v3098_v22 }
 0x2d7   : > { %v1223_v12 = vmul.f32 %v1221_v3, %v1217_v11  ;;  %v1230_v15 = vmax.f32 %v1228_v13, 0.0  ;;  %v2744_v3 = vld [vmem:[#allocation11 + $0x20] sm:$0xff]   ;;  %v2762_v13 = vld [vmem:[#allocation14 + $0x30] sm:$0xff]  }
 0x2d8   : > { %v2760_v11 = vld [vmem:[#allocation14 + $0x20] sm:$0xff]  }
 0x2d9   : > { %v1229_v14 = vadd.f32 %v1227_v9, %v1223_v12  ;;  %2472 = vmatpush3.bf16.msra.mxu0 %v2744_v3  ;;  %v2758_v9 = vld [vmem:[#allocation14 + $0x10] sm:$0xff]   ;;  %v2761_v12 = vld [vmem:[#allocation14 + $0x28] sm:$0xff]  }
 0x2da   : > { %2473 = vmatprep.subr.bf16.mxu0 %v3098_v22 }
 0x2db   : > { %v1231_v17 = vmax.f32 %v1229_v14, 0.0 }
 0x2dd   : > { %v1232_v20 = vpack.c.bf16 %v1231_v17, %v1230_v15  ;;  %2474 = vmatpush3.bf16.msra.mxu0 %v2745_v4 }
 0x2de   : > { %2475 = vmatprep.subr.bf16.mxu0 %v3098_v22 }
 0x2df   : > { %2460 = vmatmul.mubr.bf16.vlgmr.msra.gmra.mrb[4].mxu1 %v1232_v20 }
 0x2e0   : > { %2395 = vmatpush3.bf16.msra.mxu1 %v2707_v16  ;;  %1611 = vmatprep.mubr.bf16.mxu1 %v2739_v19 }
 0x2e1   : > { %2396 = vmatprep.subr.bf16.mxu1 %v2710_v21  ;;  %2476 = vmatpush3.bf16.msra.mxu0 %v2746_v5 }
 0x2e2   : > { %2477 = vmatprep.subr.bf16.mxu0 %v3098_v22 }
 0x2e4   : > { %2397 = vmatpush3.bf16.msra.mxu1 %v2711_v23 }
 0x2e5   : > { %2398 = vmatprep.subr.bf16.mxu1 %v2714_v18  ;;  %2478 = vmatpush3.bf16.msra.mxu0 %v2747_v6 }
 0x2e6   : > { %2503 = vmatprep.subr.bf16.mxu0 %v3098_v22 }
 0x2e8   : > { %2399 = vmatpush3.bf16.msra.mxu1 %v2715_v24 }
 0x2e9   : > { %2400 = vmatprep.subr.bf16.mxu1 %v2718_v25 }
 0x2ec   : > { %2401 = vmatpush3.bf16.msra.mxu1 %v2719_v26 }
 0x2ed   : > { %2402 = vmatprep.subr.bf16.mxu1 %v2722_v27 }
 0x2f0   : > { %2403 = vmatpush3.bf16.msra.mxu1 %v2723_v28 }
 0x2f1   : > { %2404 = vmatprep.subr.bf16.mxu1 %v2726_v29  ;;  %v1648_v29 = vsub.s32 4, %v3497_v55 }
 0x2f4   : > { %2405 = vmatpush3.bf16.msra.mxu1 %v2727_v30  ;;  %v1654_v30 = vsub.s32 5, %v3497_v55 }
 0x2f5   : > { %2406 = vmatprep.subr.bf16.mxu1 %v2730_v31 }
 0x2f6   : > { %v1655_v36 = vrot.slane %v3503_v57, %v1654_v30 }
 0x2f8   : > { %2407 = vmatpush3.bf16.msra.mxu1 %v2731_v32  ;;  %v1649_v32 = vrot.slane %v3503_v57, %v1648_v29 }
 0x2f9   : > { %2408 = vmatprep.subr.bf16.mxu1 %v2735_v33 }
 0x2fc   : > { %2409 = vmatpush3.bf16.msra.mxu1 %v2736_v34 }
 0x2fd   : > { %2483 = vmatprep.subr.bf16.mxu1 %v3098_v22 }
 0x2ff   : > { %1612 = vmatmul.mubr.bf16.vlgmr.msra.gmra.mrb[8].mxu1 %v2737_v35 }
 0x300   : > { %2499 = vmatprep.mubr.msk.bf16.mxu1 %vm3099_vm0, %v3098_v22  ;;  %2484 = vmatpush3.bf16.msra.mxu1 %v2756_v7 }
 0x301   : > { %2485 = vmatprep.subr.bf16.mxu1 %v3098_v22 }
 0x304   : > { %2486 = vmatpush3.bf16.msra.mxu1 %v2757_v8 }
 0x305   : > { %2487 = vmatprep.subr.bf16.mxu1 %v3098_v22 }
 0x308   : > { %2488 = vmatpush3.bf16.msra.mxu1 %v2758_v9 }
 0x309   : > { %2489 = vmatprep.subr.bf16.mxu1 %v3098_v22 }
 0x30c   : > { %2490 = vmatpush3.bf16.msra.mxu1 %v2759_v10 }
 0x30d   : > { %2491 = vmatprep.subr.bf16.mxu1 %v3098_v22 }
 0x310   : > { %2492 = vmatpush3.bf16.msra.mxu1 %v2760_v11 }
 0x311   : > { %2493 = vmatprep.subr.bf16.mxu1 %v3098_v22 }
 0x314   : > { %2494 = vmatpush3.bf16.msra.mxu1 %v2761_v12 }
 0x315   : > { %2495 = vmatprep.subr.bf16.mxu1 %v3098_v22 }
 0x318   : > { %2496 = vmatpush3.bf16.msra.mxu1 %v2762_v13 }
 0x319   : > { %2497 = vmatprep.subr.bf16.mxu1 %v3098_v22 }
 0x3b2   : > { %v3542_v42 = vpop.f32.mrb[4].mxu1 }
 0x3b3   : > { %v2461_v43 = vpop.f32.mrb[5].mxu1 }
 0x3b4   : > { %v3544_v44 = vpop.f32.mrb[6].mxu1 }
 0x3b5   : > { %v1750_v45 = vpack.c.bf16 %v3544_v44, %v3542_v42  ;;  %v2462_v46 = vpop.f32.mrb[7].mxu1 }
 0x3d2   : > { %v2410_v50 = vpop.f32.mrb[8].mxu1 }
 0x3d3   : > { %v2411_v51 = vpop.f32.mrb[9].mxu1 }
 0x3d4   : > { %v2412_v52 = vadd.f32 %v2411_v51, %v2410_v50  ;;  %v2413_v53 = vpop.f32.mrb[10].mxu1  ;;  %v2749_v50 = vld [vmem:[#allocation13 + $0x8] sm:$0xff]   ;;  %v2750_v51 = vld [vmem:[#allocation13 + $0x10] sm:$0xff]  }
 0x3d5   : > { %v2414_v54 = vpop.f32.mrb[11].mxu1 }
 0x3d6   : > { %v3550_v58 = vadd.f32 %v2412_v52, %v1573_v49  ;;  %v2415_v59 = vadd.f32 %v2414_v54, %v2413_v53  ;;  %v2751_v52 = vld [vmem:[#allocation13 + $0x18] sm:$0xff]   ;;  %v2752_v53 = vld [vmem:[#allocation13 + $0x20] sm:$0xff]   ;;  %v2753_v54 = vld [vmem:[#allocation13 + $0x28] sm:$0xff]  }
 0x3d8   : > { %v3552_v60 = vadd.f32 %v2415_v59, %v1576_v56  ;;  %1620 = vadd.xlane.f32.xlu0 %v3550_v58  ;;  %v1626_v61 = vmul.f32 %v3550_v58, %v3550_v58  ;;  %v2754_v56 = vld [vmem:[#allocation13 + $0x30] sm:$0xff]   ;;  %v2763_v59 = vld [vmem:[#allocation14 + $0x38] sm:$0xff]  }
 0x3d9   : > { %2498 = vmatpush3.bf16.msra.mxu1 %v2763_v59 }
 0x3da   : > { %1622 = vadd.xlane.f32.xlu1 %v3552_v60  ;;  %v1627_v62 = vmul.f32 %v3552_v60, %v3552_v60 }
 0x3dc   : > { %1628 = vadd.xlane.f32.xlu0 %v1626_v61 }
 0x3de   : > { %1630 = vadd.xlane.f32.xlu1 %v1627_v62 }
 0x465   : > { %v1621_v14 = vpop.xlane.xlu0 %1620 }
 0x466   : > { %v1624_v15 = vmul.f32 0.03125, %v1621_v14 }
 0x467   : > { %v1623_v17 = vpop.xlane.xlu1 %1622 }
 0x468   : > { %v1625_v16 = vmul.f32 0.03125, %v1623_v17  ;;  %v1634_v20 = vmul.f32 %v1624_v15, %v1624_v15  ;;  %v1638_v31 = vsub.f32 %v3550_v58, %v1624_v15  ;;  %v2755_v58 = vld [vmem:[#allocation13 + $0x38] sm:$0xff]  }
 0x469   : > { %v1629_v19 = vpop.xlane.xlu0 %1628 }
 0x46a   : > { %v1632_v21 = vmul.f32 0.03125, %v1629_v19  ;;  %v1635_v18 = vmul.f32 %v1625_v16, %v1625_v16  ;;  %v1639_v34 = vsub.f32 %v3552_v60, %v1625_v16 }
 0x46b   : > { %v1631_v23 = vpop.xlane.xlu1 %1630 }
 0x46c   : > { %v1636_v24 = vsub.f32 %v1632_v21, %v1634_v20  ;;  %v1633_v25 = vmul.f32 0.03125, %v1631_v23 }
 0x46e   : > { %v1640_v26 = vadd.f32 1e-05, %v1636_v24  ;;  %v1637_v27 = vsub.f32 %v1633_v25, %v1635_v18 }
 0x470   : > { %2768 = vrsqrt.f32 %v1640_v26  ;;  %v1641_v28 = vadd.f32 1e-05, %v1637_v27 }
 0x472   : > { %2770 = vrsqrt.f32 %v1641_v28 }
 0x47a   : > { %v2769_v33 = vpop.eup %2768 }
 0x47b   : > { %v1644_v35 = vmul.f32 %v2769_v33, %v1638_v31 }
 0x47c   : > { %v2771_v37 = vpop.eup %2770 }
 0x47d   : > { %v1645_v38 = vmul.f32 %v2771_v37, %v1639_v34  ;;  %v1650_v39 = vmul.f32 %v1649_v32, %v1644_v35 }
 0x47f   : > { %v1651_v40 = vmul.f32 %v1649_v32, %v1645_v38  ;;  %v1656_v41 = vadd.f32 %v1655_v36, %v1650_v39 }
 0x481   : > { %v1657_v43 = vadd.f32 %v1655_v36, %v1651_v40  ;;  %v1658_v46 = vmax.f32 %v1656_v41, 0.0 }
 0x483   : > { %v1659_v47 = vmax.f32 %v1657_v43, 0.0 }
 0x485   : > { %v1660_v49 = vpack.c.bf16 %v1659_v47, %v1658_v46 }
 0x487   : > { %2480 = vmatmul.mubr.bf16.vlgmr.msra.gmra.mrb[12].mxu0 %v1660_v49 }
 0x488   : > { %2504 = vmatpush3.bf16.msra.mxu0 %v2748_v48  ;;  %2519 = vmatprep.mubr.msk.bf16.mxu0 %vm3099_vm0, %v3098_v22 }
 0x489   : > { %2505 = vmatprep.subr.bf16.mxu0 %v3098_v22 }
 0x48c   : > { %2506 = vmatpush3.bf16.msra.mxu0 %v2749_v50 }
 0x48d   : > { %2507 = vmatprep.subr.bf16.mxu0 %v3098_v22 }
 0x490   : > { %2508 = vmatpush3.bf16.msra.mxu0 %v2750_v51 }
 0x491   : > { %2509 = vmatprep.subr.bf16.mxu0 %v3098_v22 }
 0x494   : > { %2510 = vmatpush3.bf16.msra.mxu0 %v2751_v52 }
 0x495   : > { %2511 = vmatprep.subr.bf16.mxu0 %v3098_v22 }
 0x498   : > { %2512 = vmatpush3.bf16.msra.mxu0 %v2752_v53 }
 0x499   : > { %2513 = vmatprep.subr.bf16.mxu0 %v3098_v22 }
 0x49c   : > { %2514 = vmatpush3.bf16.msra.mxu0 %v2753_v54 }
 0x49d   : > { %2515 = vmatprep.subr.bf16.mxu0 %v3098_v22 }
 0x4a0   : > { %2516 = vmatpush3.bf16.msra.mxu0 %v2754_v56 }
 0x4a1   : > { %2517 = vmatprep.subr.bf16.mxu0 %v3098_v22  ;;  %v1932_v22 = vsub.s32 6, %v3497_v55 }
 0x4a3   : > { %v1933_v42 = vrot.slane %v3503_v57, %v1932_v22 }
 0x4a4   : > { %2518 = vmatpush3.bf16.msra.mxu0 %v2755_v58 }
 0x4a7   : > { %2520 = vmatmul.mubr.bf16.vlgmr.msra.gmra.mrb[16].mxu0 %v1750_v45 }
 0x55a   : > { %v1743_v60 = vpop.f32.mrb[12].mxu0 }
 0x55b   : > { %v2481_v61 = vpop.f32.mrb[13].mxu0 }
 0x55c   : > { %v1746_v62 = vpop.f32.mrb[14].mxu0 }
 0x55d   : > { %v1751_v63 = vpack.c.bf16 %v1746_v62, %v1743_v60  ;;  %v2482_v0 = vpop.f32.mrb[15].mxu0 }
 0x55f   : > { %2500 = vmatmul.mubr.bf16.vlgmr.msra.gmra.mrb[12].mxu1 %v1751_v63 }
 0x57a   : > { %v1923_v1 = vpop.f32.mrb[16].mxu0 }
 0x57b   : > { %v2521_v2 = vpop.f32.mrb[17].mxu0 }
 0x57c   : > { %v1926_v3 = vpop.f32.mrb[18].mxu0 }
 0x57d   : > { %v2522_v4 = vpop.f32.mrb[19].mxu0 }
 0x632   : > { %v1834_v5 = vpop.f32.mrb[12].mxu1 }
 0x633   : > { %v1924_v6 = vadd.f32 %v1923_v1, %v1834_v5  ;;  %v2501_v44 = vpop.f32.mrb[13].mxu1 }
 0x634   : > { %v1837_v45 = vpop.f32.mrb[14].mxu1 }
 0x635   : > { %v1927_v7 = vadd.f32 %v1926_v3, %v1837_v45  ;;  %v2502_v8 = vpop.f32.mrb[15].mxu1  ;;  %v1934_v9 = vadd.f32 %v1933_v42, %v1924_v6  ;;  %1953 = sbr.rel (!%p3706_p0) target bundleno = 1625 (0x659), region = 92 }
 0x637   : > { %v1935_v10 = vadd.f32 %v1933_v42, %v1927_v7 }
 0x639   : > { %v2295_v11 = vpack.c.bf16 %v1935_v10, %v1934_v9 }
 0x63b   : > { %2296 = vst [vmem:[%s493_s29] sm:$0xff] %v2295_v11  }
 0x63c   : > { %s3721_s16 = smov (!%p1956_p7, %s1955_s16), 2 }
 0x63d   : > { %s3600_s28 = sshll.u32 %s3721_s16, 6 }
 0x63e   : > { %s1960_s26 = ssub.s32 128, %s3600_s28 }
 0x63f   : > { %1961 = vsyncadd %s1947_s9, %s1960_s26  ;;  %p2280_p8 = scmp.ne.s32.totalorder %s3600_s28, 0  ;;  %s2291_s19 = sshll.u32 %s3174_s13, 7 }
 0x640   : > { %s3707_s18 = sld [smem:[#allocation31_spill]]  ;;  %s1966_s24 = sshll.u32 %s493_s29, 4  ;;  %s3612_s24 = int_to_ptr.vmem [resolvable:$true] %s1966_s24 }
 0x641   : > { %s2996_s3 = scalar_lea.vmem %s3612_s24, %s3600_s28  ;;  %s3100_s25 = smov [#allocation16]  }
 0x642   : > { %p2997_p10 = scmp.ne.s32.totalorder %s3612_s24, %s2996_s3  ;;  %s3000_s20 = sshll.u32 %s3100_s25, 4  ;;  %s3001_s20 = int_to_ptr.vmem [resolvable:$false] %s3000_s20 }
 0x643   : > { %s3002_s13 = scalar_lea.vmem %s3001_s20, 256  ;;  %p3003_p2 = scmp.lt.s32.totalorder %s3612_s24, %s3001_s20 }
 0x644   : > { %p2998_p9 = pnand %p2997_p10, %p2280_p8  ;;  %p3004_p4 = scmp.lt.s32.totalorder %s3002_s13, %s2996_s3 }
 0x646   : > { %s3610_s23 = scalar_lea.hbm %s3707_s18, %s2291_s19  ;;  %p2999_p1 = pneg %p2998_p9 }
 0x647   : > { %p3005_p3 = por %p3004_p4, %p3003_p2 }
 0x649   : > { %p3006_p5 = pnand %p3005_p3, %p2999_p1 }
 0x64b   : > { %3009 = shalt.err (!%p3006_p5)
}
 0x64c   : > { %s3010_s30 = scalar_lea.hbm %s3610_s23, %s3600_s28  ;;  %s3014_s29 = scalar_lea.hbm %s3707_s18, 320 }
 0x64d   : > { %p3011_p6 = scmp.ne.s32.totalorder %s3610_s23, %s3010_s30  ;;  %p3015_p12 = scmp.lt.u32.totalorder %s3610_s23, %s3707_s18 }
 0x64e   : > { %p3016_p0 = scmp.lt.u32.totalorder %s3014_s29, %s3010_s30  ;;  %p3018_p10 = scmp.lt.u32.totalorder %s3010_s30, %s3610_s23 }
 0x64f   : > { %p3012_p11 = pnand %p3011_p6, %p2280_p8 }
 0x650   : > { %p3017_p7 = por %p3016_p0, %p3015_p12 }
 0x651   : > { %p3013_p13 = pneg %p3012_p11 }
 0x652   : > { %p3019_p9 = por %p3018_p10, %p3017_p7 }
 0x654   : > { %p3020_p1 = pnand %p3019_p9, %p3013_p13 }
 0x656   : > { %3023 = shalt.err (!%p3020_p1)
}
 0x657   : > { %s3101_s16 = smov 64   ;;  %s3102_s26 = smov 4  }
 0x658   : > { %1972 = dma.vmem_to_hbm [thread:$0]  (%p2280_p8), %s3612_s24, %s3600_s28, %s3610_s23, %s1947_s9, %s3101_s16, %s3101_s16, %s3102_s26  }
 0x659 PF: > { %s3708_s19 = sld [smem:[#allocation24_spill]]  ;;  %s3709_s21 = sld [smem:[#allocation28_spill]] }
 0x65a   : > { %p2588_p2 = scmp.ge.s32.totalorder %s3082_s12, 2 }
 0x65f   : > { %s1981_s15 = sand.u32 1, %s3708_s19   ;;  %p3710_p4 = scmp.ne.s32.totalorder %s3709_s21, 0 }
 0x660   : > { %s1982_s3 = scalar_lea.sflag [#allocation4], %s1981_s15 }
 0x661   : > { %p2573_p3 = pnand %p2588_p2, %p3710_p4 }
 0x663   : > { %3065 = dma.done.wait (!%p2573_p3), %s1982_s3, 128  }
 0x664   : > { %3067 = vsyncadd (!%p2573_p3), %s1982_s3, 4294967168  ;;  %s3711_s12 = sld [smem:[#allocation25_spill]]  ;;  %s3712_s25 = sld [smem:[#allocation26_spill]] }
 0x665   : > { %s3713_s30 = smov %s3074_s10  ;;  %s3714_s10 = smov %s3078_s11 }
 0x66a   : > { %p28_p5 = scmp.ge.s32.totalorder %s3711_s12, 5   ;;  %s3715_s11 = smov %s3712_s25 }
 0x66c   :  { %30 = sbr.rel (!%p28_p5) target bundleno = 14 (0xe), region = 138 }
 0x673   :  { %1987 = vsyncpa [#allocation3], 1 }
 0x674   :  { %1989 = vsyncpa [#allocation3 + $0x1], 1 }
 0x675   :  { %1990 = vsyncpa [#allocation6], 1 }
 0x676   :  { %1992 = vsyncpa [#allocation6 + $0x1], 1 }
 0x677   :  { %1993 = vsyncpa [#allocation9], 1 }
 0x678   :  { %1994 = vsyncpa [#allocation12], 1 }
 0x679   :  { %1995 = vsyncpa [#allocation15], 1 }
 0x67a   :  { %1996 = vsyncpa [#allocation4], 1 }
 0x67b   :  { %1998 = vsyncpa [#allocation4 + $0x1], 1 }

</bundles_post_ra>
